<compile_context>
chip_gen: v7x
topology: tpu7x:2x2x1
jax: 0.10.0
libtpu: 0.0.40
codegen_flags: <defaults>
</compile_context>

<pallas_src>
import functools

import jax
import jax.numpy as jnp
import numpy as np
from jax.experimental import pallas as pl
from jax.experimental.pallas import tpu as pltpu

BN_EPS = 1e-5
CONV_CHANNELS = ((3, 16), (16, 32), (32, 64))
_PADL = 8   # left zero-border width in the padded scratch buffers: keeps the
            # interior store sublane-aligned; the 3x3 taps load at offsets 7/8/9.


def _round8(x):
    return ((x + 7) // 8) * 8


# ----------------------------------------------------------------------------
# Fused kernel: one grid step == one image, everything stays in VMEM.
# ----------------------------------------------------------------------------
def _fused_cnn_kernel(x_ref,
                      cw1_ref, cs1_ref, cb1_ref,
                      cw2_ref, cs2_ref, cb2_ref,
                      cw3_ref, cs3_ref, cb3_ref,
                      fw1_ref, fb1_ref, fw2_ref, fb2_ref,
                      o_ref,
                      pad1_ref, pad2_ref, pad3_ref,
                      pool1_ref, pool2_ref, pool3_ref,
                      *, dims):
    layers = ((pad1_ref, pool1_ref, cw1_ref, cs1_ref, cb1_ref),
              (pad2_ref, pool2_ref, cw2_ref, cs2_ref, cb2_ref),
              (pad3_ref, pool3_ref, cw3_ref, cs3_ref, cb3_ref))

    # Load the image into layer 1's zero-padded scratch (interior at (1, _PADL)).
    h0, w0 = dims[0][0], dims[0][1]
    pad1_ref[...] = jnp.zeros_like(pad1_ref)
    pad1_ref[pl.ds(1, h0), pl.ds(_PADL, w0), :] = x_ref[0]

    pooled = None
    for li, (h, w, cin, cout) in enumerate(dims):
        pad_ref, pool_ref, w_ref, s_ref, b_ref = layers[li]
        wl = _round8(w)   # tap load width (>= w, multiple of 8 -> aligned reshapes)

        # ---- 3x3 conv: 9 shifted-tap matmuls (bf16 operands, f32 accumulate) ----
        acc = jnp.zeros((h * wl, cout), jnp.float32)
        for dy in range(3):
            for dx in range(3):
                tap = pad_ref[pl.ds(dy, h), pl.ds(_PADL - 1 + dx, wl), :]
                tap = tap.reshape(h * wl, cin).astype(jnp.bfloat16)
                acc = acc + jnp.dot(tap, w_ref[dy * 3 + dx],
                                    preferred_element_type=jnp.float32)

        # ---- folded BatchNorm + ReLU (f32 epilogue) ----
        y = jnp.maximum(acc * s_ref[...] + b_ref[...], 0.0)

        # ---- MaxPool2d(2, 2): vertical max, then stride-2 horizontal max ----
        h2, w2 = h // 2, w // 2
        pool_ref[...] = y.reshape(h2, 2 * wl, cout)
        vmax = jnp.maximum(pool_ref[:, pl.ds(0, wl), :],
                           pool_ref[:, pl.ds(wl, wl), :])          # rows 2i vs 2i+1
        pool_ref[:, pl.ds(0, wl), :] = vmax
        pooled = jnp.maximum(pool_ref[:, pl.ds(0, w2, 2), :],       # cols 0,2,4,...
                             pool_ref[:, pl.ds(1, w2, 2), :])       # cols 1,3,5,...
        # pooled: (h2, w2, cout), all real columns.

        if li + 1 < len(layers):
            nxt_pad = layers[li + 1][0]
            nxt_pad[...] = jnp.zeros_like(nxt_pad)
            nxt_pad[pl.ds(1, h2), pl.ds(_PADL, w2), :] = pooled

    # ---- FC head: Linear -> ReLU -> Linear (Dropout == identity in eval) ----
    ph, pw, _ = pooled.shape
    hidden = fb1_ref.shape[1]
    hacc = jnp.zeros((1, hidden), jnp.float32)
    for hh in range(ph):
        for ww in range(pw):
            vec = pooled[hh, ww:ww + 1, :].astype(jnp.bfloat16)      # (1, Cf)
            hacc = hacc + jnp.dot(vec, fw1_ref[hh * pw + ww],
                                  preferred_element_type=jnp.float32)
    hact = jnp.maximum(hacc + fb1_ref[...], 0.0)                     # (1, hidden)
    logits = jnp.dot(hact.astype(jnp.bfloat16), fw2_ref[...],
                     preferred_element_type=jnp.float32) + fb2_ref[...]
    o_ref[0] = logits


@functools.lru_cache(maxsize=None)
def _make_fused_cnn(n, image_size, num_classes, hidden):
    assert image_size % 8 == 0, "image_size must be divisible by 8"
    dims = []
    s = image_size
    for (cin, cout) in CONV_CHANNELS:
        dims.append((s, s, cin, cout))
        s //= 2
    dims = tuple(dims)
    feat_pos = s * s
    cf = CONV_CHANNELS[-1][1]

    in_specs = [pl.BlockSpec((1, image_size, image_size, CONV_CHANNELS[0][0]),
                             lambda i: (i, 0, 0, 0))]
    pad_scratch, pool_scratch = [], []
    for (h, w, cin, cout) in dims:
        in_specs += [
            pl.BlockSpec((9, cin, cout), lambda i: (0, 0, 0)),
            pl.BlockSpec((1, cout), lambda i: (0, 0)),
            pl.BlockSpec((1, cout), lambda i: (0, 0)),
        ]
        wl = _round8(w)
        pad_scratch.append(pltpu.VMEM((h + 2, _PADL + wl + 1, cin), jnp.float32))
        pool_scratch.append(pltpu.VMEM((h // 2, 2 * wl, cout), jnp.float32))
    in_specs += [
        pl.BlockSpec((feat_pos, cf, hidden), lambda i: (0, 0, 0)),
        pl.BlockSpec((1, hidden), lambda i: (0, 0)),
        pl.BlockSpec((hidden, num_classes), lambda i: (0, 0)),
        pl.BlockSpec((1, num_classes), lambda i: (0, 0)),
    ]

    kernel = functools.partial(_fused_cnn_kernel, dims=dims)
    return pl.pallas_call(
        kernel,
        out_shape=jax.ShapeDtypeStruct((n, 1, num_classes), jnp.float32),
        grid_spec=pltpu.PrefetchScalarGridSpec(
            num_scalar_prefetch=0,
            grid=(n,),
            in_specs=in_specs,
            out_specs=pl.BlockSpec((1, 1, num_classes), lambda i: (i, 0, 0)),
            scratch_shapes=pad_scratch + pool_scratch),
        compiler_params=pltpu.CompilerParams(
            dimension_semantics=("parallel",)),
    )


# ----------------------------------------------------------------------------
# Parameters (deterministic, synthetic) + one-time repack into kernel layout
# ----------------------------------------------------------------------------
def init_params(key, image_size=16, num_classes=8, hidden=128):
    params = {"conv": []}
    for (cin, cout) in CONV_CHANNELS:
        key, k_w, k_b, k_g, k_beta = jax.random.split(key, 5)
        w_hwio = 0.1 * jax.random.normal(k_w, (3, 3, cin, cout), jnp.float32)
        conv_b = 0.05 * jax.random.normal(k_b, (cout,), jnp.float32)
        gamma = 1.0 + 0.1 * jax.random.normal(k_g, (cout,), jnp.float32)
        beta = 0.05 * jax.random.normal(k_beta, (cout,), jnp.float32)
        params["conv"].append(
            dict(w_hwio=w_hwio, conv_b=conv_b, gamma=gamma, beta=beta,
                 mean=jnp.zeros((cout,), jnp.float32),
                 var=jnp.ones((cout,), jnp.float32)))
    feat = CONV_CHANNELS[-1][1] * (image_size // 8) * (image_size // 8)
    key, k1, k2, k3, k4 = jax.random.split(key, 5)
    params["w1t"] = 0.05 * jax.random.normal(k1, (feat, hidden), jnp.float32)
    params["b1"] = 0.05 * jax.random.normal(k2, (hidden,), jnp.float32)
    params["w2t"] = 0.05 * jax.random.normal(k3, (hidden, num_classes), jnp.float32)
    params["b2"] = 0.05 * jax.random.normal(k4, (num_classes,), jnp.float32)
    return params


def _fold_bn(p):
    scale = p["gamma"] / jnp.sqrt(p["var"] + BN_EPS)
    bias = p["beta"] + (p["conv_b"] - p["mean"]) * scale
    return scale, bias


def prepare_kernel_params(params, image_size):
    """One-time repack of PyTorch-style params into the fused-kernel layout."""
    kp = {"conv": []}
    for p in params["conv"]:
        cin, cout = p["w_hwio"].shape[2], p["w_hwio"].shape[3]
        scale, bias = _fold_bn(p)
        kp["conv"].append(dict(
            w=p["w_hwio"].reshape(9, cin, cout).astype(jnp.bfloat16),
            scale=scale.reshape(1, cout).astype(jnp.float32),
            bias=bias.reshape(1, cout).astype(jnp.float32)))

    # Fold the PyTorch NCHW flatten order into the FC1 weight rows, then tile
    # the rows per spatial position so the kernel never transposes activations.
    s_out = image_size // 8
    cf = CONV_CHANNELS[-1][1]
    hidden = params["w1t"].shape[1]
    num_classes = params["w2t"].shape[1]
    chw = np.arange(cf * s_out * s_out).reshape(cf, s_out, s_out)
    perm = np.transpose(chw, (1, 2, 0)).reshape(-1)     # NHWC position -> CHW row
    w1_nhwc = params["w1t"][perm, :]                    # (P*Cf, hidden)
    kp["fw1"] = w1_nhwc.reshape(s_out * s_out, cf, hidden).astype(jnp.bfloat16)
    kp["fb1"] = params["b1"].reshape(1, hidden).astype(jnp.float32)
    kp["fw2"] = params["w2t"].astype(jnp.bfloat16)
    kp["fb2"] = params["b2"].reshape(1, num_classes).astype(jnp.float32)
    kp["image_size"] = image_size
    kp["hidden"] = hidden
    kp["num_classes"] = num_classes
    return kp


def simple_cnn_forward(x_nchw, kp):
    """Fused Pallas forward. x_nchw: (N, 3, S, S) float32 -> (N, num_classes)."""
    x = jnp.transpose(x_nchw, (0, 2, 3, 1)).astype(jnp.float32)   # NCHW -> NHWC
    n = x.shape[0]
    call = _make_fused_cnn(n, kp["image_size"], kp["num_classes"], kp["hidden"])
    args = [x]
    for c in kp["conv"]:
        args += [c["w"], c["scale"], c["bias"]]
    args += [kp["fw1"], kp["fb1"], kp["fw2"], kp["fb2"]]
    return call(*args).reshape(n, kp["num_classes"])


# Pure-JAX reference (eval-mode semantics) to sanity-check the fused kernel.
def reference_forward(x_nchw, params):
    x = jnp.transpose(x_nchw, (0, 2, 3, 1)).astype(jnp.float32)
    for p in params["conv"]:
        y = jax.lax.conv_general_dilated(
            x, p["w_hwio"], (1, 1), "SAME",
            dimension_numbers=("NHWC", "HWIO", "NHWC"))
        y = y + p["conv_b"]
        y = (y - p["mean"]) / jnp.sqrt(p["var"] + BN_EPS) * p["gamma"] + p["beta"]
        y = jnp.maximum(y, 0.0)
        x = jax.lax.reduce_window(y, -jnp.inf, jax.lax.max,
                                  (1, 2, 2, 1), (1, 2, 2, 1), "VALID")
    feat = jnp.transpose(x, (0, 3, 1, 2)).reshape(x.shape[0], -1)
    h = jnp.maximum(feat @ params["w1t"] + params["b1"], 0.0)
    return h @ params["w2t"] + params["b2"]


if __name__ == "__main__":
    N, IMAGE_SIZE, NUM_CLASSES, HIDDEN = 2, 16, 8, 128   # image_size % 8 == 0

    key = jax.random.PRNGKey(0)
    key, k_x = jax.random.split(key)
    x = jax.random.normal(k_x, (N, 3, IMAGE_SIZE, IMAGE_SIZE), jnp.float32)
    params = init_params(key, image_size=IMAGE_SIZE, num_classes=NUM_CLASSES,
                         hidden=HIDDEN)
    kparams = prepare_kernel_params(params, IMAGE_SIZE)

    out = jax.block_until_ready(simple_cnn_forward(x, kparams))
    ref = jax.block_until_ready(reference_forward(x, params))

    max_err = float(jnp.max(jnp.abs(out - ref)))
    assert out.shape == (N, NUM_CLASSES), out.shape
    assert max_err < 5e-2, f"mismatch vs reference: {max_err}"

    print("KERNEL_OK")
</pallas_src>

<mosaic_0001>
module attributes {stable_mosaic.version = 11 : i64} {
  func.func @_fused_cnn_kernel(%arg0: i32, %arg1: memref<1x16x16x3xf32, #tpu.memory_space<vmem>>, %arg2: memref<9x3x16xbf16, #tpu.memory_space<vmem>>, %arg3: memref<1x16xf32, #tpu.memory_space<vmem>>, %arg4: memref<1x16xf32, #tpu.memory_space<vmem>>, %arg5: memref<9x16x32xbf16, #tpu.memory_space<vmem>>, %arg6: memref<1x32xf32, #tpu.memory_space<vmem>>, %arg7: memref<1x32xf32, #tpu.memory_space<vmem>>, %arg8: memref<9x32x64xbf16, #tpu.memory_space<vmem>>, %arg9: memref<1x64xf32, #tpu.memory_space<vmem>>, %arg10: memref<1x64xf32, #tpu.memory_space<vmem>>, %arg11: memref<4x64x128xbf16, #tpu.memory_space<vmem>>, %arg12: memref<1x128xf32, #tpu.memory_space<vmem>>, %arg13: memref<128x8xbf16, #tpu.memory_space<vmem>>, %arg14: memref<1x8xf32, #tpu.memory_space<vmem>>, %arg15: memref<1x1x8xf32, #tpu.memory_space<vmem>>, %arg16: memref<18x25x3xf32, #tpu.memory_space<vmem>>, %arg17: memref<10x17x16xf32, #tpu.memory_space<vmem>>, %arg18: memref<6x17x32xf32, #tpu.memory_space<vmem>>, %arg19: memref<8x32x16xf32, #tpu.memory_space<vmem>>, %arg20: memref<4x16x32xf32, #tpu.memory_space<vmem>>, %arg21: memref<2x16x64xf32, #tpu.memory_space<vmem>>) attributes {dimension_semantics = [#tpu.dimension_semantics<parallel>], iteration_bounds = array<i64: 2>, scalar_prefetch = 0 : i64, scratch_operands = 6 : i64, tpu.core_type = #tpu.core_type<tc>, window_params = [{transform_indices = @transform_0, window_bounds = array<i64: 1, 16, 16, 3>}, {pipeline_mode = #tpu.pipeline_mode<synchronous>, transform_indices = @transform_1, window_bounds = array<i64: 9, 3, 16>}, {pipeline_mode = #tpu.pipeline_mode<synchronous>, transform_indices = @transform_2, window_bounds = array<i64: 1, 16>}, {pipeline_mode = #tpu.pipeline_mode<synchronous>, transform_indices = @transform_3, window_bounds = array<i64: 1, 16>}, {pipeline_mode = #tpu.pipeline_mode<synchronous>, transform_indices = @transform_4, window_bounds = array<i64: 9, 16, 32>}, {pipeline_mode = #tpu.pipeline_mode<synchronous>, transform_indices = @transform_5, window_bounds = array<i64: 1, 32>}, {pipeline_mode = #tpu.pipeline_mode<synchronous>, transform_indices = @transform_6, window_bounds = array<i64: 1, 32>}, {pipeline_mode = #tpu.pipeline_mode<synchronous>, transform_indices = @transform_7, window_bounds = array<i64: 9, 32, 64>}, {pipeline_mode = #tpu.pipeline_mode<synchronous>, transform_indices = @transform_8, window_bounds = array<i64: 1, 64>}, {pipeline_mode = #tpu.pipeline_mode<synchronous>, transform_indices = @transform_9, window_bounds = array<i64: 1, 64>}, {pipeline_mode = #tpu.pipeline_mode<synchronous>, transform_indices = @transform_10, window_bounds = array<i64: 4, 64, 128>}, {pipeline_mode = #tpu.pipeline_mode<synchronous>, transform_indices = @transform_11, window_bounds = array<i64: 1, 128>}, {pipeline_mode = #tpu.pipeline_mode<synchronous>, transform_indices = @transform_12, window_bounds = array<i64: 128, 8>}, {pipeline_mode = #tpu.pipeline_mode<synchronous>, transform_indices = @transform_13, window_bounds = array<i64: 1, 8>}, {transform_indices = @transform_14, window_bounds = array<i64: 1, 1, 8>}]} {
    %cst = arith.constant 0.000000e+00 : f32
    %0 = vector.broadcast %cst : f32 to vector<18x25x3xf32>
    %c0 = arith.constant 0 : index
    %c0_0 = arith.constant 0 : index
    %c0_1 = arith.constant 0 : index
    %1 = vector.load %arg16[%c0, %c0_0, %c0_1] : memref<18x25x3xf32, #tpu.memory_space<vmem>>, vector<18x25x3xf32>
    tpu.vector_store %arg16[%c0, %c0_0, %c0_1], %0 {strides = array<i32>} : memref<18x25x3xf32, #tpu.memory_space<vmem>>, vector<18x25x3xf32>,
    %c0_2 = arith.constant 0 : index
    %c0_3 = arith.constant 0 : index
    %c0_4 = arith.constant 0 : index
    %c0_5 = arith.constant 0 : index
    %2 = vector.load %arg1[%c0_2, %c0_3, %c0_4, %c0_5] : memref<1x16x16x3xf32, #tpu.memory_space<vmem>>, vector<1x16x16x3xf32>
    %3 = vector.shape_cast %2 : vector<1x16x16x3xf32> to vector<16x16x3xf32>
    %c1 = arith.constant 1 : index
    %c8 = arith.constant 8 : index
    %c0_6 = arith.constant 0 : index
    %4 = vector.load %arg16[%c1, %c8, %c0_6] : memref<18x25x3xf32, #tpu.memory_space<vmem>>, vector<16x16x3xf32>
    tpu.vector_store %arg16[%c1, %c8, %c0_6], %3 {strides = array<i32>} : memref<18x25x3xf32, #tpu.memory_space<vmem>>, vector<16x16x3xf32>,
    %cst_7 = arith.constant 0.000000e+00 : f32
    %5 = vector.broadcast %cst_7 : f32 to vector<256x16xf32>
    %c0_8 = arith.constant 0 : index
    %c7 = arith.constant 7 : index
    %c0_9 = arith.constant 0 : index
    %6 = vector.load %arg16[%c0_8, %c7, %c0_9] : memref<18x25x3xf32, #tpu.memory_space<vmem>>, vector<16x16x3xf32>
    %7 = vector.shape_cast %6 : vector<16x16x3xf32> to vector<256x3xf32>
    %8 = arith.truncf %7 : vector<256x3xf32> to vector<256x3xbf16>
    %c0_10 = arith.constant 0 : index
    %c0_11 = arith.constant 0 : index
    %c0_12 = arith.constant 0 : index
    %9 = vector.load %arg2[%c0_10, %c0_11, %c0_12] : memref<9x3x16xbf16, #tpu.memory_space<vmem>>, vector<1x3x16xbf16>
    %10 = vector.shape_cast %9 : vector<1x3x16xbf16> to vector<3x16xbf16>
    %cst_13 = arith.constant dense<0.000000e+00> : vector<256x16xf32>
    %11 = tpu.matmul %8, %10, %cst_13 {dimension_numbers = #tpu.dot_dimension_numbers<[1], [0], [0], [1], [0, 0, 1, 1], [], []>} : vector<256x3xbf16>, vector<3x16xbf16>, vector<256x16xf32> -> vector<256x16xf32>
    %12 = arith.addf %5, %11 : vector<256x16xf32>
    %c0_14 = arith.constant 0 : index
    %c8_15 = arith.constant 8 : index
    %c0_16 = arith.constant 0 : index
    %13 = vector.load %arg16[%c0_14, %c8_15, %c0_16] : memref<18x25x3xf32, #tpu.memory_space<vmem>>, vector<16x16x3xf32>
    %14 = vector.shape_cast %13 : vector<16x16x3xf32> to vector<256x3xf32>
    %15 = arith.truncf %14 : vector<256x3xf32> to vector<256x3xbf16>
    %c1_17 = arith.constant 1 : index
    %c0_18 = arith.constant 0 : index
    %c0_19 = arith.constant 0 : index
    %16 = vector.load %arg2[%c1_17, %c0_18, %c0_19] : memref<9x3x16xbf16, #tpu.memory_space<vmem>>, vector<1x3x16xbf16>
    %17 = vector.shape_cast %16 : vector<1x3x16xbf16> to vector<3x16xbf16>
    %cst_20 = arith.constant dense<0.000000e+00> : vector<256x16xf32>
    %18 = tpu.matmul %15, %17, %cst_20 {dimension_numbers = #tpu.dot_dimension_numbers<[1], [0], [0], [1], [0, 0, 1, 1], [], []>} : vector<256x3xbf16>, vector<3x16xbf16>, vector<256x16xf32> -> vector<256x16xf32>
    %19 = arith.addf %12, %18 : vector<256x16xf32>
    %c0_21 = arith.constant 0 : index
    %c9 = arith.constant 9 : index
    %c0_22 = arith.constant 0 : index
    %20 = vector.load %arg16[%c0_21, %c9, %c0_22] : memref<18x25x3xf32, #tpu.memory_space<vmem>>, vector<16x16x3xf32>
    %21 = vector.shape_cast %20 : vector<16x16x3xf32> to vector<256x3xf32>
    %22 = arith.truncf %21 : vector<256x3xf32> to vector<256x3xbf16>
    %c2 = arith.constant 2 : index
    %c0_23 = arith.constant 0 : index
    %c0_24 = arith.constant 0 : index
    %23 = vector.load %arg2[%c2, %c0_23, %c0_24] : memref<9x3x16xbf16, #tpu.memory_space<vmem>>, vector<1x3x16xbf16>
    %24 = vector.shape_cast %23 : vector<1x3x16xbf16> to vector<3x16xbf16>
    %cst_25 = arith.constant dense<0.000000e+00> : vector<256x16xf32>
    %25 = tpu.matmul %22, %24, %cst_25 {dimension_numbers = #tpu.dot_dimension_numbers<[1], [0], [0], [1], [0, 0, 1, 1], [], []>} : vector<256x3xbf16>, vector<3x16xbf16>, vector<256x16xf32> -> vector<256x16xf32>
    %26 = arith.addf %19, %25 : vector<256x16xf32>
    %c1_26 = arith.constant 1 : index
    %c7_27 = arith.constant 7 : index
    %c0_28 = arith.constant 0 : index
    %27 = vector.load %arg16[%c1_26, %c7_27, %c0_28] : memref<18x25x3xf32, #tpu.memory_space<vmem>>, vector<16x16x3xf32>
    %28 = vector.shape_cast %27 : vector<16x16x3xf32> to vector<256x3xf32>
    %29 = arith.truncf %28 : vector<256x3xf32> to vector<256x3xbf16>
    %c3 = arith.constant 3 : index
    %c0_29 = arith.constant 0 : index
    %c0_30 = arith.constant 0 : index
    %30 = vector.load %arg2[%c3, %c0_29, %c0_30] : memref<9x3x16xbf16, #tpu.memory_space<vmem>>, vector<1x3x16xbf16>
    %31 = vector.shape_cast %30 : vector<1x3x16xbf16> to vector<3x16xbf16>
    %cst_31 = arith.constant dense<0.000000e+00> : vector<256x16xf32>
    %32 = tpu.matmul %29, %31, %cst_31 {dimension_numbers = #tpu.dot_dimension_numbers<[1], [0], [0], [1], [0, 0, 1, 1], [], []>} : vector<256x3xbf16>, vector<3x16xbf16>, vector<256x16xf32> -> vector<256x16xf32>
    %33 = arith.addf %26, %32 : vector<256x16xf32>
    %c1_32 = arith.constant 1 : index
    %c8_33 = arith.constant 8 : index
    %c0_34 = arith.constant 0 : index
    %34 = vector.load %arg16[%c1_32, %c8_33, %c0_34] : memref<18x25x3xf32, #tpu.memory_space<vmem>>, vector<16x16x3xf32>
    %35 = vector.shape_cast %34 : vector<16x16x3xf32> to vector<256x3xf32>
    %36 = arith.truncf %35 : vector<256x3xf32> to vector<256x3xbf16>
    %c4 = arith.constant 4 : index
    %c0_35 = arith.constant 0 : index
    %c0_36 = arith.constant 0 : index
    %37 = vector.load %arg2[%c4, %c0_35, %c0_36] : memref<9x3x16xbf16, #tpu.memory_space<vmem>>, vector<1x3x16xbf16>
    %38 = vector.shape_cast %37 : vector<1x3x16xbf16> to vector<3x16xbf16>
    %cst_37 = arith.constant dense<0.000000e+00> : vector<256x16xf32>
    %39 = tpu.matmul %36, %38, %cst_37 {dimension_numbers = #tpu.dot_dimension_numbers<[1], [0], [0], [1], [0, 0, 1, 1], [], []>} : vector<256x3xbf16>, vector<3x16xbf16>, vector<256x16xf32> -> vector<256x16xf32>
    %40 = arith.addf %33, %39 : vector<256x16xf32>
    %c1_38 = arith.constant 1 : index
    %c9_39 = arith.constant 9 : index
    %c0_40 = arith.constant 0 : index
    %41 = vector.load %arg16[%c1_38, %c9_39, %c0_40] : memref<18x25x3xf32, #tpu.memory_space<vmem>>, vector<16x16x3xf32>
    %42 = vector.shape_cast %41 : vector<16x16x3xf32> to vector<256x3xf32>
    %43 = arith.truncf %42 : vector<256x3xf32> to vector<256x3xbf16>
    %c5 = arith.constant 5 : index
    %c0_41 = arith.constant 0 : index
    %c0_42 = arith.constant 0 : index
    %44 = vector.load %arg2[%c5, %c0_41, %c0_42] : memref<9x3x16xbf16, #tpu.memory_space<vmem>>, vector<1x3x16xbf16>
    %45 = vector.shape_cast %44 : vector<1x3x16xbf16> to vector<3x16xbf16>
    %cst_43 = arith.constant dense<0.000000e+00> : vector<256x16xf32>
    %46 = tpu.matmul %43, %45, %cst_43 {dimension_numbers = #tpu.dot_dimension_numbers<[1], [0], [0], [1], [0, 0, 1, 1], [], []>} : vector<256x3xbf16>, vector<3x16xbf16>, vector<256x16xf32> -> vector<256x16xf32>
    %47 = arith.addf %40, %46 : vector<256x16xf32>
    %c2_44 = arith.constant 2 : index
    %c7_45 = arith.constant 7 : index
    %c0_46 = arith.constant 0 : index
    %48 = vector.load %arg16[%c2_44, %c7_45, %c0_46] : memref<18x25x3xf32, #tpu.memory_space<vmem>>, vector<16x16x3xf32>
    %49 = vector.shape_cast %48 : vector<16x16x3xf32> to vector<256x3xf32>
    %50 = arith.truncf %49 : vector<256x3xf32> to vector<256x3xbf16>
    %c6 = arith.constant 6 : index
    %c0_47 = arith.constant 0 : index
    %c0_48 = arith.constant 0 : index
    %51 = vector.load %arg2[%c6, %c0_47, %c0_48] : memref<9x3x16xbf16, #tpu.memory_space<vmem>>, vector<1x3x16xbf16>
    %52 = vector.shape_cast %51 : vector<1x3x16xbf16> to vector<3x16xbf16>
    %cst_49 = arith.constant dense<0.000000e+00> : vector<256x16xf32>
    %53 = tpu.matmul %50, %52, %cst_49 {dimension_numbers = #tpu.dot_dimension_numbers<[1], [0], [0], [1], [0, 0, 1, 1], [], []>} : vector<256x3xbf16>, vector<3x16xbf16>, vector<256x16xf32> -> vector<256x16xf32>
    %54 = arith.addf %47, %53 : vector<256x16xf32>
    %c2_50 = arith.constant 2 : index
    %c8_51 = arith.constant 8 : index
    %c0_52 = arith.constant 0 : index
    %55 = vector.load %arg16[%c2_50, %c8_51, %c0_52] : memref<18x25x3xf32, #tpu.memory_space<vmem>>, vector<16x16x3xf32>
    %56 = vector.shape_cast %55 : vector<16x16x3xf32> to vector<256x3xf32>
    %57 = arith.truncf %56 : vector<256x3xf32> to vector<256x3xbf16>
    %c7_53 = arith.constant 7 : index
    %c0_54 = arith.constant 0 : index
    %c0_55 = arith.constant 0 : index
    %58 = vector.load %arg2[%c7_53, %c0_54, %c0_55] : memref<9x3x16xbf16, #tpu.memory_space<vmem>>, vector<1x3x16xbf16>
    %59 = vector.shape_cast %58 : vector<1x3x16xbf16> to vector<3x16xbf16>
    %cst_56 = arith.constant dense<0.000000e+00> : vector<256x16xf32>
    %60 = tpu.matmul %57, %59, %cst_56 {dimension_numbers = #tpu.dot_dimension_numbers<[1], [0], [0], [1], [0, 0, 1, 1], [], []>} : vector<256x3xbf16>, vector<3x16xbf16>, vector<256x16xf32> -> vector<256x16xf32>
    %61 = arith.addf %54, %60 : vector<256x16xf32>
    %c2_57 = arith.constant 2 : index
    %c9_58 = arith.constant 9 : index
    %c0_59 = arith.constant 0 : index
    %62 = vector.load %arg16[%c2_57, %c9_58, %c0_59] : memref<18x25x3xf32, #tpu.memory_space<vmem>>, vector<16x16x3xf32>
    %63 = vector.shape_cast %62 : vector<16x16x3xf32> to vector<256x3xf32>
    %64 = arith.truncf %63 : vector<256x3xf32> to vector<256x3xbf16>
    %c8_60 = arith.constant 8 : index
    %c0_61 = arith.constant 0 : index
    %c0_62 = arith.constant 0 : index
    %65 = vector.load %arg2[%c8_60, %c0_61, %c0_62] : memref<9x3x16xbf16, #tpu.memory_space<vmem>>, vector<1x3x16xbf16>
    %66 = vector.shape_cast %65 : vector<1x3x16xbf16> to vector<3x16xbf16>
    %cst_63 = arith.constant dense<0.000000e+00> : vector<256x16xf32>
    %67 = tpu.matmul %64, %66, %cst_63 {dimension_numbers = #tpu.dot_dimension_numbers<[1], [0], [0], [1], [0, 0, 1, 1], [], []>} : vector<256x3xbf16>, vector<3x16xbf16>, vector<256x16xf32> -> vector<256x16xf32>
    %68 = arith.addf %61, %67 : vector<256x16xf32>
    %c0_64 = arith.constant 0 : index
    %c0_65 = arith.constant 0 : index
    %69 = vector.load %arg3[%c0_64, %c0_65] : memref<1x16xf32, #tpu.memory_space<vmem>>, vector<1x16xf32>
    %70 = vector.broadcast %69 : vector<1x16xf32> to vector<256x16xf32>
    %71 = arith.mulf %68, %70 : vector<256x16xf32>
    %c0_66 = arith.constant 0 : index
    %c0_67 = arith.constant 0 : index
    %72 = vector.load %arg4[%c0_66, %c0_67] : memref<1x16xf32, #tpu.memory_space<vmem>>, vector<1x16xf32>
    %73 = vector.broadcast %72 : vector<1x16xf32> to vector<256x16xf32>
    %74 = arith.addf %71, %73 : vector<256x16xf32>
    %cst_68 = arith.constant 0.000000e+00 : f32
    %75 = vector.broadcast %cst_68 : f32 to vector<256x16xf32>
    %76 = arith.maximumf %74, %75 : vector<256x16xf32>
    %77 = vector.shape_cast %76 : vector<256x16xf32> to vector<8x32x16xf32>
    %c0_69 = arith.constant 0 : index
    %c0_70 = arith.constant 0 : index
    %c0_71 = arith.constant 0 : index
    %78 = vector.load %arg19[%c0_69, %c0_70, %c0_71] : memref<8x32x16xf32, #tpu.memory_space<vmem>>, vector<8x32x16xf32>
    tpu.vector_store %arg19[%c0_69, %c0_70, %c0_71], %77 {strides = array<i32>} : memref<8x32x16xf32, #tpu.memory_space<vmem>>, vector<8x32x16xf32>,
    %c0_72 = arith.constant 0 : index
    %c0_73 = arith.constant 0 : index
    %c0_74 = arith.constant 0 : index
    %79 = vector.load %arg19[%c0_72, %c0_73, %c0_74] : memref<8x32x16xf32, #tpu.memory_space<vmem>>, vector<8x16x16xf32>
    %c0_75 = arith.constant 0 : index
    %c16 = arith.constant 16 : index
    %c0_76 = arith.constant 0 : index
    %80 = vector.load %arg19[%c0_75, %c16, %c0_76] : memref<8x32x16xf32, #tpu.memory_space<vmem>>, vector<8x16x16xf32>
    %81 = arith.maximumf %79, %80 : vector<8x16x16xf32>
    %c0_77 = arith.constant 0 : index
    %c0_78 = arith.constant 0 : index
    %c0_79 = arith.constant 0 : index
    %82 = vector.load %arg19[%c0_77, %c0_78, %c0_79] : memref<8x32x16xf32, #tpu.memory_space<vmem>>, vector<8x16x16xf32>
    tpu.vector_store %arg19[%c0_77, %c0_78, %c0_79], %81 {strides = array<i32>} : memref<8x32x16xf32, #tpu.memory_space<vmem>>, vector<8x16x16xf32>,
    %c0_80 = arith.constant 0 : index
    %c0_81 = arith.constant 0 : index
    %c0_82 = arith.constant 0 : index
    %83 = tpu.strided_load %arg19[%c0_80, %c0_81, %c0_82] {strides = array<i32: 1, 2, 1>} : memref<8x32x16xf32, #tpu.memory_space<vmem>>, vector<8x8x16xf32>
    %c0_83 = arith.constant 0 : index
    %c1_84 = arith.constant 1 : index
    %c0_85 = arith.constant 0 : index
    %84 = tpu.strided_load %arg19[%c0_83, %c1_84, %c0_85] {strides = array<i32: 1, 2, 1>} : memref<8x32x16xf32, #tpu.memory_space<vmem>>, vector<8x8x16xf32>
    %85 = arith.maximumf %83, %84 : vector<8x8x16xf32>
    %cst_86 = arith.constant 0.000000e+00 : f32
    %86 = vector.broadcast %cst_86 : f32 to vector<10x17x16xf32>
    %c0_87 = arith.constant 0 : index
    %c0_88 = arith.constant 0 : index
    %c0_89 = arith.constant 0 : index
    %87 = vector.load %arg17[%c0_87, %c0_88, %c0_89] : memref<10x17x16xf32, #tpu.memory_space<vmem>>, vector<10x17x16xf32>
    tpu.vector_store %arg17[%c0_87, %c0_88, %c0_89], %86 {strides = array<i32>} : memref<10x17x16xf32, #tpu.memory_space<vmem>>, vector<10x17x16xf32>,
    %c1_90 = arith.constant 1 : index
    %c8_91 = arith.constant 8 : index
    %c0_92 = arith.constant 0 : index
    %88 = vector.load %arg17[%c1_90, %c8_91, %c0_92] : memref<10x17x16xf32, #tpu.memory_space<vmem>>, vector<8x8x16xf32>
    tpu.vector_store %arg17[%c1_90, %c8_91, %c0_92], %85 {strides = array<i32>} : memref<10x17x16xf32, #tpu.memory_space<vmem>>, vector<8x8x16xf32>,
    %cst_93 = arith.constant 0.000000e+00 : f32
    %89 = vector.broadcast %cst_93 : f32 to vector<64x32xf32>
    %c0_94 = arith.constant 0 : index
    %c7_95 = arith.constant 7 : index
    %c0_96 = arith.constant 0 : index
    %90 = vector.load %arg17[%c0_94, %c7_95, %c0_96] : memref<10x17x16xf32, #tpu.memory_space<vmem>>, vector<8x8x16xf32>
    %91 = vector.shape_cast %90 : vector<8x8x16xf32> to vector<64x16xf32>
    %92 = arith.truncf %91 : vector<64x16xf32> to vector<64x16xbf16>
    %c0_97 = arith.constant 0 : index
    %c0_98 = arith.constant 0 : index
    %c0_99 = arith.constant 0 : index
    %93 = vector.load %arg5[%c0_97, %c0_98, %c0_99] : memref<9x16x32xbf16, #tpu.memory_space<vmem>>, vector<1x16x32xbf16>
    %94 = vector.shape_cast %93 : vector<1x16x32xbf16> to vector<16x32xbf16>
    %cst_100 = arith.constant dense<0.000000e+00> : vector<64x32xf32>
    %95 = tpu.matmul %92, %94, %cst_100 {dimension_numbers = #tpu.dot_dimension_numbers<[1], [0], [0], [1], [0, 0, 1, 1], [], []>} : vector<64x16xbf16>, vector<16x32xbf16>, vector<64x32xf32> -> vector<64x32xf32>
    %96 = arith.addf %89, %95 : vector<64x32xf32>
    %c0_101 = arith.constant 0 : index
    %c8_102 = arith.constant 8 : index
    %c0_103 = arith.constant 0 : index
    %97 = vector.load %arg17[%c0_101, %c8_102, %c0_103] : memref<10x17x16xf32, #tpu.memory_space<vmem>>, vector<8x8x16xf32>
    %98 = vector.shape_cast %97 : vector<8x8x16xf32> to vector<64x16xf32>
    %99 = arith.truncf %98 : vector<64x16xf32> to vector<64x16xbf16>
    %c1_104 = arith.constant 1 : index
    %c0_105 = arith.constant 0 : index
    %c0_106 = arith.constant 0 : index
    %100 = vector.load %arg5[%c1_104, %c0_105, %c0_106] : memref<9x16x32xbf16, #tpu.memory_space<vmem>>, vector<1x16x32xbf16>
    %101 = vector.shape_cast %100 : vector<1x16x32xbf16> to vector<16x32xbf16>
    %cst_107 = arith.constant dense<0.000000e+00> : vector<64x32xf32>
    %102 = tpu.matmul %99, %101, %cst_107 {dimension_numbers = #tpu.dot_dimension_numbers<[1], [0], [0], [1], [0, 0, 1, 1], [], []>} : vector<64x16xbf16>, vector<16x32xbf16>, vector<64x32xf32> -> vector<64x32xf32>
    %103 = arith.addf %96, %102 : vector<64x32xf32>
    %c0_108 = arith.constant 0 : index
    %c9_109 = arith.constant 9 : index
    %c0_110 = arith.constant 0 : index
    %104 = vector.load %arg17[%c0_108, %c9_109, %c0_110] : memref<10x17x16xf32, #tpu.memory_space<vmem>>, vector<8x8x16xf32>
    %105 = vector.shape_cast %104 : vector<8x8x16xf32> to vector<64x16xf32>
    %106 = arith.truncf %105 : vector<64x16xf32> to vector<64x16xbf16>
    %c2_111 = arith.constant 2 : index
    %c0_112 = arith.constant 0 : index
    %c0_113 = arith.constant 0 : index
    %107 = vector.load %arg5[%c2_111, %c0_112, %c0_113] : memref<9x16x32xbf16, #tpu.memory_space<vmem>>, vector<1x16x32xbf16>
    %108 = vector.shape_cast %107 : vector<1x16x32xbf16> to vector<16x32xbf16>
    %cst_114 = arith.constant dense<0.000000e+00> : vector<64x32xf32>
    %109 = tpu.matmul %106, %108, %cst_114 {dimension_numbers = #tpu.dot_dimension_numbers<[1], [0], [0], [1], [0, 0, 1, 1], [], []>} : vector<64x16xbf16>, vector<16x32xbf16>, vector<64x32xf32> -> vector<64x32xf32>
    %110 = arith.addf %103, %109 : vector<64x32xf32>
    %c1_115 = arith.constant 1 : index
    %c7_116 = arith.constant 7 : index
    %c0_117 = arith.constant 0 : index
    %111 = vector.load %arg17[%c1_115, %c7_116, %c0_117] : memref<10x17x16xf32, #tpu.memory_space<vmem>>, vector<8x8x16xf32>
    %112 = vector.shape_cast %111 : vector<8x8x16xf32> to vector<64x16xf32>
    %113 = arith.truncf %112 : vector<64x16xf32> to vector<64x16xbf16>
    %c3_118 = arith.constant 3 : index
    %c0_119 = arith.constant 0 : index
    %c0_120 = arith.constant 0 : index
    %114 = vector.load %arg5[%c3_118, %c0_119, %c0_120] : memref<9x16x32xbf16, #tpu.memory_space<vmem>>, vector<1x16x32xbf16>
    %115 = vector.shape_cast %114 : vector<1x16x32xbf16> to vector<16x32xbf16>
    %cst_121 = arith.constant dense<0.000000e+00> : vector<64x32xf32>
    %116 = tpu.matmul %113, %115, %cst_121 {dimension_numbers = #tpu.dot_dimension_numbers<[1], [0], [0], [1], [0, 0, 1, 1], [], []>} : vector<64x16xbf16>, vector<16x32xbf16>, vector<64x32xf32> -> vector<64x32xf32>
    %117 = arith.addf %110, %116 : vector<64x32xf32>
    %c1_122 = arith.constant 1 : index
    %c8_123 = arith.constant 8 : index
    %c0_124 = arith.constant 0 : index
    %118 = vector.load %arg17[%c1_122, %c8_123, %c0_124] : memref<10x17x16xf32, #tpu.memory_space<vmem>>, vector<8x8x16xf32>
    %119 = vector.shape_cast %118 : vector<8x8x16xf32> to vector<64x16xf32>
    %120 = arith.truncf %119 : vector<64x16xf32> to vector<64x16xbf16>
    %c4_125 = arith.constant 4 : index
    %c0_126 = arith.constant 0 : index
    %c0_127 = arith.constant 0 : index
    %121 = vector.load %arg5[%c4_125, %c0_126, %c0_127] : memref<9x16x32xbf16, #tpu.memory_space<vmem>>, vector<1x16x32xbf16>
    %122 = vector.shape_cast %121 : vector<1x16x32xbf16> to vector<16x32xbf16>
    %cst_128 = arith.constant dense<0.000000e+00> : vector<64x32xf32>
    %123 = tpu.matmul %120, %122, %cst_128 {dimension_numbers = #tpu.dot_dimension_numbers<[1], [0], [0], [1], [0, 0, 1, 1], [], []>} : vector<64x16xbf16>, vector<16x32xbf16>, vector<64x32xf32> -> vector<64x32xf32>
    %124 = arith.addf %117, %123 : vector<64x32xf32>
    %c1_129 = arith.constant 1 : index
    %c9_130 = arith.constant 9 : index
    %c0_131 = arith.constant 0 : index
    %125 = vector.load %arg17[%c1_129, %c9_130, %c0_131] : memref<10x17x16xf32, #tpu.memory_space<vmem>>, vector<8x8x16xf32>
    %126 = vector.shape_cast %125 : vector<8x8x16xf32> to vector<64x16xf32>
    %127 = arith.truncf %126 : vector<64x16xf32> to vector<64x16xbf16>
    %c5_132 = arith.constant 5 : index
    %c0_133 = arith.constant 0 : index
    %c0_134 = arith.constant 0 : index
    %128 = vector.load %arg5[%c5_132, %c0_133, %c0_134] : memref<9x16x32xbf16, #tpu.memory_space<vmem>>, vector<1x16x32xbf16>
    %129 = vector.shape_cast %128 : vector<1x16x32xbf16> to vector<16x32xbf16>
    %cst_135 = arith.constant dense<0.000000e+00> : vector<64x32xf32>
    %130 = tpu.matmul %127, %129, %cst_135 {dimension_numbers = #tpu.dot_dimension_numbers<[1], [0], [0], [1], [0, 0, 1, 1], [], []>} : vector<64x16xbf16>, vector<16x32xbf16>, vector<64x32xf32> -> vector<64x32xf32>
    %131 = arith.addf %124, %130 : vector<64x32xf32>
    %c2_136 = arith.constant 2 : index
    %c7_137 = arith.constant 7 : index
    %c0_138 = arith.constant 0 : index
    %132 = vector.load %arg17[%c2_136, %c7_137, %c0_138] : memref<10x17x16xf32, #tpu.memory_space<vmem>>, vector<8x8x16xf32>
    %133 = vector.shape_cast %132 : vector<8x8x16xf32> to vector<64x16xf32>
    %134 = arith.truncf %133 : vector<64x16xf32> to vector<64x16xbf16>
    %c6_139 = arith.constant 6 : index
    %c0_140 = arith.constant 0 : index
    %c0_141 = arith.constant 0 : index
    %135 = vector.load %arg5[%c6_139, %c0_140, %c0_141] : memref<9x16x32xbf16, #tpu.memory_space<vmem>>, vector<1x16x32xbf16>
    %136 = vector.shape_cast %135 : vector<1x16x32xbf16> to vector<16x32xbf16>
    %cst_142 = arith.constant dense<0.000000e+00> : vector<64x32xf32>
    %137 = tpu.matmul %134, %136, %cst_142 {dimension_numbers = #tpu.dot_dimension_numbers<[1], [0], [0], [1], [0, 0, 1, 1], [], []>} : vector<64x16xbf16>, vector<16x32xbf16>, vector<64x32xf32> -> vector<64x32xf32>
    %138 = arith.addf %131, %137 : vector<64x32xf32>
    %c2_143 = arith.constant 2 : index
    %c8_144 = arith.constant 8 : index
    %c0_145 = arith.constant 0 : index
    %139 = vector.load %arg17[%c2_143, %c8_144, %c0_145] : memref<10x17x16xf32, #tpu.memory_space<vmem>>, vector<8x8x16xf32>
    %140 = vector.shape_cast %139 : vector<8x8x16xf32> to vector<64x16xf32>
    %141 = arith.truncf %140 : vector<64x16xf32> to vector<64x16xbf16>
    %c7_146 = arith.constant 7 : index
    %c0_147 = arith.constant 0 : index
    %c0_148 = arith.constant 0 : index
    %142 = vector.load %arg5[%c7_146, %c0_147, %c0_148] : memref<9x16x32xbf16, #tpu.memory_space<vmem>>, vector<1x16x32xbf16>
    %143 = vector.shape_cast %142 : vector<1x16x32xbf16> to vector<16x32xbf16>
    %cst_149 = arith.constant dense<0.000000e+00> : vector<64x32xf32>
    %144 = tpu.matmul %141, %143, %cst_149 {dimension_numbers = #tpu.dot_dimension_numbers<[1], [0], [0], [1], [0, 0, 1, 1], [], []>} : vector<64x16xbf16>, vector<16x32xbf16>, vector<64x32xf32> -> vector<64x32xf32>
    %145 = arith.addf %138, %144 : vector<64x32xf32>
    %c2_150 = arith.constant 2 : index
    %c9_151 = arith.constant 9 : index
    %c0_152 = arith.constant 0 : index
    %146 = vector.load %arg17[%c2_150, %c9_151, %c0_152] : memref<10x17x16xf32, #tpu.memory_space<vmem>>, vector<8x8x16xf32>
    %147 = vector.shape_cast %146 : vector<8x8x16xf32> to vector<64x16xf32>
    %148 = arith.truncf %147 : vector<64x16xf32> to vector<64x16xbf16>
    %c8_153 = arith.constant 8 : index
    %c0_154 = arith.constant 0 : index
    %c0_155 = arith.constant 0 : index
    %149 = vector.load %arg5[%c8_153, %c0_154, %c0_155] : memref<9x16x32xbf16, #tpu.memory_space<vmem>>, vector<1x16x32xbf16>
    %150 = vector.shape_cast %149 : vector<1x16x32xbf16> to vector<16x32xbf16>
    %cst_156 = arith.constant dense<0.000000e+00> : vector<64x32xf32>
    %151 = tpu.matmul %148, %150, %cst_156 {dimension_numbers = #tpu.dot_dimension_numbers<[1], [0], [0], [1], [0, 0, 1, 1], [], []>} : vector<64x16xbf16>, vector<16x32xbf16>, vector<64x32xf32> -> vector<64x32xf32>
    %152 = arith.addf %145, %151 : vector<64x32xf32>
    %c0_157 = arith.constant 0 : index
    %c0_158 = arith.constant 0 : index
    %153 = vector.load %arg6[%c0_157, %c0_158] : memref<1x32xf32, #tpu.memory_space<vmem>>, vector<1x32xf32>
    %154 = vector.broadcast %153 : vector<1x32xf32> to vector<64x32xf32>
    %155 = arith.mulf %152, %154 : vector<64x32xf32>
    %c0_159 = arith.constant 0 : index
    %c0_160 = arith.constant 0 : index
    %156 = vector.load %arg7[%c0_159, %c0_160] : memref<1x32xf32, #tpu.memory_space<vmem>>, vector<1x32xf32>
    %157 = vector.broadcast %156 : vector<1x32xf32> to vector<64x32xf32>
    %158 = arith.addf %155, %157 : vector<64x32xf32>
    %cst_161 = arith.constant 0.000000e+00 : f32
    %159 = vector.broadcast %cst_161 : f32 to vector<64x32xf32>
    %160 = arith.maximumf %158, %159 : vector<64x32xf32>
    %161 = vector.shape_cast %160 : vector<64x32xf32> to vector<4x16x32xf32>
    %c0_162 = arith.constant 0 : index
    %c0_163 = arith.constant 0 : index
    %c0_164 = arith.constant 0 : index
    %162 = vector.load %arg20[%c0_162, %c0_163, %c0_164] : memref<4x16x32xf32, #tpu.memory_space<vmem>>, vector<4x16x32xf32>
    tpu.vector_store %arg20[%c0_162, %c0_163, %c0_164], %161 {strides = array<i32>} : memref<4x16x32xf32, #tpu.memory_space<vmem>>, vector<4x16x32xf32>,
    %c0_165 = arith.constant 0 : index
    %c0_166 = arith.constant 0 : index
    %c0_167 = arith.constant 0 : index
    %163 = vector.load %arg20[%c0_165, %c0_166, %c0_167] : memref<4x16x32xf32, #tpu.memory_space<vmem>>, vector<4x8x32xf32>
    %c0_168 = arith.constant 0 : index
    %c8_169 = arith.constant 8 : index
    %c0_170 = arith.constant 0 : index
    %164 = vector.load %arg20[%c0_168, %c8_169, %c0_170] : memref<4x16x32xf32, #tpu.memory_space<vmem>>, vector<4x8x32xf32>
    %165 = arith.maximumf %163, %164 : vector<4x8x32xf32>
    %c0_171 = arith.constant 0 : index
    %c0_172 = arith.constant 0 : index
    %c0_173 = arith.constant 0 : index
    %166 = vector.load %arg20[%c0_171, %c0_172, %c0_173] : memref<4x16x32xf32, #tpu.memory_space<vmem>>, vector<4x8x32xf32>
    tpu.vector_store %arg20[%c0_171, %c0_172, %c0_173], %165 {strides = array<i32>} : memref<4x16x32xf32, #tpu.memory_space<vmem>>, vector<4x8x32xf32>,
    %c0_174 = arith.constant 0 : index
    %c0_175 = arith.constant 0 : index
    %c0_176 = arith.constant 0 : index
    %167 = tpu.strided_load %arg20[%c0_174, %c0_175, %c0_176] {strides = array<i32: 1, 2, 1>} : memref<4x16x32xf32, #tpu.memory_space<vmem>>, vector<4x4x32xf32>
    %c0_177 = arith.constant 0 : index
    %c1_178 = arith.constant 1 : index
    %c0_179 = arith.constant 0 : index
    %168 = tpu.strided_load %arg20[%c0_177, %c1_178, %c0_179] {strides = array<i32: 1, 2, 1>} : memref<4x16x32xf32, #tpu.memory_space<vmem>>, vector<4x4x32xf32>
    %169 = arith.maximumf %167, %168 : vector<4x4x32xf32>
    %cst_180 = arith.constant 0.000000e+00 : f32
    %170 = vector.broadcast %cst_180 : f32 to vector<6x17x32xf32>
    %c0_181 = arith.constant 0 : index
    %c0_182 = arith.constant 0 : index
    %c0_183 = arith.constant 0 : index
    %171 = vector.load %arg18[%c0_181, %c0_182, %c0_183] : memref<6x17x32xf32, #tpu.memory_space<vmem>>, vector<6x17x32xf32>
    tpu.vector_store %arg18[%c0_181, %c0_182, %c0_183], %170 {strides = array<i32>} : memref<6x17x32xf32, #tpu.memory_space<vmem>>, vector<6x17x32xf32>,
    %c1_184 = arith.constant 1 : index
    %c8_185 = arith.constant 8 : index
    %c0_186 = arith.constant 0 : index
    %172 = vector.load %arg18[%c1_184, %c8_185, %c0_186] : memref<6x17x32xf32, #tpu.memory_space<vmem>>, vector<4x4x32xf32>
    tpu.vector_store %arg18[%c1_184, %c8_185, %c0_186], %169 {strides = array<i32>} : memref<6x17x32xf32, #tpu.memory_space<vmem>>, vector<4x4x32xf32>,
    %cst_187 = arith.constant 0.000000e+00 : f32
    %173 = vector.broadcast %cst_187 : f32 to vector<32x64xf32>
    %c0_188 = arith.constant 0 : index
    %c7_189 = arith.constant 7 : index
    %c0_190 = arith.constant 0 : index
    %174 = vector.load %arg18[%c0_188, %c7_189, %c0_190] : memref<6x17x32xf32, #tpu.memory_space<vmem>>, vector<4x8x32xf32>
    %175 = vector.shape_cast %174 : vector<4x8x32xf32> to vector<32x32xf32>
    %176 = arith.truncf %175 : vector<32x32xf32> to vector<32x32xbf16>
    %c0_191 = arith.constant 0 : index
    %c0_192 = arith.constant 0 : index
    %c0_193 = arith.constant 0 : index
    %177 = vector.load %arg8[%c0_191, %c0_192, %c0_193] : memref<9x32x64xbf16, #tpu.memory_space<vmem>>, vector<1x32x64xbf16>
    %178 = vector.shape_cast %177 : vector<1x32x64xbf16> to vector<32x64xbf16>
    %cst_194 = arith.constant dense<0.000000e+00> : vector<32x64xf32>
    %179 = tpu.matmul %176, %178, %cst_194 {dimension_numbers = #tpu.dot_dimension_numbers<[1], [0], [0], [1], [0, 0, 1, 1], [], []>} : vector<32x32xbf16>, vector<32x64xbf16>, vector<32x64xf32> -> vector<32x64xf32>
    %180 = arith.addf %173, %179 : vector<32x64xf32>
    %c0_195 = arith.constant 0 : index
    %c8_196 = arith.constant 8 : index
    %c0_197 = arith.constant 0 : index
    %181 = vector.load %arg18[%c0_195, %c8_196, %c0_197] : memref<6x17x32xf32, #tpu.memory_space<vmem>>, vector<4x8x32xf32>
    %182 = vector.shape_cast %181 : vector<4x8x32xf32> to vector<32x32xf32>
    %183 = arith.truncf %182 : vector<32x32xf32> to vector<32x32xbf16>
    %c1_198 = arith.constant 1 : index
    %c0_199 = arith.constant 0 : index
    %c0_200 = arith.constant 0 : index
    %184 = vector.load %arg8[%c1_198, %c0_199, %c0_200] : memref<9x32x64xbf16, #tpu.memory_space<vmem>>, vector<1x32x64xbf16>
    %185 = vector.shape_cast %184 : vector<1x32x64xbf16> to vector<32x64xbf16>
    %cst_201 = arith.constant dense<0.000000e+00> : vector<32x64xf32>
    %186 = tpu.matmul %183, %185, %cst_201 {dimension_numbers = #tpu.dot_dimension_numbers<[1], [0], [0], [1], [0, 0, 1, 1], [], []>} : vector<32x32xbf16>, vector<32x64xbf16>, vector<32x64xf32> -> vector<32x64xf32>
    %187 = arith.addf %180, %186 : vector<32x64xf32>
    %c0_202 = arith.constant 0 : index
    %c9_203 = arith.constant 9 : index
    %c0_204 = arith.constant 0 : index
    %188 = vector.load %arg18[%c0_202, %c9_203, %c0_204] : memref<6x17x32xf32, #tpu.memory_space<vmem>>, vector<4x8x32xf32>
    %189 = vector.shape_cast %188 : vector<4x8x32xf32> to vector<32x32xf32>
    %190 = arith.truncf %189 : vector<32x32xf32> to vector<32x32xbf16>
    %c2_205 = arith.constant 2 : index
    %c0_206 = arith.constant 0 : index
    %c0_207 = arith.constant 0 : index
    %191 = vector.load %arg8[%c2_205, %c0_206, %c0_207] : memref<9x32x64xbf16, #tpu.memory_space<vmem>>, vector<1x32x64xbf16>
    %192 = vector.shape_cast %191 : vector<1x32x64xbf16> to vector<32x64xbf16>
    %cst_208 = arith.constant dense<0.000000e+00> : vector<32x64xf32>
    %193 = tpu.matmul %190, %192, %cst_208 {dimension_numbers = #tpu.dot_dimension_numbers<[1], [0], [0], [1], [0, 0, 1, 1], [], []>} : vector<32x32xbf16>, vector<32x64xbf16>, vector<32x64xf32> -> vector<32x64xf32>
    %194 = arith.addf %187, %193 : vector<32x64xf32>
    %c1_209 = arith.constant 1 : index
    %c7_210 = arith.constant 7 : index
    %c0_211 = arith.constant 0 : index
    %195 = vector.load %arg18[%c1_209, %c7_210, %c0_211] : memref<6x17x32xf32, #tpu.memory_space<vmem>>, vector<4x8x32xf32>
    %196 = vector.shape_cast %195 : vector<4x8x32xf32> to vector<32x32xf32>
    %197 = arith.truncf %196 : vector<32x32xf32> to vector<32x32xbf16>
    %c3_212 = arith.constant 3 : index
    %c0_213 = arith.constant 0 : index
    %c0_214 = arith.constant 0 : index
    %198 = vector.load %arg8[%c3_212, %c0_213, %c0_214] : memref<9x32x64xbf16, #tpu.memory_space<vmem>>, vector<1x32x64xbf16>
    %199 = vector.shape_cast %198 : vector<1x32x64xbf16> to vector<32x64xbf16>
    %cst_215 = arith.constant dense<0.000000e+00> : vector<32x64xf32>
    %200 = tpu.matmul %197, %199, %cst_215 {dimension_numbers = #tpu.dot_dimension_numbers<[1], [0], [0], [1], [0, 0, 1, 1], [], []>} : vector<32x32xbf16>, vector<32x64xbf16>, vector<32x64xf32> -> vector<32x64xf32>
    %201 = arith.addf %194, %200 : vector<32x64xf32>
    %c1_216 = arith.constant 1 : index
    %c8_217 = arith.constant 8 : index
    %c0_218 = arith.constant 0 : index
    %202 = vector.load %arg18[%c1_216, %c8_217, %c0_218] : memref<6x17x32xf32, #tpu.memory_space<vmem>>, vector<4x8x32xf32>
    %203 = vector.shape_cast %202 : vector<4x8x32xf32> to vector<32x32xf32>
    %204 = arith.truncf %203 : vector<32x32xf32> to vector<32x32xbf16>
    %c4_219 = arith.constant 4 : index
    %c0_220 = arith.constant 0 : index
    %c0_221 = arith.constant 0 : index
    %205 = vector.load %arg8[%c4_219, %c0_220, %c0_221] : memref<9x32x64xbf16, #tpu.memory_space<vmem>>, vector<1x32x64xbf16>
    %206 = vector.shape_cast %205 : vector<1x32x64xbf16> to vector<32x64xbf16>
    %cst_222 = arith.constant dense<0.000000e+00> : vector<32x64xf32>
    %207 = tpu.matmul %204, %206, %cst_222 {dimension_numbers = #tpu.dot_dimension_numbers<[1], [0], [0], [1], [0, 0, 1, 1], [], []>} : vector<32x32xbf16>, vector<32x64xbf16>, vector<32x64xf32> -> vector<32x64xf32>
    %208 = arith.addf %201, %207 : vector<32x64xf32>
    %c1_223 = arith.constant 1 : index
    %c9_224 = arith.constant 9 : index
    %c0_225 = arith.constant 0 : index
    %209 = vector.load %arg18[%c1_223, %c9_224, %c0_225] : memref<6x17x32xf32, #tpu.memory_space<vmem>>, vector<4x8x32xf32>
    %210 = vector.shape_cast %209 : vector<4x8x32xf32> to vector<32x32xf32>
    %211 = arith.truncf %210 : vector<32x32xf32> to vector<32x32xbf16>
    %c5_226 = arith.constant 5 : index
    %c0_227 = arith.constant 0 : index
    %c0_228 = arith.constant 0 : index
    %212 = vector.load %arg8[%c5_226, %c0_227, %c0_228] : memref<9x32x64xbf16, #tpu.memory_space<vmem>>, vector<1x32x64xbf16>
    %213 = vector.shape_cast %212 : vector<1x32x64xbf16> to vector<32x64xbf16>
    %cst_229 = arith.constant dense<0.000000e+00> : vector<32x64xf32>
    %214 = tpu.matmul %211, %213, %cst_229 {dimension_numbers = #tpu.dot_dimension_numbers<[1], [0], [0], [1], [0, 0, 1, 1], [], []>} : vector<32x32xbf16>, vector<32x64xbf16>, vector<32x64xf32> -> vector<32x64xf32>
    %215 = arith.addf %208, %214 : vector<32x64xf32>
    %c2_230 = arith.constant 2 : index
    %c7_231 = arith.constant 7 : index
    %c0_232 = arith.constant 0 : index
    %216 = vector.load %arg18[%c2_230, %c7_231, %c0_232] : memref<6x17x32xf32, #tpu.memory_space<vmem>>, vector<4x8x32xf32>
    %217 = vector.shape_cast %216 : vector<4x8x32xf32> to vector<32x32xf32>
    %218 = arith.truncf %217 : vector<32x32xf32> to vector<32x32xbf16>
    %c6_233 = arith.constant 6 : index
    %c0_234 = arith.constant 0 : index
    %c0_235 = arith.constant 0 : index
    %219 = vector.load %arg8[%c6_233, %c0_234, %c0_235] : memref<9x32x64xbf16, #tpu.memory_space<vmem>>, vector<1x32x64xbf16>
    %220 = vector.shape_cast %219 : vector<1x32x64xbf16> to vector<32x64xbf16>
    %cst_236 = arith.constant dense<0.000000e+00> : vector<32x64xf32>
    %221 = tpu.matmul %218, %220, %cst_236 {dimension_numbers = #tpu.dot_dimension_numbers<[1], [0], [0], [1], [0, 0, 1, 1], [], []>} : vector<32x32xbf16>, vector<32x64xbf16>, vector<32x64xf32> -> vector<32x64xf32>
    %222 = arith.addf %215, %221 : vector<32x64xf32>
    %c2_237 = arith.constant 2 : index
    %c8_238 = arith.constant 8 : index
    %c0_239 = arith.constant 0 : index
    %223 = vector.load %arg18[%c2_237, %c8_238, %c0_239] : memref<6x17x32xf32, #tpu.memory_space<vmem>>, vector<4x8x32xf32>
    %224 = vector.shape_cast %223 : vector<4x8x32xf32> to vector<32x32xf32>
    %225 = arith.truncf %224 : vector<32x32xf32> to vector<32x32xbf16>
    %c7_240 = arith.constant 7 : index
    %c0_241 = arith.constant 0 : index
    %c0_242 = arith.constant 0 : index
    %226 = vector.load %arg8[%c7_240, %c0_241, %c0_242] : memref<9x32x64xbf16, #tpu.memory_space<vmem>>, vector<1x32x64xbf16>
    %227 = vector.shape_cast %226 : vector<1x32x64xbf16> to vector<32x64xbf16>
    %cst_243 = arith.constant dense<0.000000e+00> : vector<32x64xf32>
    %228 = tpu.matmul %225, %227, %cst_243 {dimension_numbers = #tpu.dot_dimension_numbers<[1], [0], [0], [1], [0, 0, 1, 1], [], []>} : vector<32x32xbf16>, vector<32x64xbf16>, vector<32x64xf32> -> vector<32x64xf32>
    %229 = arith.addf %222, %228 : vector<32x64xf32>
    %c2_244 = arith.constant 2 : index
    %c9_245 = arith.constant 9 : index
    %c0_246 = arith.constant 0 : index
    %230 = vector.load %arg18[%c2_244, %c9_245, %c0_246] : memref<6x17x32xf32, #tpu.memory_space<vmem>>, vector<4x8x32xf32>
    %231 = vector.shape_cast %230 : vector<4x8x32xf32> to vector<32x32xf32>
    %232 = arith.truncf %231 : vector<32x32xf32> to vector<32x32xbf16>
    %c8_247 = arith.constant 8 : index
    %c0_248 = arith.constant 0 : index
    %c0_249 = arith.constant 0 : index
    %233 = vector.load %arg8[%c8_247, %c0_248, %c0_249] : memref<9x32x64xbf16, #tpu.memory_space<vmem>>, vector<1x32x64xbf16>
    %234 = vector.shape_cast %233 : vector<1x32x64xbf16> to vector<32x64xbf16>
    %cst_250 = arith.constant dense<0.000000e+00> : vector<32x64xf32>
    %235 = tpu.matmul %232, %234, %cst_250 {dimension_numbers = #tpu.dot_dimension_numbers<[1], [0], [0], [1], [0, 0, 1, 1], [], []>} : vector<32x32xbf16>, vector<32x64xbf16>, vector<32x64xf32> -> vector<32x64xf32>
    %236 = arith.addf %229, %235 : vector<32x64xf32>
    %c0_251 = arith.constant 0 : index
    %c0_252 = arith.constant 0 : index
    %237 = vector.load %arg9[%c0_251, %c0_252] : memref<1x64xf32, #tpu.memory_space<vmem>>, vector<1x64xf32>
    %238 = vector.broadcast %237 : vector<1x64xf32> to vector<32x64xf32>
    %239 = arith.mulf %236, %238 : vector<32x64xf32>
    %c0_253 = arith.constant 0 : index
    %c0_254 = arith.constant 0 : index
    %240 = vector.load %arg10[%c0_253, %c0_254] : memref<1x64xf32, #tpu.memory_space<vmem>>, vector<1x64xf32>
    %241 = vector.broadcast %240 : vector<1x64xf32> to vector<32x64xf32>
    %242 = arith.addf %239, %241 : vector<32x64xf32>
    %cst_255 = arith.constant 0.000000e+00 : f32
    %243 = vector.broadcast %cst_255 : f32 to vector<32x64xf32>
    %244 = arith.maximumf %242, %243 : vector<32x64xf32>
    %245 = vector.shape_cast %244 : vector<32x64xf32> to vector<2x16x64xf32>
    %c0_256 = arith.constant 0 : index
    %c0_257 = arith.constant 0 : index
    %c0_258 = arith.constant 0 : index
    %246 = vector.load %arg21[%c0_256, %c0_257, %c0_258] : memref<2x16x64xf32, #tpu.memory_space<vmem>>, vector<2x16x64xf32>
    tpu.vector_store %arg21[%c0_256, %c0_257, %c0_258], %245 {strides = array<i32>} : memref<2x16x64xf32, #tpu.memory_space<vmem>>, vector<2x16x64xf32>,
    %c0_259 = arith.constant 0 : index
    %c0_260 = arith.constant 0 : index
    %c0_261 = arith.constant 0 : index
    %247 = vector.load %arg21[%c0_259, %c0_260, %c0_261] : memref<2x16x64xf32, #tpu.memory_space<vmem>>, vector<2x8x64xf32>
    %c0_262 = arith.constant 0 : index
    %c8_263 = arith.constant 8 : index
    %c0_264 = arith.constant 0 : index
    %248 = vector.load %arg21[%c0_262, %c8_263, %c0_264] : memref<2x16x64xf32, #tpu.memory_space<vmem>>, vector<2x8x64xf32>
    %249 = arith.maximumf %247, %248 : vector<2x8x64xf32>
    %c0_265 = arith.constant 0 : index
    %c0_266 = arith.constant 0 : index
    %c0_267 = arith.constant 0 : index
    %250 = vector.load %arg21[%c0_265, %c0_266, %c0_267] : memref<2x16x64xf32, #tpu.memory_space<vmem>>, vector<2x8x64xf32>
    tpu.vector_store %arg21[%c0_265, %c0_266, %c0_267], %249 {strides = array<i32>} : memref<2x16x64xf32, #tpu.memory_space<vmem>>, vector<2x8x64xf32>,
    %c0_268 = arith.constant 0 : index
    %c0_269 = arith.constant 0 : index
    %c0_270 = arith.constant 0 : index
    %251 = tpu.strided_load %arg21[%c0_268, %c0_269, %c0_270] {strides = array<i32: 1, 2, 1>} : memref<2x16x64xf32, #tpu.memory_space<vmem>>, vector<2x2x64xf32>
    %c0_271 = arith.constant 0 : index
    %c1_272 = arith.constant 1 : index
    %c0_273 = arith.constant 0 : index
    %252 = tpu.strided_load %arg21[%c0_271, %c1_272, %c0_273] {strides = array<i32: 1, 2, 1>} : memref<2x16x64xf32, #tpu.memory_space<vmem>>, vector<2x2x64xf32>
    %253 = arith.maximumf %251, %252 : vector<2x2x64xf32>
    %cst_274 = arith.constant 0.000000e+00 : f32
    %254 = vector.broadcast %cst_274 : f32 to vector<1x128xf32>
    %255 = vector.extract_strided_slice %253 {offsets = [0, 0, 0], sizes = [1, 1, 64], strides = [1, 1, 1]} : vector<2x2x64xf32> to vector<1x1x64xf32>
    %256 = vector.shape_cast %255 : vector<1x1x64xf32> to vector<1x64xf32>
    %257 = arith.truncf %256 : vector<1x64xf32> to vector<1x64xbf16>
    %c0_275 = arith.constant 0 : index
    %c0_276 = arith.constant 0 : index
    %c0_277 = arith.constant 0 : index
    %258 = vector.load %arg11[%c0_275, %c0_276, %c0_277] : memref<4x64x128xbf16, #tpu.memory_space<vmem>>, vector<1x64x128xbf16>
    %259 = vector.shape_cast %258 : vector<1x64x128xbf16> to vector<64x128xbf16>
    %cst_278 = arith.constant dense<0.000000e+00> : vector<1x128xf32>
    %260 = tpu.matmul %257, %259, %cst_278 {dimension_numbers = #tpu.dot_dimension_numbers<[1], [0], [0], [1], [0, 0, 1, 1], [], []>} : vector<1x64xbf16>, vector<64x128xbf16>, vector<1x128xf32> -> vector<1x128xf32>
    %261 = arith.addf %254, %260 : vector<1x128xf32>
    %262 = vector.extract_strided_slice %253 {offsets = [0, 1, 0], sizes = [1, 1, 64], strides = [1, 1, 1]} : vector<2x2x64xf32> to vector<1x1x64xf32>
    %263 = vector.shape_cast %262 : vector<1x1x64xf32> to vector<1x64xf32>
    %264 = arith.truncf %263 : vector<1x64xf32> to vector<1x64xbf16>
    %c1_279 = arith.constant 1 : index
    %c0_280 = arith.constant 0 : index
    %c0_281 = arith.constant 0 : index
    %265 = vector.load %arg11[%c1_279, %c0_280, %c0_281] : memref<4x64x128xbf16, #tpu.memory_space<vmem>>, vector<1x64x128xbf16>
    %266 = vector.shape_cast %265 : vector<1x64x128xbf16> to vector<64x128xbf16>
    %cst_282 = arith.constant dense<0.000000e+00> : vector<1x128xf32>
    %267 = tpu.matmul %264, %266, %cst_282 {dimension_numbers = #tpu.dot_dimension_numbers<[1], [0], [0], [1], [0, 0, 1, 1], [], []>} : vector<1x64xbf16>, vector<64x128xbf16>, vector<1x128xf32> -> vector<1x128xf32>
    %268 = arith.addf %261, %267 : vector<1x128xf32>
    %269 = vector.extract_strided_slice %253 {offsets = [1, 0, 0], sizes = [1, 1, 64], strides = [1, 1, 1]} : vector<2x2x64xf32> to vector<1x1x64xf32>
    %270 = vector.shape_cast %269 : vector<1x1x64xf32> to vector<1x64xf32>
    %271 = arith.truncf %270 : vector<1x64xf32> to vector<1x64xbf16>
    %c2_283 = arith.constant 2 : index
    %c0_284 = arith.constant 0 : index
    %c0_285 = arith.constant 0 : index
    %272 = vector.load %arg11[%c2_283, %c0_284, %c0_285] : memref<4x64x128xbf16, #tpu.memory_space<vmem>>, vector<1x64x128xbf16>
    %273 = vector.shape_cast %272 : vector<1x64x128xbf16> to vector<64x128xbf16>
    %cst_286 = arith.constant dense<0.000000e+00> : vector<1x128xf32>
    %274 = tpu.matmul %271, %273, %cst_286 {dimension_numbers = #tpu.dot_dimension_numbers<[1], [0], [0], [1], [0, 0, 1, 1], [], []>} : vector<1x64xbf16>, vector<64x128xbf16>, vector<1x128xf32> -> vector<1x128xf32>
    %275 = arith.addf %268, %274 : vector<1x128xf32>
    %276 = vector.extract_strided_slice %253 {offsets = [1, 1, 0], sizes = [1, 1, 64], strides = [1, 1, 1]} : vector<2x2x64xf32> to vector<1x1x64xf32>
    %277 = vector.shape_cast %276 : vector<1x1x64xf32> to vector<1x64xf32>
    %278 = arith.truncf %277 : vector<1x64xf32> to vector<1x64xbf16>
    %c3_287 = arith.constant 3 : index
    %c0_288 = arith.constant 0 : index
    %c0_289 = arith.constant 0 : index
    %279 = vector.load %arg11[%c3_287, %c0_288, %c0_289] : memref<4x64x128xbf16, #tpu.memory_space<vmem>>, vector<1x64x128xbf16>
    %280 = vector.shape_cast %279 : vector<1x64x128xbf16> to vector<64x128xbf16>
    %cst_290 = arith.constant dense<0.000000e+00> : vector<1x128xf32>
    %281 = tpu.matmul %278, %280, %cst_290 {dimension_numbers = #tpu.dot_dimension_numbers<[1], [0], [0], [1], [0, 0, 1, 1], [], []>} : vector<1x64xbf16>, vector<64x128xbf16>, vector<1x128xf32> -> vector<1x128xf32>
    %282 = arith.addf %275, %281 : vector<1x128xf32>
    %c0_291 = arith.constant 0 : index
    %c0_292 = arith.constant 0 : index
    %283 = vector.load %arg12[%c0_291, %c0_292] : memref<1x128xf32, #tpu.memory_space<vmem>>, vector<1x128xf32>
    %284 = arith.addf %282, %283 : vector<1x128xf32>
    %cst_293 = arith.constant 0.000000e+00 : f32
    %285 = vector.broadcast %cst_293 : f32 to vector<1x128xf32>
    %286 = arith.maximumf %284, %285 : vector<1x128xf32>
    %287 = arith.truncf %286 : vector<1x128xf32> to vector<1x128xbf16>
    %c0_294 = arith.constant 0 : index
    %c0_295 = arith.constant 0 : index
    %288 = vector.load %arg13[%c0_294, %c0_295] : memref<128x8xbf16, #tpu.memory_space<vmem>>, vector<128x8xbf16>
    %cst_296 = arith.constant dense<0.000000e+00> : vector<1x8xf32>
    %289 = tpu.matmul %287, %288, %cst_296 {dimension_numbers = #tpu.dot_dimension_numbers<[1], [0], [0], [1], [0, 0, 1, 1], [], []>} : vector<1x128xbf16>, vector<128x8xbf16>, vector<1x8xf32> -> vector<1x8xf32>
    %c0_297 = arith.constant 0 : index
    %c0_298 = arith.constant 0 : index
    %290 = vector.load %arg14[%c0_297, %c0_298] : memref<1x8xf32, #tpu.memory_space<vmem>>, vector<1x8xf32>
    %291 = arith.addf %289, %290 : vector<1x8xf32>
    %c0_299 = arith.constant 0 : index
    %c0_300 = arith.constant 0 : index
    %c0_301 = arith.constant 0 : index
    %292 = vector.load %arg15[%c0_299, %c0_300, %c0_301] : memref<1x1x8xf32, #tpu.memory_space<vmem>>, vector<1x1x8xf32>
    %293 = vector.shape_cast %292 : vector<1x1x8xf32> to vector<1x8xf32>
    %294 = vector.shape_cast %291 : vector<1x8xf32> to vector<1x1x8xf32>
    tpu.vector_store %arg15[%c0_299, %c0_300, %c0_301], %294 {strides = array<i32>} : memref<1x1x8xf32, #tpu.memory_space<vmem>>, vector<1x1x8xf32>,
    return
  }
  func.func @transform_0(%arg0: i32) -> (i32, i32, i32, i32) {
    %c0_i32 = arith.constant 0 : i32
    %c0_i32_0 = arith.constant 0 : i32
    %c0_i32_1 = arith.constant 0 : i32
    %c0_i32_2 = arith.constant 0 : i32
    return %arg0, %c0_i32, %c0_i32_0, %c0_i32_1 : i32, i32, i32, i32
  }
  func.func @transform_1(%arg0: i32) -> (i32, i32, i32) {
    %c0_i32 = arith.constant 0 : i32
    %c0_i32_0 = arith.constant 0 : i32
    %c0_i32_1 = arith.constant 0 : i32
    %c0_i32_2 = arith.constant 0 : i32
    return %c0_i32, %c0_i32_0, %c0_i32_1 : i32, i32, i32
  }
  func.func @transform_2(%arg0: i32) -> (i32, i32) {
    %c0_i32 = arith.constant 0 : i32
    %c0_i32_0 = arith.constant 0 : i32
    %c0_i32_1 = arith.constant 0 : i32
    return %c0_i32, %c0_i32_0 : i32, i32
  }
  func.func @transform_3(%arg0: i32) -> (i32, i32) {
    %c0_i32 = arith.constant 0 : i32
    %c0_i32_0 = arith.constant 0 : i32
    %c0_i32_1 = arith.constant 0 : i32
    return %c0_i32, %c0_i32_0 : i32, i32
  }
  func.func @transform_4(%arg0: i32) -> (i32, i32, i32) {
    %c0_i32 = arith.constant 0 : i32
    %c0_i32_0 = arith.constant 0 : i32
    %c0_i32_1 = arith.constant 0 : i32
    %c0_i32_2 = arith.constant 0 : i32
    return %c0_i32, %c0_i32_0, %c0_i32_1 : i32, i32, i32
  }
  func.func @transform_5(%arg0: i32) -> (i32, i32) {
    %c0_i32 = arith.constant 0 : i32
    %c0_i32_0 = arith.constant 0 : i32
    %c0_i32_1 = arith.constant 0 : i32
    return %c0_i32, %c0_i32_0 : i32, i32
  }
  func.func @transform_6(%arg0: i32) -> (i32, i32) {
    %c0_i32 = arith.constant 0 : i32
    %c0_i32_0 = arith.constant 0 : i32
    %c0_i32_1 = arith.constant 0 : i32
    return %c0_i32, %c0_i32_0 : i32, i32
  }
  func.func @transform_7(%arg0: i32) -> (i32, i32, i32) {
    %c0_i32 = arith.constant 0 : i32
    %c0_i32_0 = arith.constant 0 : i32
    %c0_i32_1 = arith.constant 0 : i32
    %c0_i32_2 = arith.constant 0 : i32
    return %c0_i32, %c0_i32_0, %c0_i32_1 : i32, i32, i32
  }
  func.func @transform_8(%arg0: i32) -> (i32, i32) {
    %c0_i32 = arith.constant 0 : i32
    %c0_i32_0 = arith.constant 0 : i32
    %c0_i32_1 = arith.constant 0 : i32
    return %c0_i32, %c0_i32_0 : i32, i32
  }
  func.func @transform_9(%arg0: i32) -> (i32, i32) {
    %c0_i32 = arith.constant 0 : i32
    %c0_i32_0 = arith.constant 0 : i32
    %c0_i32_1 = arith.constant 0 : i32
    return %c0_i32, %c0_i32_0 : i32, i32
  }
  func.func @transform_10(%arg0: i32) -> (i32, i32, i32) {
    %c0_i32 = arith.constant 0 : i32
    %c0_i32_0 = arith.constant 0 : i32
    %c0_i32_1 = arith.constant 0 : i32
    %c0_i32_2 = arith.constant 0 : i32
    return %c0_i32, %c0_i32_0, %c0_i32_1 : i32, i32, i32
  }
  func.func @transform_11(%arg0: i32) -> (i32, i32) {
    %c0_i32 = arith.constant 0 : i32
    %c0_i32_0 = arith.constant 0 : i32
    %c0_i32_1 = arith.constant 0 : i32
    return %c0_i32, %c0_i32_0 : i32, i32
  }
  func.func @transform_12(%arg0: i32) -> (i32, i32) {
    %c0_i32 = arith.constant 0 : i32
    %c0_i32_0 = arith.constant 0 : i32
    %c0_i32_1 = arith.constant 0 : i32
    return %c0_i32, %c0_i32_0 : i32, i32
  }
  func.func @transform_13(%arg0: i32) -> (i32, i32) {
    %c0_i32 = arith.constant 0 : i32
    %c0_i32_0 = arith.constant 0 : i32
    %c0_i32_1 = arith.constant 0 : i32
    return %c0_i32, %c0_i32_0 : i32, i32
  }
  func.func @transform_14(%arg0: i32) -> (i32, i32, i32) {
    %c0_i32 = arith.constant 0 : i32
    %c0_i32_0 = arith.constant 0 : i32
    %c0_i32_1 = arith.constant 0 : i32
    return %arg0, %c0_i32, %c0_i32_0 : i32, i32, i32
  }
}

</mosaic_0001>

<bundles_post_ra>
// kernel: tpu_custom_call.1
= control target key start
LH: loop header
LB: loop body
LE: loop exit
PB: predicated region body
PF: predicated region fallthrough
CT: control target
= control target key end

     0   :  { %s8915_s0 = inlined_call_operand.vmem [shape: f32[2,16,16,3], index: 0, kind: input, shape index: {}]   ;;  %s8916_s1 = inlined_call_operand.vmem [shape: bf16[9,3,16], index: 1, kind: input, shape index: {}]   ;;  %s8917_s2 = inlined_call_operand.vmem [shape: f32[1,16], index: 2, kind: input, shape index: {}]   ;;  %s8918_s3 = inlined_call_operand.vmem [shape: f32[1,16], index: 3, kind: input, shape index: {}]   ;;  %s8919_s4 = inlined_call_operand.vmem [shape: bf16[9,16,32], index: 4, kind: input, shape index: {}]   ;;  %s8920_s5 = inlined_call_operand.vmem [shape: f32[1,32], index: 5, kind: input, shape index: {}]   ;;  %s8921_s6 = inlined_call_operand.vmem [shape: f32[1,32], index: 6, kind: input, shape index: {}]   ;;  %s8922_s7 = inlined_call_operand.vmem [shape: bf16[9,32,64], index: 7, kind: input, shape index: {}]   ;;  %s8923_s8 = inlined_call_operand.vmem [shape: f32[1,64], index: 8, kind: input, shape index: {}]   ;;  %s8924_s9 = inlined_call_operand.vmem [shape: f32[1,64], index: 9, kind: input, shape index: {}]   ;;  %s8925_s10 = inlined_call_operand.vmem [shape: bf16[4,64,128], index: 10, kind: input, shape index: {}]   ;;  %s8926_s11 = inlined_call_operand.vmem [shape: f32[1,128], index: 11, kind: input, shape index: {}]   ;;  %s8927_s12 = inlined_call_operand.vmem [shape: bf16[128,8], index: 12, kind: input, shape index: {}]   ;;  %s8928_s13 = inlined_call_operand.vmem [shape: f32[1,8], index: 13, kind: input, shape index: {}]   ;;  %s8929_s14 = inlined_call_operand.hbm [shape: f32[2,1,8], index: 14, kind: output, shape index: {}]  }
   0x1   :  { %8930 = sst [smem:[#allocation11_spill]] %s8915_s0 }
   0x2   :  { %8931 = sst [smem:[#allocation12_spill]] %s8916_s1 }
   0x3   :  { %8932 = sst [smem:[#allocation13_spill]] %s8917_s2 }
   0x4   :  { %19 = vsyncpa [#allocation9], 0 }
   0x5   :  { %21 = vsyncpa [#allocation9 + $0x1], 0  ;;  %s7526_s29 = smov 0   ;;  %s7528_s30 = smov 0  }
   0x6   :  { %s7530_s15 = smov 0   ;;  %s7532_s16 = smov 0  }
   0x7 LB: > { %s7547_s17 = sadd.s32 4294967295, %s7445_s16   ;;  %s5790_s18 = sadd.s32 4294967294, %s7445_s16   ;;  %s7445_s16 = sphi %s7532_s16, %s8941_s16   ;;  %s7441_s15 = sphi %s7530_s15, %s8940_s15   ;;  %s7437_s30 = sphi %s7528_s30, %s8939_s30   ;;  %s7433_s29 = sphi %s7526_s29, %s8938_s29  }
   0x8   : > { %s7551_s19 = sadd.s32 1, %s7445_s16   ;;  %s333_s20 = sadd.s32 1, %s7441_s15 }
   0x9   : > { %s330_s21 = ssub.s32 %s7445_s16, %s7551_s19  ;;  %p343_p0 = scmp.ne.s32.totalorder %s7441_s15, %s7437_s30 }
   0xa   : > { %p331_p1 = scmp.eq.s32.totalorder %s330_s21, 0  ;;  %p344_p2 = scmp.eq.s32.totalorder %s7547_s17, 1 }
   0xb   : > { %p349_p3 = scmp.ne.s32.totalorder %s7437_s30, %s7433_s29  ;;  %p350_p4 = scmp.eq.s32.totalorder %s5790_s18, 1 }
   0xc   : > { %s7562_s22 = scalar_select %p331_p1, %s7441_s15, %s333_s20  }
   0xd   : > { %p7564_p5 = por %p344_p2, %p343_p0  ;;  %p7568_p6 = por %p350_p4, %p349_p3 }
   0xe   : > { %p5793_p7 = scmp.ge.s32.totalorder %s7445_s16, 1  ;;  %p415_p8 = scmp.lt.s32.totalorder %s7445_s16, 3 }
  0x10   : > { %p416_p9 = pnand %p5793_p7, %p415_p8 }
  0x11   : > { %vm752_vm0 = vcmask (!%p416_p9), 1040384   ;;  %vm753_vm1 = vcmask (!%p416_p9), 1041408   ;;  %s8935_s1 = sld [smem:[#allocation12_spill]] (!%p416_p9)  ;;  %vm466_vm2 = vcmask (!%p416_p9), 23552   ;;  %v7447_v1 = vmov (!%p416_p9), 65535   ;;  %p460_p10 = scmp.lt.s32.totalorder (!%p416_p9), %s7547_s17, 1 }
  0x12   : > { %419 = sbr.rel (%p416_p9) target bundleno = 1966 (0x7ae), region = 76  ;;  %v754_v2 = vsel (!%p416_p9), %vm752_vm0, 4294967295, %v7447_v1  ;;  %vm470_vm3 = vcmask (!%p416_p9), 16384   ;;  %v7448_v5 = vmov (!%p416_p9), 0.0   ;;  %s8936_s0 = sld [smem:[#allocation11_spill]] (!%p416_p9)  ;;  %vm3301_vm4 = vcmask (!%p416_p9), 130048  }
  0x13   : > { %v7585_v4 = vsel (!%p416_p9), %vm753_vm1, %v754_v2, 0  ;;  %468 = vst.msk [vmem:[#allocation2 + $0x8] sm:$0xff] (!%p416_p9), %vm466_vm2, %v7448_v5  ;;  %469 = vst.msk [vmem:[#allocation2 + $0x10] sm:$0xff] (!%p416_p9), %vm466_vm2, %v7448_v5  ;;  %vm3439_vm5 = vcmask (!%p416_p9), 122880   ;;  %s8937_s2 = sld [smem:[#allocation13_spill]] (!%p416_p9)  ;;  %vm4453_vm6 = vcmask (!%p416_p9), 261120  }
  0x14   : > { %471 = vst.msk [vmem:[#allocation2 + $0x18] sm:$0x1] (!%p416_p9), %vm470_vm3, %v7448_v5  ;;  %475 = vst.msk [vmem:[#allocation2 + $0x38] sm:$0x1] (!%p416_p9), %vm470_vm3, %v7448_v5  ;;  %vm4499_vm7 = vcmask (!%p416_p9), 253952   ;;  %vm4517_vm8 = vcmask (!%p416_p9), 257024  }
  0x15   : > { %467 = vst.msk [vmem:[#allocation2] sm:$0xff] (!%p416_p9), %vm466_vm2, %v7448_v5  ;;  %472 = vst.msk [vmem:[#allocation2 + $0x20] sm:$0xff] (!%p416_p9), %vm466_vm2, %v7448_v5  ;;  %vm7449_vm9 = vmmov (!%p416_p9), 0   ;;  %vm5278_vm10 = vcmask (!%p416_p9), 523264   ;;  %s6135_s25 = sshll.u32 (!%p416_p9), %s7547_s17, 4  ;;  %vm5720_vm11 = vcmask (!%p416_p9), 57344  }
  0x16   : > { %473 = vst.msk [vmem:[#allocation2 + $0x28] sm:$0xff] (!%p416_p9), %vm466_vm2, %v7448_v5  ;;  %474 = vst.msk [vmem:[#allocation2 + $0x30] sm:$0xff] (!%p416_p9), %vm466_vm2, %v7448_v5  ;;  %s7450_s21 = smov (!%p416_p9), [#allocation8]  }
  0x17   : > { %v7577_v0 = vld [vmem:[%s8935_s1 + $0x4] sm:$0x3] (!%p416_p9)  ;;  %v7582_v3 = vld [vmem:[%s8935_s1 + $0x6] sm:$0x3] (!%p416_p9)  ;;  %476 = vst.msk [vmem:[#allocation2 + $0x40] sm:$0xff] (!%p416_p9), %vm466_vm2, %v7448_v5  ;;  %477 = vst.msk [vmem:[#allocation2 + $0x48] sm:$0xff] (!%p416_p9), %vm466_vm2, %v7448_v5 }
  0x18   : > { %478 = vst.msk [vmem:[#allocation2 + $0x50] sm:$0xff] (!%p416_p9), %vm466_vm2, %v7448_v5  ;;  %480 = vst.msk [vmem:[#allocation2 + $0x60] sm:$0xff] (!%p416_p9), %vm466_vm2, %v7448_v5  ;;  %v1231_v6 = vand.u32 (!%p416_p9), %v7577_v0, %v7585_v4  ;;  %v7735_v7 = vand.u32 (!%p416_p9), %v7582_v3, %v7585_v4  ;;  %v5863_v24 = vld [vmem:[%s8935_s1 + $0x8] sm:$0x3] (!%p416_p9) }
  0x19   : > { %479 = vst.msk [vmem:[#allocation2 + $0x58] sm:$0x1] %vm470_vm3, %v7448_v5  ;;  %483 = vst.msk [vmem:[#allocation2 + $0x78] sm:$0x1] %vm470_vm3, %v7448_v5  ;;  %s461_s18 = scalar_select %p460_p10, %s7547_s17, 1  ;;  %v7799_v40 = vand.u32 %v5863_v24, %v7585_v4 }
  0x1a   : > { %481 = vst.msk [vmem:[#allocation2 + $0x68] sm:$0xff] %vm466_vm2, %v7448_v5  ;;  %482 = vst.msk [vmem:[#allocation2 + $0x70] sm:$0xff] %vm466_vm2, %v7448_v5  ;;  %6470 = vmatprep.subr.bf16.mxu0 %v1231_v6  ;;  %v1132_v14 = vld [vmem:[#allocation2 + $0x9] sm:$0xff] }
  0x1b   : > { %484 = vst.msk [vmem:[#allocation2 + $0x80] sm:$0xff] %vm466_vm2, %v7448_v5  ;;  %485 = vst.msk [vmem:[#allocation2 + $0x88] sm:$0xff] %vm466_vm2, %v7448_v5  ;;  %s6138_s20 = sshll.u32 %s461_s18, 8  ;;  %6471 = vmatpush3.bf16.msra.mxu0 %v1231_v6  ;;  %v1133_v15 = vld [vmem:[#allocation2 + $0x11] sm:$0xff]  ;;  %s458_s18 = sand.u32 1, %s7437_s30  }
  0x1c   : > { %486 = vst.msk [vmem:[#allocation2 + $0x90] sm:$0xff] %vm466_vm2, %v7448_v5  ;;  %488 = vst.msk [vmem:[#allocation2 + $0xa0] sm:$0xff] %vm466_vm2, %v7448_v5  ;;  %s7743_s26 = scalar_lea.vmem %s8936_s0, %s6138_s20  ;;  %6504 = vmatprep.subr.bf16.mxu0 %v7735_v7  ;;  %v1164_v17 = vpack.c.bf16 %v1133_v15, %v1132_v14  ;;  %s5723_s17 = scalar_lea.sflag [#allocation9], %s458_s18 }
  0x1d   : > { %487 = vst.msk [vmem:[#allocation2 + $0x98] sm:$0x1] %vm470_vm3, %v7448_v5  ;;  %491 = vst.msk [vmem:[#allocation2 + $0xb8] sm:$0x1] %vm470_vm3, %v7448_v5  ;;  %v540_v8 = vld [vmem:[%s7743_s26] sm:$0xff]  ;;  %v541_v9 = vld [vmem:[%s7743_s26 + $0x8] sm:$0xff] }
  0x1e   : > { %489 = vst.msk [vmem:[#allocation2 + $0xa8] sm:$0xff] %vm466_vm2, %v7448_v5  ;;  %490 = vst.msk [vmem:[#allocation2 + $0xb0] sm:$0xff] %vm466_vm2, %v7448_v5  ;;  %v542_v10 = vld [vmem:[%s7743_s26 + $0x10] sm:$0xff]  ;;  %v543_v11 = vld [vmem:[%s7743_s26 + $0x18] sm:$0xff]  ;;  %6472 = vmatprep.mubr.msk.bf16.mxu0 %vm466_vm2, %v1164_v17 }
  0x1f   : > { %492 = vst.msk [vmem:[#allocation2 + $0xc0] sm:$0xff] %vm466_vm2, %v7448_v5  ;;  %493 = vst.msk [vmem:[#allocation2 + $0xc8] sm:$0xff] %vm466_vm2, %v7448_v5  ;;  %v544_v12 = vld [vmem:[%s7743_s26 + $0x20] sm:$0xff]  ;;  %v545_v13 = vld [vmem:[%s7743_s26 + $0x28] sm:$0xff] }
  0x20   : > { %494 = vst.msk [vmem:[#allocation2 + $0xd0] sm:$0xff] %vm466_vm2, %v7448_v5  ;;  %496 = vst.msk [vmem:[#allocation2 + $0xe0] sm:$0xff] %vm466_vm2, %v7448_v5  ;;  %v546_v16 = vld [vmem:[%s7743_s26 + $0x30] sm:$0xff]  ;;  %v547_v18 = vld [vmem:[%s7743_s26 + $0x38] sm:$0xff] }
  0x21   : > { %495 = vst.msk [vmem:[#allocation2 + $0xd8] sm:$0x1] %vm470_vm3, %v7448_v5  ;;  %499 = vst.msk [vmem:[#allocation2 + $0xf8] sm:$0x1] %vm470_vm3, %v7448_v5  ;;  %v548_v19 = vld [vmem:[%s7743_s26 + $0x40] sm:$0xff]  ;;  %v549_v20 = vld [vmem:[%s7743_s26 + $0x48] sm:$0xff] }
  0x22   : > { %497 = vst.msk [vmem:[#allocation2 + $0xe8] sm:$0xff] %vm466_vm2, %v7448_v5  ;;  %498 = vst.msk [vmem:[#allocation2 + $0xf0] sm:$0xff] %vm466_vm2, %v7448_v5  ;;  %v550_v21 = vld [vmem:[%s7743_s26 + $0x50] sm:$0xff]  ;;  %v551_v22 = vld [vmem:[%s7743_s26 + $0x58] sm:$0xff] }
  0x23   : > { %500 = vst.msk [vmem:[#allocation2 + $0x100] sm:$0xff] %vm466_vm2, %v7448_v5  ;;  %501 = vst.msk [vmem:[#allocation2 + $0x108] sm:$0xff] %vm466_vm2, %v7448_v5  ;;  %v552_v23 = vld [vmem:[%s7743_s26 + $0x60] sm:$0xff]  ;;  %v553_v25 = vld [vmem:[%s7743_s26 + $0x68] sm:$0xff] }
  0x24   : > { %502 = vst.msk [vmem:[#allocation2 + $0x110] sm:$0xff] %vm466_vm2, %v7448_v5  ;;  %504 = vst.msk [vmem:[#allocation2 + $0x120] sm:$0xff] %vm466_vm2, %v7448_v5  ;;  %v554_v26 = vld [vmem:[%s7743_s26 + $0x70] sm:$0xff]  ;;  %v555_v27 = vld [vmem:[%s7743_s26 + $0x78] sm:$0xff] }
  0x25   : > { %503 = vst.msk [vmem:[#allocation2 + $0x118] sm:$0x1] %vm470_vm3, %v7448_v5  ;;  %507 = vst.msk [vmem:[#allocation2 + $0x138] sm:$0x1] %vm470_vm3, %v7448_v5  ;;  %v556_v28 = vld [vmem:[%s7743_s26 + $0x80] sm:$0xff]  ;;  %v557_v29 = vld [vmem:[%s7743_s26 + $0x88] sm:$0xff] }
  0x26   : > { %505 = vst.msk [vmem:[#allocation2 + $0x128] sm:$0xff] %vm466_vm2, %v7448_v5  ;;  %506 = vst.msk [vmem:[#allocation2 + $0x130] sm:$0xff] %vm466_vm2, %v7448_v5  ;;  %v558_v30 = vld [vmem:[%s7743_s26 + $0x90] sm:$0xff]  ;;  %v559_v31 = vld [vmem:[%s7743_s26 + $0x98] sm:$0xff] }
  0x27   : > { %508 = vst.msk [vmem:[#allocation2 + $0x140] sm:$0xff] %vm466_vm2, %v7448_v5  ;;  %509 = vst.msk [vmem:[#allocation2 + $0x148] sm:$0xff] %vm466_vm2, %v7448_v5  ;;  %v560_v32 = vld [vmem:[%s7743_s26 + $0xa0] sm:$0xff]  ;;  %v561_v33 = vld [vmem:[%s7743_s26 + $0xa8] sm:$0xff] }
  0x28   : > { %510 = vst.msk [vmem:[#allocation2 + $0x150] sm:$0xff] %vm466_vm2, %v7448_v5  ;;  %512 = vst.msk [vmem:[#allocation2 + $0x160] sm:$0xff] %vm466_vm2, %v7448_v5  ;;  %v562_v36 = vld [vmem:[%s7743_s26 + $0xb0] sm:$0xff]  ;;  %v563_v42 = vld [vmem:[%s7743_s26 + $0xb8] sm:$0xff] }
  0x29   : > { %511 = vst.msk [vmem:[#allocation2 + $0x158] sm:$0x1] %vm470_vm3, %v7448_v5  ;;  %515 = vst.msk [vmem:[#allocation2 + $0x178] sm:$0x1] %vm470_vm3, %v7448_v5  ;;  %v564_v43 = vld [vmem:[%s7743_s26 + $0xc0] sm:$0xff]  ;;  %v565_v50 = vld [vmem:[%s7743_s26 + $0xc8] sm:$0xff] }
  0x2a   : > { %513 = vst.msk [vmem:[#allocation2 + $0x168] sm:$0xff] %vm466_vm2, %v7448_v5  ;;  %514 = vst.msk [vmem:[#allocation2 + $0x170] sm:$0xff] %vm466_vm2, %v7448_v5  ;;  %v566_v51 = vld [vmem:[%s7743_s26 + $0xd0] sm:$0xff]  ;;  %v567_v52 = vld [vmem:[%s7743_s26 + $0xd8] sm:$0xff] }
  0x2b   : > { %516 = vst.msk [vmem:[#allocation2 + $0x180] sm:$0xff] %vm466_vm2, %v7448_v5  ;;  %517 = vst.msk [vmem:[#allocation2 + $0x188] sm:$0xff] %vm466_vm2, %v7448_v5  ;;  %v568_v53 = vld [vmem:[%s7743_s26 + $0xe0] sm:$0xff]  ;;  %v569_v54 = vld [vmem:[%s7743_s26 + $0xe8] sm:$0xff] }
  0x2c   : > { %518 = vst.msk [vmem:[#allocation2 + $0x190] sm:$0xff] %vm466_vm2, %v7448_v5  ;;  %520 = vst.msk [vmem:[#allocation2 + $0x1a0] sm:$0xff] %vm466_vm2, %v7448_v5  ;;  %v570_v1 = vld [vmem:[%s7743_s26 + $0xf0] sm:$0xff]  ;;  %v571_v3 = vld [vmem:[%s7743_s26 + $0xf8] sm:$0xff]  ;;  %s459_s26 = scalar_lea.vmem [#allocation8], %s458_s18 }
  0x2d   : > { %519 = vst.msk [vmem:[#allocation2 + $0x198] sm:$0x1] %vm470_vm3, %v7448_v5  ;;  %523 = vst.msk [vmem:[#allocation2 + $0x1b8] sm:$0x1] %vm470_vm3, %v7448_v5  ;;  %s5735_s27 = sshll.u32 %s459_s26, 4  ;;  %s8875_s27 = int_to_ptr.vmem [resolvable:$true] %s5735_s27 }
  0x2e   : > { %521 = vst.msk [vmem:[#allocation2 + $0x1a8] sm:$0xff] %vm466_vm2, %v7448_v5  ;;  %522 = vst.msk [vmem:[#allocation2 + $0x1b0] sm:$0xff] %vm466_vm2, %v7448_v5  ;;  %s7383_s20 = scalar_lea.vmem %s8875_s27, 16 }
  0x2f   : > { %524 = vst.msk [vmem:[#allocation2 + $0x1c0] sm:$0xff] %vm466_vm2, %v7448_v5  ;;  %525 = vst.msk [vmem:[#allocation2 + $0x1c8] sm:$0xff] %vm466_vm2, %v7448_v5  ;;  %p7384_p11 = scmp.ne.s32.totalorder %s8875_s27, %s7383_s20 }
  0x30   : > { %526 = vst.msk [vmem:[#allocation2 + $0x1d0] sm:$0xff] %vm466_vm2, %v7448_v5  ;;  %528 = vst.msk [vmem:[#allocation2 + $0x1e0] sm:$0xff] %vm466_vm2, %v7448_v5 }
  0x31   : > { %527 = vst.msk [vmem:[#allocation2 + $0x1d8] sm:$0x1] %vm470_vm3, %v7448_v5  ;;  %531 = vst.msk [vmem:[#allocation2 + $0x1f8] sm:$0x1] %vm470_vm3, %v7448_v5  ;;  %p7385_p12 = pnand %p7384_p11, %p7564_p5 }
  0x32   : > { %529 = vst.msk [vmem:[#allocation2 + $0x1e8] sm:$0xff] %vm466_vm2, %v7448_v5  ;;  %530 = vst.msk [vmem:[#allocation2 + $0x1f0] sm:$0xff] %vm466_vm2, %v7448_v5 }
  0x33   : > { %532 = vst.msk [vmem:[#allocation2 + $0x200] sm:$0xff] %vm466_vm2, %v7448_v5  ;;  %533 = vst.msk [vmem:[#allocation2 + $0x208] sm:$0xff] %vm466_vm2, %v7448_v5  ;;  %p7386_p13 = pneg %p7385_p12 }
  0x34   : > { %534 = vst.msk [vmem:[#allocation2 + $0x210] sm:$0xff] %vm466_vm2, %v7448_v5  ;;  %536 = vst.msk [vmem:[#allocation2 + $0x220] sm:$0xff] %vm466_vm2, %v7448_v5 }
  0x35   : > { %535 = vst.msk [vmem:[#allocation2 + $0x218] sm:$0x1] %vm470_vm3, %v7448_v5  ;;  %539 = vst.msk [vmem:[#allocation2 + $0x238] sm:$0x1] %vm470_vm3, %v7448_v5 }
  0x36   : > { %537 = vst.msk [vmem:[#allocation2 + $0x228] sm:$0xff] %vm466_vm2, %v7448_v5  ;;  %538 = vst.msk [vmem:[#allocation2 + $0x230] sm:$0xff] %vm466_vm2, %v7448_v5 }
  0x37   : > { %573 = vst.msk [vmem:[#allocation2 + $0x28] sm:$0xff] %vm466_vm2, %v540_v8  ;;  %574 = vst.msk [vmem:[#allocation2 + $0x30] sm:$0xff] %vm466_vm2, %v541_v9 }
  0x38   : > { %575 = vst.msk [vmem:[#allocation2 + $0x48] sm:$0xff] %vm466_vm2, %v542_v10  ;;  %576 = vst.msk [vmem:[#allocation2 + $0x50] sm:$0xff] %vm466_vm2, %v543_v11 }
  0x39   : > { %577 = vst.msk [vmem:[#allocation2 + $0x68] sm:$0xff] %vm466_vm2, %v544_v12  ;;  %578 = vst.msk [vmem:[#allocation2 + $0x70] sm:$0xff] %vm466_vm2, %v545_v13 }
  0x3a   : > { %579 = vst.msk [vmem:[#allocation2 + $0x88] sm:$0xff] %vm466_vm2, %v546_v16  ;;  %580 = vst.msk [vmem:[#allocation2 + $0x90] sm:$0xff] %vm466_vm2, %v547_v18 }
  0x3b   : > { %581 = vst.msk [vmem:[#allocation2 + $0xa8] sm:$0xff] %vm466_vm2, %v548_v19  ;;  %582 = vst.msk [vmem:[#allocation2 + $0xb0] sm:$0xff] %vm466_vm2, %v549_v20 }
  0x3c   : > { %583 = vst.msk [vmem:[#allocation2 + $0xc8] sm:$0xff] %vm466_vm2, %v550_v21  ;;  %584 = vst.msk [vmem:[#allocation2 + $0xd0] sm:$0xff] %vm466_vm2, %v551_v22 }
  0x3d   : > { %585 = vst.msk [vmem:[#allocation2 + $0xe8] sm:$0xff] %vm466_vm2, %v552_v23  ;;  %586 = vst.msk [vmem:[#allocation2 + $0xf0] sm:$0xff] %vm466_vm2, %v553_v25 }
  0x3e   : > { %587 = vst.msk [vmem:[#allocation2 + $0x108] sm:$0xff] %vm466_vm2, %v554_v26  ;;  %588 = vst.msk [vmem:[#allocation2 + $0x110] sm:$0xff] %vm466_vm2, %v555_v27  ;;  %v1134_v34 = vld [vmem:[#allocation2 + $0x29] sm:$0xff]  ;;  %v1135_v35 = vld [vmem:[#allocation2 + $0x31] sm:$0xff] }
  0x3f   : > { %589 = vst.msk [vmem:[#allocation2 + $0x128] sm:$0xff] %vm466_vm2, %v556_v28  ;;  %590 = vst.msk [vmem:[#allocation2 + $0x130] sm:$0xff] %vm466_vm2, %v557_v29  ;;  %v7795_v37 = vpack.c.bf16 %v1135_v35, %v1134_v34  ;;  %v1136_v38 = vld [vmem:[#allocation2 + $0x49] sm:$0xff]  ;;  %v1137_v39 = vld [vmem:[#allocation2 + $0x51] sm:$0xff] }
  0x40   : > { %591 = vst.msk [vmem:[#allocation2 + $0x148] sm:$0xff] %vm466_vm2, %v558_v30  ;;  %592 = vst.msk [vmem:[#allocation2 + $0x150] sm:$0xff] %vm466_vm2, %v559_v31  ;;  %v7801_v41 = vpack.c.bf16 %v1137_v39, %v1136_v38  ;;  %v1138_v44 = vld [vmem:[#allocation2 + $0x69] sm:$0xff]  ;;  %v1139_v45 = vld [vmem:[#allocation2 + $0x71] sm:$0xff] }
  0x41   : > { %593 = vst.msk [vmem:[#allocation2 + $0x168] sm:$0xff] %vm466_vm2, %v560_v32  ;;  %594 = vst.msk [vmem:[#allocation2 + $0x170] sm:$0xff] %vm466_vm2, %v561_v33  ;;  %6473 = vmatmul.mubr.msk.bf16.vlgmr.msra.gmra.mrb[0].mxu0 %vm466_vm2, %v7795_v37  ;;  %v1140_v46 = vld [vmem:[#allocation2 + $0x89] sm:$0xff]  ;;  %v1141_v47 = vld [vmem:[#allocation2 + $0x91] sm:$0xff]  ;;  %v7813_v48 = vpack.c.bf16 %v1139_v45, %v1138_v44 }
  0x42   : > { %595 = vst.msk [vmem:[#allocation2 + $0x188] sm:$0xff] %vm466_vm2, %v562_v36  ;;  %596 = vst.msk [vmem:[#allocation2 + $0x190] sm:$0xff] %vm466_vm2, %v563_v42  ;;  %6505 = vmatpush3.bf16.msra.mxu0 %v7735_v7  ;;  %6476 = vmatprep.mubr.msk.bf16.mxu0 %vm466_vm2, %v7801_v41  ;;  %v7815_v49 = vpack.c.bf16 %v1141_v47, %v1140_v46  ;;  %v1142_v55 = vld [vmem:[#allocation2 + $0xa9] sm:$0xff]  ;;  %v1143_v56 = vld [vmem:[#allocation2 + $0xb1] sm:$0xff] }
  0x43   : > { %597 = vst.msk [vmem:[#allocation2 + $0x1a8] sm:$0xff] %vm466_vm2, %v564_v43  ;;  %6538 = vmatprep.subr.bf16.mxu0 %v7799_v40  ;;  %598 = vst.msk [vmem:[#allocation2 + $0x1b0] sm:$0xff] %vm466_vm2, %v565_v50  ;;  %v1144_v57 = vld [vmem:[#allocation2 + $0xc9] sm:$0xff]  ;;  %v1145_v58 = vld [vmem:[#allocation2 + $0xd1] sm:$0xff]  ;;  %v7831_v59 = vpack.c.bf16 %v1143_v56, %v1142_v55 }
  0x44   : > { %599 = vst.msk [vmem:[#allocation2 + $0x1c8] sm:$0xff] %vm466_vm2, %v566_v51  ;;  %600 = vst.msk [vmem:[#allocation2 + $0x1d0] sm:$0xff] %vm466_vm2, %v567_v52  ;;  %v7833_v60 = vpack.c.bf16 %v1145_v58, %v1144_v57  ;;  %v1146_v61 = vld [vmem:[#allocation2 + $0xe9] sm:$0xff]  ;;  %v1147_v62 = vld [vmem:[#allocation2 + $0xf1] sm:$0xff] }
  0x45   : > { %601 = vst.msk [vmem:[#allocation2 + $0x1e8] sm:$0xff] %vm466_vm2, %v568_v53  ;;  %602 = vst.msk [vmem:[#allocation2 + $0x1f0] sm:$0xff] %vm466_vm2, %v569_v54  ;;  %v1148_v63 = vld [vmem:[#allocation2 + $0x109] sm:$0xff]  ;;  %v1149_v0 = vld [vmem:[#allocation2 + $0x111] sm:$0xff]  ;;  %v7840_v2 = vpack.c.bf16 %v1147_v62, %v1146_v61 }
  0x46   : > { %603 = vst.msk [vmem:[#allocation2 + $0x208] sm:$0xff] %vm466_vm2, %v570_v1  ;;  %v7844_v6 = vpack.c.bf16 %v1149_v0, %v1148_v63  ;;  %604 = vst.msk [vmem:[#allocation2 + $0x210] sm:$0xff] %vm466_vm2, %v571_v3  ;;  %v1150_v7 = vld [vmem:[#allocation2 + $0x129] sm:$0xff]  ;;  %v1151_v8 = vld [vmem:[#allocation2 + $0x131] sm:$0xff] }
  0x47   : > { %v1152_v9 = vld [vmem:[#allocation2 + $0x149] sm:$0xff]  ;;  %v1153_v10 = vld [vmem:[#allocation2 + $0x151] sm:$0xff]  ;;  %v7851_v11 = vpack.c.bf16 %v1151_v8, %v1150_v7  ;;  %3437 = vst.msk [vmem:[#allocation3] sm:$0xff] %vm3301_vm4, %v7448_v5  ;;  %3438 = vst.msk [vmem:[#allocation3 + $0x8] sm:$0xff] %vm3301_vm4, %v7448_v5 }
  0x48   : > { %v7853_v12 = vpack.c.bf16 %v1153_v10, %v1152_v9  ;;  %v1154_v13 = vld [vmem:[#allocation2 + $0x169] sm:$0xff]  ;;  %v1155_v14 = vld [vmem:[#allocation2 + $0x171] sm:$0xff]  ;;  %3441 = vst.msk [vmem:[#allocation3 + $0x18] sm:$0xff] %vm3301_vm4, %v7448_v5  ;;  %3442 = vst.msk [vmem:[#allocation3 + $0x20] sm:$0xff] %vm3301_vm4, %v7448_v5 }
  0x49   : > { %6477 = vmatmul.mubr.msk.bf16.gmra.mrb[4].mxu0 %vm466_vm2, %v7813_v48  ;;  %v1156_v15 = vld [vmem:[#allocation2 + $0x189] sm:$0xff]  ;;  %v1157_v16 = vld [vmem:[#allocation2 + $0x191] sm:$0xff]  ;;  %v7859_v17 = vpack.c.bf16 %v1155_v14, %v1154_v13  ;;  %3444 = vst.msk [vmem:[#allocation3 + $0x30] sm:$0xff] %vm3301_vm4, %v7448_v5  ;;  %3445 = vst.msk [vmem:[#allocation3 + $0x38] sm:$0xff] %vm3301_vm4, %v7448_v5 }
  0x4a   : > { %6480 = vmatprep.mubr.msk.bf16.mxu0 %vm466_vm2, %v7815_v49  ;;  %v7861_v18 = vpack.c.bf16 %v1157_v16, %v1156_v15  ;;  %v1158_v19 = vld [vmem:[#allocation2 + $0x1a9] sm:$0xff]  ;;  %v1159_v20 = vld [vmem:[#allocation2 + $0x1b1] sm:$0xff]  ;;  %3447 = vst.msk [vmem:[#allocation3 + $0x48] sm:$0xff] %vm3301_vm4, %v7448_v5  ;;  %3448 = vst.msk [vmem:[#allocation3 + $0x50] sm:$0xff] %vm3301_vm4, %v7448_v5 }
  0x4b   : > { %v1160_v21 = vld [vmem:[#allocation2 + $0x1c9] sm:$0xff]  ;;  %v1161_v22 = vld [vmem:[#allocation2 + $0x1d1] sm:$0xff]  ;;  %v7867_v23 = vpack.c.bf16 %v1159_v20, %v1158_v19  ;;  %3450 = vst.msk [vmem:[#allocation3 + $0x60] sm:$0xff] %vm3301_vm4, %v7448_v5  ;;  %3451 = vst.msk [vmem:[#allocation3 + $0x68] sm:$0xff] %vm3301_vm4, %v7448_v5 }
  0x4c   : > { %v7869_v24 = vpack.c.bf16 %v1161_v22, %v1160_v21  ;;  %v1426_v25 = vld [vmem:[#allocation2 + $0x27] sm:$0xff]  ;;  %v1427_v26 = vld [vmem:[#allocation2 + $0x2f] sm:$0xff]  ;;  %3453 = vst.msk [vmem:[#allocation3 + $0x78] sm:$0xff] %vm3301_vm4, %v7448_v5  ;;  %3454 = vst.msk [vmem:[#allocation3 + $0x80] sm:$0xff] %vm3301_vm4, %v7448_v5 }
  0x4d   : > { %v1162_v27 = vld [vmem:[#allocation2 + $0x1e9] sm:$0xff]  ;;  %v1163_v28 = vld [vmem:[#allocation2 + $0x1f1] sm:$0xff]  ;;  %v7877_v30 = vpack.c.bf16 %v1427_v26, %v1426_v25  ;;  %3456 = vst.msk [vmem:[#allocation3 + $0x90] sm:$0xff] %vm3301_vm4, %v7448_v5  ;;  %3457 = vst.msk [vmem:[#allocation3 + $0x98] sm:$0xff] %vm3301_vm4, %v7448_v5 }
  0x4e   : > { %v7875_v29 = vpack.c.bf16 %v1163_v28, %v1162_v27  ;;  %v1428_v31 = vld [vmem:[#allocation2 + $0x47] sm:$0xff]  ;;  %v1429_v32 = vld [vmem:[#allocation2 + $0x4f] sm:$0xff]  ;;  %3459 = vst.msk [vmem:[#allocation3 + $0xa8] sm:$0xff] %vm3301_vm4, %v7448_v5  ;;  %3460 = vst.msk [vmem:[#allocation3 + $0xb0] sm:$0xff] %vm3301_vm4, %v7448_v5 }
  0x4f   : > { %v1430_v33 = vld [vmem:[#allocation2 + $0x67] sm:$0xff]  ;;  %v1431_v34 = vld [vmem:[#allocation2 + $0x6f] sm:$0xff]  ;;  %v7886_v36 = vpack.c.bf16 %v1429_v32, %v1428_v31  ;;  %3462 = vst.msk [vmem:[#allocation3 + $0xc0] sm:$0xff] %vm3301_vm4, %v7448_v5  ;;  %3463 = vst.msk [vmem:[#allocation3 + $0xc8] sm:$0xff] %vm3301_vm4, %v7448_v5 }
  0x50   : > { %v5880_v35 = vld [vmem:[%s8935_s1 + $0xa] sm:$0x3]  ;;  %v7888_v38 = vpack.c.bf16 %v1431_v34, %v1430_v33  ;;  %v1433_v43 = vld [vmem:[#allocation2 + $0x8f] sm:$0xff]  ;;  %3465 = vst.msk [vmem:[#allocation3 + $0xd8] sm:$0xff] %vm3301_vm4, %v7448_v5  ;;  %3466 = vst.msk [vmem:[#allocation3 + $0xe0] sm:$0xff] %vm3301_vm4, %v7448_v5 }
  0x51   : > { %6481 = vmatmul.mubr.msk.bf16.gmra.mrb[8].mxu0 %vm466_vm2, %v7831_v59  ;;  %v7891_v39 = vand.u32 %v5880_v35, %v7585_v4  ;;  %v1432_v42 = vld [vmem:[#allocation2 + $0x87] sm:$0xff]  ;;  %v1435_v45 = vld [vmem:[#allocation2 + $0xaf] sm:$0xff]  ;;  %v5796_v35 = vld [vmem:[%s8935_s1 + $0x2] sm:$0x3]  ;;  %3440 = vst.msk [vmem:[#allocation3 + $0x10] sm:$0x1] %vm3439_vm5, %v7448_v5 }
  0x52   : > { %6484 = vmatprep.mubr.msk.bf16.mxu0 %vm466_vm2, %v7833_v60  ;;  %v1434_v44 = vld [vmem:[#allocation2 + $0xa7] sm:$0xff]  ;;  %v7899_v46 = vpack.c.bf16 %v1433_v43, %v1432_v42  ;;  %v1437_v50 = vld [vmem:[#allocation2 + $0xcf] sm:$0xff]  ;;  %v757_v42 = vand.u32 %v5796_v35, %v7585_v4  ;;  %3443 = vst.msk [vmem:[#allocation3 + $0x28] sm:$0x1] %vm3439_vm5, %v7448_v5  ;;  %3446 = vst.msk [vmem:[#allocation3 + $0x40] sm:$0x1] %vm3439_vm5, %v7448_v5 }
  0x53   : > { %v7901_v47 = vpack.c.bf16 %v1435_v45, %v1434_v44  ;;  %v1438_v51 = vld [vmem:[#allocation2 + $0xe7] sm:$0xff]  ;;  %v1439_v52 = vld [vmem:[#allocation2 + $0xef] sm:$0xff]  ;;  %3449 = vst.msk [vmem:[#allocation3 + $0x58] sm:$0x1] %vm3439_vm5, %v7448_v5  ;;  %3452 = vst.msk [vmem:[#allocation3 + $0x70] sm:$0x1] %vm3439_vm5, %v7448_v5 }
  0x54   : > { %v7909_v54 = vpack.c.bf16 %v1439_v52, %v1438_v51  ;;  %v1440_v55 = vld [vmem:[#allocation2 + $0x107] sm:$0xff]  ;;  %v1441_v56 = vld [vmem:[#allocation2 + $0x10f] sm:$0xff]  ;;  %6402 = vmatprep.subr.bf16.mxu1 %v757_v42  ;;  %3455 = vst.msk [vmem:[#allocation3 + $0x88] sm:$0x1] %vm3439_vm5, %v7448_v5  ;;  %3458 = vst.msk [vmem:[#allocation3 + $0xa0] sm:$0x1] %vm3439_vm5, %v7448_v5 }
  0x55   : > { %v1442_v57 = vld [vmem:[#allocation2 + $0x127] sm:$0xff]  ;;  %v1443_v58 = vld [vmem:[#allocation2 + $0x12f] sm:$0xff]  ;;  %v7915_v61 = vpack.c.bf16 %v1441_v56, %v1440_v55  ;;  %6403 = vmatpush3.bf16.msra.mxu1 %v757_v42  ;;  %3461 = vst.msk [vmem:[#allocation3 + $0xb8] sm:$0x1] %vm3439_vm5, %v7448_v5  ;;  %3464 = vst.msk [vmem:[#allocation3 + $0xd0] sm:$0x1] %vm3439_vm5, %v7448_v5 }
  0x56   : > { %v7917_v62 = vpack.c.bf16 %v1443_v58, %v1442_v57  ;;  %v1444_v63 = vld [vmem:[#allocation2 + $0x147] sm:$0xff]  ;;  %v1445_v0 = vld [vmem:[#allocation2 + $0x14f] sm:$0xff]  ;;  %3467 = vst.msk [vmem:[#allocation3 + $0xe8] sm:$0x1] %vm3439_vm5, %v7448_v5 }
  0x57   : > { %v1446_v1 = vld [vmem:[#allocation2 + $0x167] sm:$0xff]  ;;  %v1447_v3 = vld [vmem:[#allocation2 + $0x16f] sm:$0xff]  ;;  %v7923_v7 = vpack.c.bf16 %v1445_v0, %v1444_v63  ;;  %4497 = vst.msk [vmem:[#allocation4] sm:$0xff] %vm4453_vm6, %v7448_v5  ;;  %4498 = vst.msk [vmem:[#allocation4 + $0x8] sm:$0xff] %vm4453_vm6, %v7448_v5 }
  0x58   : > { %v7925_v8 = vpack.c.bf16 %v1447_v3, %v1446_v1  ;;  %v1448_v9 = vld [vmem:[#allocation2 + $0x187] sm:$0xff]  ;;  %v1449_v10 = vld [vmem:[#allocation2 + $0x18f] sm:$0xff]  ;;  %4501 = vst.msk [vmem:[#allocation4 + $0x18] sm:$0xff] %vm4453_vm6, %v7448_v5  ;;  %4502 = vst.msk [vmem:[#allocation4 + $0x20] sm:$0xff] %vm4453_vm6, %v7448_v5 }
  0x59   : > { %6485 = vmatmul.mubr.msk.bf16.gmra.mrb[12].mxu0 %vm466_vm2, %v7840_v2  ;;  %v1450_v13 = vld [vmem:[#allocation2 + $0x1a7] sm:$0xff]  ;;  %v1451_v14 = vld [vmem:[#allocation2 + $0x1af] sm:$0xff]  ;;  %v7931_v15 = vpack.c.bf16 %v1449_v10, %v1448_v9  ;;  %4504 = vst.msk [vmem:[#allocation4 + $0x30] sm:$0xff] %vm4453_vm6, %v7448_v5  ;;  %4505 = vst.msk [vmem:[#allocation4 + $0x38] sm:$0xff] %vm4453_vm6, %v7448_v5 }
  0x5a   : > { %6488 = vmatprep.mubr.msk.bf16.mxu0 %vm466_vm2, %v7844_v6  ;;  %v7933_v16 = vpack.c.bf16 %v1451_v14, %v1450_v13  ;;  %v1452_v19 = vld [vmem:[#allocation2 + $0x1c7] sm:$0xff]  ;;  %v1453_v20 = vld [vmem:[#allocation2 + $0x1cf] sm:$0xff]  ;;  %4507 = vst.msk [vmem:[#allocation4 + $0x48] sm:$0xff] %vm4453_vm6, %v7448_v5  ;;  %4508 = vst.msk [vmem:[#allocation4 + $0x50] sm:$0xff] %vm4453_vm6, %v7448_v5 }
  0x5b   : > { %v1454_v21 = vld [vmem:[#allocation2 + $0x1e7] sm:$0xff]  ;;  %v1455_v22 = vld [vmem:[#allocation2 + $0x1ef] sm:$0xff]  ;;  %v7939_v25 = vpack.c.bf16 %v1453_v20, %v1452_v19  ;;  %4510 = vst.msk [vmem:[#allocation4 + $0x60] sm:$0xff] %vm4453_vm6, %v7448_v5  ;;  %4511 = vst.msk [vmem:[#allocation4 + $0x68] sm:$0xff] %vm4453_vm6, %v7448_v5 }
  0x5c   : > { %v7941_v26 = vpack.c.bf16 %v1455_v22, %v1454_v21  ;;  %v1456_v27 = vld [vmem:[#allocation2 + $0x207] sm:$0xff]  ;;  %v1457_v28 = vld [vmem:[#allocation2 + $0x20f] sm:$0xff]  ;;  %4513 = vst.msk [vmem:[#allocation4 + $0x78] sm:$0xff] %vm4453_vm6, %v7448_v5  ;;  %4514 = vst.msk [vmem:[#allocation4 + $0x80] sm:$0xff] %vm4453_vm6, %v7448_v5 }
  0x5d   : > { %v1720_v31 = vld [vmem:[#allocation2 + $0x28] sm:$0xff]  ;;  %v1721_v32 = vld [vmem:[#allocation2 + $0x30] sm:$0xff]  ;;  %v7947_v33 = vpack.c.bf16 %v1457_v28, %v1456_v27  ;;  %4500 = vst.msk [vmem:[#allocation4 + $0x10] sm:$0x1] %vm4499_vm7, %v7448_v5  ;;  %4503 = vst.msk [vmem:[#allocation4 + $0x28] sm:$0x1] %vm4499_vm7, %v7448_v5 }
  0x5e   : > { %v1752_v34 = vpack.c.bf16 %v1721_v32, %v1720_v31  ;;  %v654_v43 = vld [vmem:[#allocation2 + $0x8] sm:$0xff]  ;;  %v655_v44 = vld [vmem:[#allocation2 + $0x10] sm:$0xff]  ;;  %4506 = vst.msk [vmem:[#allocation4 + $0x40] sm:$0x1] %vm4499_vm7, %v7448_v5  ;;  %4509 = vst.msk [vmem:[#allocation4 + $0x58] sm:$0x1] %vm4499_vm7, %v7448_v5 }
  0x5f   : > { %v1722_v45 = vld [vmem:[#allocation2 + $0x48] sm:$0xff]  ;;  %v1725_v52 = vld [vmem:[#allocation2 + $0x70] sm:$0xff]  ;;  %4512 = vst.msk [vmem:[#allocation4 + $0x70] sm:$0x1] %vm4499_vm7, %v7448_v5  ;;  %4515 = vst.msk [vmem:[#allocation4 + $0x88] sm:$0x1] %vm4499_vm7, %v7448_v5 }
  0x60   : > { %v1724_v51 = vld [vmem:[#allocation2 + $0x68] sm:$0xff]  ;;  %v1727_v0 = vld [vmem:[#allocation2 + $0x90] sm:$0xff] }
  0x61   : > { %6489 = vmatmul.mubr.msk.bf16.gmra.mrb[16].mxu0 %vm466_vm2, %v7851_v11  ;;  %v5897_v55 = vld [vmem:[%s8935_s1 + $0xc] sm:$0x3]  ;;  %v7962_v57 = vpack.c.bf16 %v1725_v52, %v1724_v51  ;;  %v1729_v3 = vld [vmem:[#allocation2 + $0xb0] sm:$0xff] }
  0x62   : > { %6492 = vmatprep.mubr.msk.bf16.mxu0 %vm466_vm2, %v7853_v12  ;;  %v7966_v58 = vand.u32 %v5897_v55, %v7585_v4  ;;  %v1726_v63 = vld [vmem:[#allocation2 + $0x88] sm:$0xff]  ;;  %v1731_v13 = vld [vmem:[#allocation2 + $0xd0] sm:$0xff] }
  0x63   : > { %v1728_v1 = vld [vmem:[#allocation2 + $0xa8] sm:$0xff]  ;;  %v7976_v9 = vpack.c.bf16 %v1727_v0, %v1726_v63  ;;  %v1733_v19 = vld [vmem:[#allocation2 + $0xf0] sm:$0xff] }
  0x64   : > { %v7978_v10 = vpack.c.bf16 %v1729_v3, %v1728_v1  ;;  %v1732_v14 = vld [vmem:[#allocation2 + $0xe8] sm:$0xff]  ;;  %v1735_v27 = vld [vmem:[#allocation2 + $0x110] sm:$0xff] }
  0x65   : > { %v7990_v21 = vpack.c.bf16 %v1733_v19, %v1732_v14  ;;  %v1734_v22 = vld [vmem:[#allocation2 + $0x108] sm:$0xff]  ;;  %v1737_v31 = vld [vmem:[#allocation2 + $0x130] sm:$0xff] }
  0x66   : > { %v1736_v28 = vld [vmem:[#allocation2 + $0x128] sm:$0xff]  ;;  %v8000_v32 = vpack.c.bf16 %v1735_v27, %v1734_v22  ;;  %v1739_v42 = vld [vmem:[#allocation2 + $0x150] sm:$0xff] }
  0x67   : > { %v1738_v35 = vld [vmem:[#allocation2 + $0x148] sm:$0xff]  ;;  %v1743_v51 = vld [vmem:[#allocation2 + $0x190] sm:$0xff] }
  0x68   : > { %v1744_v52 = vld [vmem:[#allocation2 + $0x1a8] sm:$0xff]  ;;  %v1745_v55 = vld [vmem:[#allocation2 + $0x1b0] sm:$0xff] }
  0x69   : > { %6493 = vmatmul.mubr.msk.bf16.gmra.mrb[20].mxu0 %vm466_vm2, %v7859_v17  ;;  %v8026_v0 = vpack.c.bf16 %v1745_v55, %v1744_v52  ;;  %v1746_v1 = vld [vmem:[#allocation2 + $0x1c8] sm:$0xff]  ;;  %v1747_v3 = vld [vmem:[#allocation2 + $0x1d0] sm:$0xff] }
  0x6a   : > { %6496 = vmatprep.mubr.msk.bf16.mxu0 %vm466_vm2, %v7861_v18  ;;  %v8036_v14 = vpack.c.bf16 %v1747_v3, %v1746_v1  ;;  %v1750_v22 = vld [vmem:[#allocation2 + $0x208] sm:$0xff]  ;;  %v1751_v27 = vld [vmem:[#allocation2 + $0x210] sm:$0xff] }
  0x6b   : > { %v2915_v52 = vld [vmem:[#allocation2 + $0x169] sm:$0xff]  ;;  %v2916_v55 = vld [vmem:[#allocation2 + $0x171] sm:$0xff] }
  0x6c   : > { %v2918_v1 = vld [vmem:[#allocation2 + $0x191] sm:$0xff] }
  0x71   : > { %6497 = vmatmul.mubr.msk.bf16.gmra.mrb[24].mxu0 %vm466_vm2, %v7867_v23 }
  0x72   : > { %6500 = vmatprep.mubr.msk.bf16.mxu0 %vm466_vm2, %v7869_v24 }
  0x79   : > { %6501 = vmatmul.mubr.msk.bf16.gmra.mrb[28].mxu0 %vm466_vm2, %v7875_v29 }
  0x7a   : > { %6506 = vmatprep.mubr.msk.bf16.mxu0 %vm466_vm2, %v7877_v30 }
  0x81   : > { %6507 = vmatmul.mubr.msk.bf16.vlgmr.msra.gmra.mrb[0].mxu0 %vm466_vm2, %v7886_v36 }
  0x82   : > { %6539 = vmatpush3.bf16.msra.mxu0 %v7799_v40  ;;  %6510 = vmatprep.mubr.msk.bf16.mxu0 %vm466_vm2, %v7888_v38  ;;  %v1436_v40 = vld [vmem:[#allocation2 + $0xc7] sm:$0xff] }
  0x83   : > { %6572 = vmatprep.subr.bf16.mxu0 %v7891_v39  ;;  %v7907_v53 = vpack.c.bf16 %v1437_v50, %v1436_v40  ;;  %v1723_v40 = vld [vmem:[#allocation2 + $0x50] sm:$0xff]  ;;  %v686_v50 = vpack.c.bf16 %v655_v44, %v654_v43  ;;  %v1740_v43 = vld [vmem:[#allocation2 + $0x168] sm:$0xff] }
  0x84   : > { %v7960_v56 = vpack.c.bf16 %v1723_v40, %v1722_v45  ;;  %v1741_v44 = vld [vmem:[#allocation2 + $0x170] sm:$0xff]  ;;  %v8012_v45 = vpack.c.bf16 %v1739_v42, %v1738_v35  ;;  %v605_v42 = vld [vmem:[#allocation2 + $0x7] sm:$0xff] }
  0x85   : > { %6404 = vmatprep.mubr.msk.bf16.mxu1 %vm466_vm2, %v686_v50  ;;  %v8014_v40 = vpack.c.bf16 %v1741_v44, %v1740_v43  ;;  %v1742_v50 = vld [vmem:[#allocation2 + $0x188] sm:$0xff] }
  0x86   : > { %6405 = vmatmul.mubr.msk.bf16.vlgmr.msra.gmra.mrb[0].mxu1 %vm466_vm2, %v1752_v34  ;;  %v8024_v63 = vpack.c.bf16 %v1743_v51, %v1742_v50  ;;  %v606_v43 = vld [vmem:[#allocation2 + $0xf] sm:$0xff] }
  0x87   : > { %6408 = vmatprep.mubr.msk.bf16.mxu1 %vm466_vm2, %v7960_v56  ;;  %v637_v44 = vpack.c.bf16 %v606_v43, %v605_v42  ;;  %v5914_v50 = vld [vmem:[%s8935_s1 + $0xe] sm:$0x3] }
  0x88   : > { %v2702_v51 = vand.u32 %v5914_v50, %v7585_v4 }
  0x89   : > { %6511 = vmatmul.mubr.msk.bf16.gmra.mrb[4].mxu0 %vm466_vm2, %v7899_v46 }
  0x8a   : > { %6514 = vmatprep.mubr.msk.bf16.mxu0 %vm466_vm2, %v7901_v47 }
  0x8e   : > { %6409 = vmatmul.mubr.msk.bf16.gmra.mrb[4].mxu1 %vm466_vm2, %v7962_v57 }
  0x8f   : > { %6412 = vmatprep.mubr.msk.bf16.mxu1 %vm466_vm2, %v7976_v9 }
  0x91   : > { %6515 = vmatmul.mubr.msk.bf16.gmra.mrb[8].mxu0 %vm466_vm2, %v7907_v53 }
  0x92   : > { %6518 = vmatprep.mubr.msk.bf16.mxu0 %vm466_vm2, %v7909_v54 }
  0x96   : > { %6413 = vmatmul.mubr.msk.bf16.gmra.mrb[8].mxu1 %vm466_vm2, %v7978_v10 }
  0x99   : > { %6519 = vmatmul.mubr.msk.bf16.gmra.mrb[12].mxu0 %vm466_vm2, %v7915_v61 }
  0x9a   : > { %6522 = vmatprep.mubr.msk.bf16.mxu0 %vm466_vm2, %v7917_v62 }
  0xa1   : > { %6523 = vmatmul.mubr.msk.bf16.gmra.mrb[16].mxu0 %vm466_vm2, %v7923_v7 }
  0xa2   : > { %6526 = vmatprep.mubr.msk.bf16.mxu0 %vm466_vm2, %v7925_v8 }
  0xa9   : > { %6527 = vmatmul.mubr.msk.bf16.gmra.mrb[20].mxu0 %vm466_vm2, %v7931_v15 }
  0xaa   : > { %6530 = vmatprep.mubr.msk.bf16.mxu0 %vm466_vm2, %v7933_v16 }
  0xb1   : > { %6531 = vmatmul.mubr.msk.bf16.gmra.mrb[24].mxu0 %vm466_vm2, %v7939_v25 }
  0xb2   : > { %6534 = vmatprep.mubr.msk.bf16.mxu0 %vm466_vm2, %v7941_v26 }
  0xb9   : > { %6535 = vmatmul.mubr.msk.bf16.gmra.mrb[28].mxu0 %vm466_vm2, %v7947_v33 }
  0xba   : > { %6540 = vmatprep.mubr.msk.bf16.mxu0 %vm466_vm2, %v1752_v34  ;;  %v8002_v34 = vpack.c.bf16 %v1737_v31, %v1736_v28  ;;  %v8048_v28 = vpack.c.bf16 %v1751_v27, %v1750_v22  ;;  %v653_v31 = vld [vmem:[%s8935_s1] sm:$0x3]  ;;  %v2919_v22 = vld [vmem:[#allocation2 + $0x1a9] sm:$0xff]  ;;  %v2920_v27 = vld [vmem:[#allocation2 + $0x1b1] sm:$0xff] }
  0xbb   : > { %v969_v35 = vand.u32 %v7585_v4, %v653_v31  ;;  %v2921_v31 = vld [vmem:[#allocation2 + $0x1c9] sm:$0xff] }
  0xbd   : > { %6436 = vmatprep.subr.bf16.mxu1 %v969_v35 }
  0xbe   : > { %6437 = vmatpush3.bf16.msra.mxu1 %v969_v35  ;;  %v2922_v35 = vld [vmem:[#allocation2 + $0x1d1] sm:$0xff] }
  0xbf   : > { %v2941_v50 = vpack.c.bf16 %v2922_v35, %v2921_v31 }
  0xc1   : > { %6541 = vmatmul.mubr.msk.bf16.vlgmr.msra.gmra.mrb[0].mxu0 %vm466_vm2, %v7960_v56 }
  0xc2   : > { %6573 = vmatpush3.bf16.msra.mxu0 %v7891_v39  ;;  %6544 = vmatprep.mubr.msk.bf16.mxu0 %vm466_vm2, %v7962_v57  ;;  %v1730_v39 = vld [vmem:[#allocation2 + $0xc8] sm:$0xff] }
  0xc3   : > { %6606 = vmatprep.subr.bf16.mxu0 %v7966_v58  ;;  %v7988_v20 = vpack.c.bf16 %v1731_v13, %v1730_v39  ;;  %v1748_v39 = vld [vmem:[#allocation2 + $0x1e8] sm:$0xff]  ;;  %v1749_v13 = vld [vmem:[#allocation2 + $0x1f0] sm:$0xff] }
  0xc4   : > { %v8038_v19 = vpack.c.bf16 %v1749_v13, %v1748_v39  ;;  %v2938_v13 = vpack.c.bf16 %v2916_v55, %v2915_v52 }
  0xc5   : > { %6416 = vmatprep.mubr.msk.bf16.mxu1 %vm466_vm2, %v7988_v20 }
  0xc6   : > { %6417 = vmatmul.mubr.msk.bf16.gmra.mrb[12].mxu1 %vm466_vm2, %v7990_v21 }
  0xc7   : > { %6420 = vmatprep.mubr.msk.bf16.mxu1 %vm466_vm2, %v8000_v32 }
  0xc9   : > { %6545 = vmatmul.mubr.msk.bf16.gmra.mrb[4].mxu0 %vm466_vm2, %v7976_v9 }
  0xca   : > { %6548 = vmatprep.mubr.msk.bf16.mxu0 %vm466_vm2, %v7978_v10 }
  0xce   : > { %6421 = vmatmul.mubr.msk.bf16.gmra.mrb[16].mxu1 %vm466_vm2, %v8002_v34 }
  0xcf   : > { %6424 = vmatprep.mubr.msk.bf16.mxu1 %vm466_vm2, %v8012_v45 }
  0xd1   : > { %6549 = vmatmul.mubr.msk.bf16.gmra.mrb[8].mxu0 %vm466_vm2, %v7988_v20 }
  0xd2   : > { %6552 = vmatprep.mubr.msk.bf16.mxu0 %vm466_vm2, %v7990_v21 }
  0xd6   : > { %6425 = vmatmul.mubr.msk.bf16.gmra.mrb[20].mxu1 %vm466_vm2, %v8014_v40 }
  0xd7   : > { %6428 = vmatprep.mubr.msk.bf16.mxu1 %vm466_vm2, %v8024_v63 }
  0xd9   : > { %6553 = vmatmul.mubr.msk.bf16.gmra.mrb[12].mxu0 %vm466_vm2, %v8000_v32 }
  0xda   : > { %6556 = vmatprep.mubr.msk.bf16.mxu0 %vm466_vm2, %v8002_v34 }
  0xde   : > { %6429 = vmatmul.mubr.msk.bf16.gmra.mrb[24].mxu1 %vm466_vm2, %v8026_v0 }
  0xdf   : > { %6432 = vmatprep.mubr.msk.bf16.mxu1 %vm466_vm2, %v8036_v14 }
  0xe1   : > { %6557 = vmatmul.mubr.msk.bf16.gmra.mrb[16].mxu0 %vm466_vm2, %v8012_v45 }
  0xe2   : > { %6560 = vmatprep.mubr.msk.bf16.mxu0 %vm466_vm2, %v8014_v40 }
  0xe6   : > { %6433 = vmatmul.mubr.msk.bf16.gmra.mrb[28].mxu1 %vm466_vm2, %v8038_v19 }
  0xe7   : > { %6438 = vmatprep.mubr.msk.bf16.mxu1 %vm466_vm2, %v637_v44  ;;  %v2940_v44 = vpack.c.bf16 %v2920_v27, %v2919_v22 }
  0xe9   : > { %6561 = vmatmul.mubr.msk.bf16.gmra.mrb[20].mxu0 %vm466_vm2, %v8024_v63 }
  0xea   : > { %6564 = vmatprep.mubr.msk.bf16.mxu0 %vm466_vm2, %v8026_v0 }
  0xee   : > { %6439 = vmatmul.mubr.msk.bf16.vlgmr.msra.gmra.mrb[0].mxu1 %vm466_vm2, %v7877_v30  ;;  %v2901_v30 = vld [vmem:[#allocation2 + $0x89] sm:$0xff] }
  0xef   : > { %6442 = vmatprep.mubr.msk.bf16.mxu1 %vm466_vm2, %v7886_v36 }
  0xf1   : > { %6565 = vmatmul.mubr.msk.bf16.gmra.mrb[24].mxu0 %vm466_vm2, %v8036_v14 }
  0xf2   : > { %6568 = vmatprep.mubr.msk.bf16.mxu0 %vm466_vm2, %v8038_v19 }
  0xf6   : > { %6443 = vmatmul.mubr.msk.bf16.gmra.mrb[4].mxu1 %vm466_vm2, %v7888_v38 }
  0xf7   : > { %6446 = vmatprep.mubr.msk.bf16.mxu1 %vm466_vm2, %v7899_v46 }
  0xf9   : > { %6569 = vmatmul.mubr.msk.bf16.gmra.mrb[28].mxu0 %vm466_vm2, %v8048_v28 }
  0xfa   : > { %6574 = vmatprep.mubr.msk.bf16.mxu0 %vm466_vm2, %v7795_v37  ;;  %v2044_v37 = vld [vmem:[#allocation2 + $0x209] sm:$0xff] }
  0xfe   : > { %6447 = vmatmul.mubr.msk.bf16.gmra.mrb[8].mxu1 %vm466_vm2, %v7901_v47 }
  0xff   : > { %6450 = vmatprep.mubr.msk.bf16.mxu1 %vm466_vm2, %v7907_v53 }
 0x101   : > { %6575 = vmatmul.mubr.msk.bf16.vlgmr.msra.gmra.mrb[0].mxu0 %vm466_vm2, %v7801_v41  ;;  %v2045_v41 = vld [vmem:[#allocation2 + $0x211] sm:$0xff] }
 0x102   : > { %6607 = vmatpush3.bf16.msra.mxu0 %v7966_v58  ;;  %6578 = vmatprep.mubr.msk.bf16.mxu0 %vm466_vm2, %v7813_v48  ;;  %v8122_v48 = vpack.c.bf16 %v2045_v41, %v2044_v37  ;;  %v2912_v58 = vld [vmem:[#allocation2 + $0x131] sm:$0xff]  ;;  %v2923_v37 = vld [vmem:[#allocation2 + $0x1e9] sm:$0xff] }
 0x103   : > { %6640 = vmatprep.subr.bf16.mxu0 %v2702_v51  ;;  %v2924_v41 = vld [vmem:[#allocation2 + $0x1f1] sm:$0xff] }
 0x106   : > { %6451 = vmatmul.mubr.msk.bf16.gmra.mrb[12].mxu1 %vm466_vm2, %v7909_v54 }
 0x107   : > { %6454 = vmatprep.mubr.msk.bf16.mxu1 %vm466_vm2, %v7915_v61 }
 0x109   : > { %6579 = vmatmul.mubr.msk.bf16.gmra.mrb[4].mxu0 %vm466_vm2, %v7815_v49  ;;  %v5931_v49 = vld [vmem:[%s8935_s1 + $0x10] sm:$0x3]  ;;  %s8873_s1 = scalar_lea.hbm %s8929_s14, %s6135_s25 }
 0x10a   : > { %6582 = vmatprep.mubr.msk.bf16.mxu0 %vm466_vm2, %v7831_v59  ;;  %v2996_v59 = vand.u32 %v5931_v49, %v7585_v4  ;;  %v2339_v4 = vld [vmem:[#allocation2 + $0x227] sm:$0xff] }
 0x10e   : > { %6455 = vmatmul.mubr.msk.bf16.gmra.mrb[16].mxu1 %vm466_vm2, %v7917_v62 }
 0x10f   : > { %6458 = vmatprep.mubr.msk.bf16.mxu1 %vm466_vm2, %v7923_v7 }
 0x111   : > { %6583 = vmatmul.mubr.msk.bf16.gmra.mrb[8].mxu0 %vm466_vm2, %v7833_v60  ;;  %v2340_v60 = vld [vmem:[#allocation2 + $0x22f] sm:$0xff] }
 0x112   : > { %6586 = vmatprep.mubr.msk.bf16.mxu0 %vm466_vm2, %v7840_v2  ;;  %v2356_v2 = vpack.c.bf16 %v2340_v60, %v2339_v4  ;;  %v2942_v60 = vpack.c.bf16 %v2924_v41, %v2923_v37 }
 0x116   : > { %6459 = vmatmul.mubr.msk.bf16.gmra.mrb[20].mxu1 %vm466_vm2, %v7925_v8 }
 0x117   : > { %6462 = vmatprep.mubr.msk.bf16.mxu1 %vm466_vm2, %v7931_v15 }
 0x119   : > { %6587 = vmatmul.mubr.msk.bf16.gmra.mrb[12].mxu0 %vm466_vm2, %v7844_v6  ;;  %v2633_v6 = vld [vmem:[#allocation2 + $0x228] sm:$0xff] }
 0x11a   : > { %6590 = vmatprep.mubr.msk.bf16.mxu0 %vm466_vm2, %v7851_v11  ;;  %v2634_v11 = vld [vmem:[#allocation2 + $0x230] sm:$0xff] }
 0x11e   : > { %6463 = vmatmul.mubr.msk.bf16.gmra.mrb[24].mxu1 %vm466_vm2, %v7933_v16 }
 0x11f   : > { %6466 = vmatprep.mubr.msk.bf16.mxu1 %vm466_vm2, %v7939_v25 }
 0x121   : > { %6591 = vmatmul.mubr.msk.bf16.gmra.mrb[16].mxu0 %vm466_vm2, %v7853_v12  ;;  %v2897_v12 = vld [vmem:[#allocation2 + $0x49] sm:$0xff] }
 0x122   : > { %6594 = vmatprep.mubr.msk.bf16.mxu0 %vm466_vm2, %v7859_v17  ;;  %v2898_v17 = vld [vmem:[#allocation2 + $0x51] sm:$0xff] }
 0x126   : > { %6467 = vmatmul.mubr.msk.bf16.gmra.mrb[28].mxu1 %vm466_vm2, %v7941_v26 }
 0x129   : > { %6595 = vmatmul.mubr.msk.bf16.gmra.mrb[20].mxu0 %vm466_vm2, %v7861_v18  ;;  %v2650_v18 = vpack.c.bf16 %v2634_v11, %v2633_v6  ;;  %v2927_v6 = vld [vmem:[#allocation2 + $0x229] sm:$0xff]  ;;  %v2928_v11 = vld [vmem:[#allocation2 + $0x231] sm:$0xff] }
 0x12a   : > { %6598 = vmatprep.mubr.msk.bf16.mxu0 %vm466_vm2, %v7867_v23  ;;  %v2929_v23 = vpack.c.bf16 %v2898_v17, %v2897_v12 }
 0x131   : > { %6599 = vmatmul.mubr.msk.bf16.gmra.mrb[24].mxu0 %vm466_vm2, %v7869_v24  ;;  %v2899_v24 = vld [vmem:[#allocation2 + $0x69] sm:$0xff] }
 0x132   : > { %6602 = vmatprep.mubr.msk.bf16.mxu0 %vm466_vm2, %v7875_v29  ;;  %v2900_v29 = vld [vmem:[#allocation2 + $0x71] sm:$0xff] }
 0x139   : > { %6603 = vmatmul.mubr.msk.bf16.gmra.mrb[28].mxu0 %vm466_vm2, %v8122_v48 }
 0x13a   : > { %6608 = vmatprep.mubr.msk.bf16.mxu0 %vm466_vm2, %v7886_v36  ;;  %v2902_v36 = vld [vmem:[#allocation2 + $0x91] sm:$0xff] }
 0x141   : > { %6609 = vmatmul.mubr.msk.bf16.vlgmr.msra.gmra.mrb[0].mxu0 %vm466_vm2, %v7888_v38  ;;  %v2930_v38 = vpack.c.bf16 %v2900_v29, %v2899_v24 }
 0x142   : > { %6641 = vmatpush3.bf16.msra.mxu0 %v2702_v51  ;;  %6612 = vmatprep.mubr.msk.bf16.mxu0 %vm466_vm2, %v7899_v46  ;;  %v2931_v46 = vpack.c.bf16 %v2902_v36, %v2901_v30 }
 0x143   : > { %6674 = vmatprep.subr.bf16.mxu0 %v2996_v59 }
 0x149   : > { %6613 = vmatmul.mubr.msk.bf16.gmra.mrb[4].mxu0 %vm466_vm2, %v7901_v47  ;;  %v2903_v47 = vld [vmem:[#allocation2 + $0xa9] sm:$0xff] }
 0x14a   : > { %6616 = vmatprep.mubr.msk.bf16.mxu0 %vm466_vm2, %v7907_v53  ;;  %v2904_v53 = vld [vmem:[#allocation2 + $0xb1] sm:$0xff] }
 0x151   : > { %6617 = vmatmul.mubr.msk.bf16.gmra.mrb[8].mxu0 %vm466_vm2, %v7909_v54  ;;  %v2905_v54 = vld [vmem:[#allocation2 + $0xc9] sm:$0xff] }
 0x152   : > { %6620 = vmatprep.mubr.msk.bf16.mxu0 %vm466_vm2, %v7915_v61  ;;  %v2906_v61 = vld [vmem:[#allocation2 + $0xd1] sm:$0xff] }
 0x159   : > { %6621 = vmatmul.mubr.msk.bf16.gmra.mrb[12].mxu0 %vm466_vm2, %v7917_v62  ;;  %v2932_v62 = vpack.c.bf16 %v2904_v53, %v2903_v47 }
 0x15a   : > { %6624 = vmatprep.mubr.msk.bf16.mxu0 %vm466_vm2, %v7923_v7  ;;  %v2933_v7 = vpack.c.bf16 %v2906_v61, %v2905_v54 }
 0x161   : > { %6625 = vmatmul.mubr.msk.bf16.gmra.mrb[16].mxu0 %vm466_vm2, %v7925_v8  ;;  %v2907_v8 = vld [vmem:[#allocation2 + $0xe9] sm:$0xff] }
 0x162   : > { %6628 = vmatprep.mubr.msk.bf16.mxu0 %vm466_vm2, %v7931_v15  ;;  %v2908_v15 = vld [vmem:[#allocation2 + $0xf1] sm:$0xff] }
 0x169   : > { %6629 = vmatmul.mubr.msk.bf16.gmra.mrb[20].mxu0 %vm466_vm2, %v7933_v16  ;;  %v2909_v16 = vld [vmem:[#allocation2 + $0x109] sm:$0xff] }
 0x16a   : > { %6632 = vmatprep.mubr.msk.bf16.mxu0 %vm466_vm2, %v7939_v25  ;;  %v2910_v25 = vld [vmem:[#allocation2 + $0x111] sm:$0xff] }
 0x171   : > { %6633 = vmatmul.mubr.msk.bf16.gmra.mrb[24].mxu0 %vm466_vm2, %v7941_v26  ;;  %v2934_v26 = vpack.c.bf16 %v2908_v15, %v2907_v8  ;;  %v8331_v8 = vld [vmem:[%s8919_s4] sm:$0xff]  }
 0x172   : > { %6636 = vmatprep.mubr.msk.bf16.mxu0 %vm466_vm2, %v7947_v33  ;;  %v2935_v33 = vpack.c.bf16 %v2910_v25, %v2909_v16  ;;  %v8337_v16 = vld [vmem:[%s8937_s2] ss:$0 sm:$0xff]  ;;  %s7387_s2 = sshll.u32 %s7450_s21, 4  ;;  %s7388_s2 = int_to_ptr.vmem [resolvable:$false] %s7387_s2 }
 0x173   : > { %s7389_s0 = scalar_lea.vmem %s7388_s2, 32  ;;  %p7390_p0 = scmp.lt.s32.totalorder %s8875_s27, %s7388_s2 }
 0x174   : > { %p7391_p1 = scmp.lt.s32.totalorder %s7389_s0, %s7383_s20 }
 0x176   : > { %p7392_p2 = por %p7391_p1, %p7390_p0 }
 0x178   : > { %p7393_p3 = pnand %p7392_p2, %p7386_p13 }
 0x179   : > { %6637 = vmatmul.mubr.msk.bf16.gmra.mrb[28].mxu0 %vm466_vm2, %v2356_v2 }
 0x17a   : > { %6642 = vmatprep.mubr.msk.bf16.mxu0 %vm466_vm2, %v7960_v56 }
 0x181   : > { %6643 = vmatmul.mubr.msk.bf16.vlgmr.msra.gmra.mrb[0].mxu0 %vm466_vm2, %v7962_v57  ;;  %v2911_v57 = vld [vmem:[#allocation2 + $0x129] sm:$0xff] }
 0x182   : > { %6675 = vmatpush3.bf16.msra.mxu0 %v2996_v59  ;;  %6646 = vmatprep.mubr.msk.bf16.mxu0 %vm466_vm2, %v7976_v9 }
 0x189   : > { %6647 = vmatmul.mubr.msk.bf16.gmra.mrb[4].mxu0 %vm466_vm2, %v7978_v10  ;;  %v2913_v10 = vld [vmem:[#allocation2 + $0x149] sm:$0xff] }
 0x18a   : > { %6650 = vmatprep.mubr.msk.bf16.mxu0 %vm466_vm2, %v7988_v20  ;;  %v2914_v20 = vld [vmem:[#allocation2 + $0x151] sm:$0xff] }
 0x191   : > { %6651 = vmatmul.mubr.msk.bf16.gmra.mrb[8].mxu0 %vm466_vm2, %v7990_v21 }
 0x192   : > { %6654 = vmatprep.mubr.msk.bf16.mxu0 %vm466_vm2, %v8000_v32 }
 0x199   : > { %6655 = vmatmul.mubr.msk.bf16.gmra.mrb[12].mxu0 %vm466_vm2, %v8002_v34  ;;  %v2936_v34 = vpack.c.bf16 %v2912_v58, %v2911_v57 }
 0x19a   : > { %6658 = vmatprep.mubr.msk.bf16.mxu0 %vm466_vm2, %v8012_v45  ;;  %v2937_v45 = vpack.c.bf16 %v2914_v20, %v2913_v10 }
 0x1a1   : > { %6659 = vmatmul.mubr.msk.bf16.gmra.mrb[16].mxu0 %vm466_vm2, %v8014_v40 }
 0x1a2   : > { %6662 = vmatprep.mubr.msk.bf16.mxu0 %vm466_vm2, %v8024_v63 }
 0x1a9   : > { %6663 = vmatmul.mubr.msk.bf16.gmra.mrb[20].mxu0 %vm466_vm2, %v8026_v0  ;;  %v2917_v0 = vld [vmem:[#allocation2 + $0x189] sm:$0xff] }
 0x1aa   : > { %6666 = vmatprep.mubr.msk.bf16.mxu0 %vm466_vm2, %v8036_v14  ;;  %v2939_v14 = vpack.c.bf16 %v2918_v1, %v2917_v0 }
 0x1b1   : > { %6667 = vmatmul.mubr.msk.bf16.gmra.mrb[24].mxu0 %vm466_vm2, %v8038_v19 }
 0x1b2   : > { %6670 = vmatprep.mubr.msk.bf16.mxu0 %vm466_vm2, %v8048_v28 }
 0x1b9   : > { %6671 = vmatmul.mubr.msk.bf16.gmra.mrb[28].mxu0 %vm466_vm2, %v2650_v18 }
 0x1ba   : > { %6676 = vmatprep.mubr.msk.bf16.mxu0 %vm466_vm2, %v2929_v23  ;;  %v2944_v23 = vpack.c.bf16 %v2928_v11, %v2927_v6 }
 0x1c1   : > { %6677 = vmatmul.mubr.msk.bf16.vlgmr.msra.gmra.mrb[0].mxu0 %vm466_vm2, %v2930_v38  ;;  %v8200_v56 = vpop.f32.mrb[0].mxu1 }
 0x1c2   : > { %6680 = vmatprep.mubr.msk.bf16.mxu0 %vm466_vm2, %v2931_v46  ;;  %v8203_v9 = vpop.f32.mrb[1].mxu1 }
 0x1c3   : > { %v8205_v21 = vpop.f32.mrb[2].mxu1 }
 0x1c4   : > { %v8207_v32 = vpop.f32.mrb[3].mxu1 }
 0x1c9   : > { %6681 = vmatmul.mubr.msk.bf16.gmra.mrb[4].mxu0 %vm466_vm2, %v2932_v62  ;;  %v8210_v40 = vpop.f32.mrb[4].mxu1 }
 0x1ca   : > { %6684 = vmatprep.mubr.msk.bf16.mxu0 %vm466_vm2, %v2933_v7  ;;  %v8213_v63 = vpop.f32.mrb[5].mxu1  ;;  %v7332_v7 = vld [vmem:[%s8919_s4 + $0x8] sm:$0xff]  }
 0x1cb   : > { %v8215_v3 = vpop.f32.mrb[6].mxu1  ;;  %6708 = vmatprep.subr.bf16.mxu1 %v7332_v7 }
 0x1cc   : > { %v8217_v39 = vpop.f32.mrb[7].mxu1  ;;  %6709 = vmatpush3.bf16.msra.mxu1 %v7332_v7 }
 0x1cd   : > { %6718 = vmatprep.subr.bf16.mxu1 %v8331_v8 }
 0x1d1   : > { %6685 = vmatmul.mubr.msk.bf16.gmra.mrb[8].mxu0 %vm466_vm2, %v2934_v26  ;;  %v8220_v19 = vpop.f32.mrb[8].mxu1 }
 0x1d2   : > { %6688 = vmatprep.mubr.msk.bf16.mxu0 %vm466_vm2, %v2935_v33  ;;  %v8223_v28 = vpop.f32.mrb[9].mxu1  ;;  %v8343_v33 = vld [vmem:[%s8918_s3] ss:$0 sm:$0xff] }
 0x1d3   : > { %v8225_v42 = vpop.f32.mrb[10].mxu1 }
 0x1d4   : > { %v8227_v43 = vpop.f32.mrb[11].mxu1 }
 0x1d9   : > { %6689 = vmatmul.mubr.msk.bf16.gmra.mrb[12].mxu0 %vm466_vm2, %v2936_v34  ;;  %v8230_v51 = vpop.f32.mrb[12].mxu1 }
 0x1da   : > { %6692 = vmatprep.mubr.msk.bf16.mxu0 %vm466_vm2, %v2937_v45  ;;  %v8233_v49 = vpop.f32.mrb[13].mxu1 }
 0x1db   : > { %v8235_v59 = vpop.f32.mrb[14].mxu1 }
 0x1dc   : > { %v8237_v4 = vpop.f32.mrb[15].mxu1 }
 0x1e1   : > { %6693 = vmatmul.mubr.msk.bf16.gmra.mrb[16].mxu0 %vm466_vm2, %v2938_v13  ;;  %v8240_v2 = vpop.f32.mrb[16].mxu1 }
 0x1e2   : > { %6696 = vmatprep.mubr.msk.bf16.mxu0 %vm466_vm2, %v2939_v14  ;;  %v8244_v12 = vpop.f32.mrb[17].mxu1 }
 0x1e3   : > { %v8246_v17 = vpop.f32.mrb[18].mxu1 }
 0x1e4   : > { %v8248_v18 = vpop.f32.mrb[19].mxu1 }
 0x1e9   : > { %6697 = vmatmul.mubr.msk.bf16.gmra.mrb[20].mxu0 %vm466_vm2, %v2940_v44  ;;  %v8251_v24 = vpop.f32.mrb[20].mxu1 }
 0x1ea   : > { %6700 = vmatprep.mubr.msk.bf16.mxu0 %vm466_vm2, %v2941_v50  ;;  %v8253_v29 = vpop.f32.mrb[21].mxu1 }
 0x1eb   : > { %v8255_v30 = vpop.f32.mrb[22].mxu1 }
 0x1ec   : > { %v8257_v36 = vpop.f32.mrb[23].mxu1 }
 0x1f1   : > { %6701 = vmatmul.mubr.msk.bf16.gmra.mrb[24].mxu0 %vm466_vm2, %v2942_v60 }
 0x1f2   : > { %6704 = vmatprep.mubr.msk.bf16.mxu0 %vm466_vm2, %v8122_v48  ;;  %v8259_v48 = vpop.f32.mrb[24].mxu1 }
 0x1f3   : > { %v8261_v38 = vpop.f32.mrb[25].mxu1 }
 0x1f4   : > { %v8263_v46 = vpop.f32.mrb[26].mxu1 }
 0x1f5   : > { %v8265_v47 = vpop.f32.mrb[27].mxu1 }
 0x1f9   : > { %6705 = vmatmul.mubr.msk.bf16.gmra.mrb[28].mxu0 %vm466_vm2, %v2944_v23  ;;  %v8267_v53 = vpop.f32.mrb[28].mxu1 }
 0x1fa   : > { %v8269_v54 = vpop.f32.mrb[29].mxu1 }
 0x1fb   : > { %v8271_v61 = vpop.f32.mrb[30].mxu1 }
 0x1fc   : > { %v8273_v62 = vpop.f32.mrb[31].mxu1 }
 0x294   : > { %v6678_v15 = vpop.f32.mrb[0].mxu0 }
 0x295   : > { %v6938_v25 = vadd.f32 %v6678_v15, %v8200_v56  ;;  %v3032_v26 = vpop.f32.mrb[1].mxu0 }
 0x296   : > { %v6939_v57 = vadd.f32 %v3032_v26, %v8203_v9  ;;  %v6679_v58 = vpop.f32.mrb[2].mxu0 }
 0x297   : > { %v3200_v10 = vmul.f32 %v6938_v25, %v8337_v16  ;;  %v6940_v20 = vadd.f32 %v6679_v58, %v8205_v21  ;;  %v3035_v34 = vpop.f32.mrb[3].mxu0 }
 0x298   : > { %v3198_v45 = vmul.f32 %v6939_v57, %v8337_v16  ;;  %v6941_v52 = vadd.f32 %v3035_v34, %v8207_v32 }
 0x299   : > { %v3239_v56 = vadd.f32 %v8343_v33, %v3200_v10  ;;  %v3201_v55 = vmul.f32 %v6940_v20, %v8337_v16 }
 0x29a   : > { %v3237_v0 = vadd.f32 %v8343_v33, %v3198_v45  ;;  %v3199_v1 = vmul.f32 %v6941_v52, %v8337_v16 }
 0x29b   : > { %v3271_v13 = vmax.f32 %v3239_v56, 0.0  ;;  %v3240_v9 = vadd.f32 %v8343_v33, %v3201_v55 }
 0x29c   : > { %v3269_v14 = vmax.f32 %v3237_v0, 0.0  ;;  %v3238_v22 = vadd.f32 %v8343_v33, %v3199_v1  ;;  %v6682_v21 = vpop.f32.mrb[4].mxu0 }
 0x29d   : > { %3304 = vst.msk [vmem:[#allocation5 + $0x10] sm:$0xff] %vm3301_vm4, %v3271_v13  ;;  %v3272_v27 = vmax.f32 %v3240_v9, 0.0  ;;  %v6942_v32 = vadd.f32 %v6682_v21, %v8210_v40  ;;  %v3048_v31 = vpop.f32.mrb[5].mxu0 }
 0x29e   : > { %3302 = vst.msk [vmem:[#allocation5] sm:$0xff] %vm3301_vm4, %v3269_v14  ;;  %v3270_v35 = vmax.f32 %v3238_v22, 0.0  ;;  %v6943_v44 = vadd.f32 %v3048_v31, %v8213_v63  ;;  %v6683_v50 = vpop.f32.mrb[6].mxu0 }
 0x29f   : > { %3305 = vst.msk [vmem:[#allocation5 + $0x18] sm:$0xff] %vm3301_vm4, %v3272_v27  ;;  %v3204_v37 = vmul.f32 %v6942_v32, %v8337_v16  ;;  %v6944_v41 = vadd.f32 %v6683_v50, %v8215_v3  ;;  %v3051_v60 = vpop.f32.mrb[7].mxu0 }
 0x2a0   : > { %3303 = vst.msk [vmem:[#allocation5 + $0x8] sm:$0xff] %vm3301_vm4, %v3270_v35  ;;  %v3202_v6 = vmul.f32 %v6943_v44, %v8337_v16  ;;  %v6945_v40 = vadd.f32 %v3051_v60, %v8217_v39 }
 0x2a1   : > { %v3243_v11 = vadd.f32 %v8343_v33, %v3204_v37  ;;  %v3205_v23 = vmul.f32 %v6944_v41, %v8337_v16 }
 0x2a2   : > { %v3241_v63 = vadd.f32 %v8343_v33, %v3202_v6  ;;  %v3203_v7 = vmul.f32 %v6945_v40, %v8337_v16 }
 0x2a3   : > { %v3275_v15 = vmax.f32 %v3243_v11, 0.0  ;;  %v3244_v25 = vadd.f32 %v8343_v33, %v3205_v23 }
 0x2a4   : > { %v3350_v26 = vld [vmem:[#allocation5 + $0x10] sm:$0xff]  ;;  %v3273_v3 = vmax.f32 %v3241_v63, 0.0  ;;  %v3242_v57 = vadd.f32 %v8343_v33, %v3203_v7  ;;  %v6686_v58 = vpop.f32.mrb[8].mxu0 }
 0x2a5   : > { %v3334_v10 = vld [vmem:[#allocation5] sm:$0xff]  ;;  %3308 = vst.msk [vmem:[#allocation5 + $0x30] sm:$0xff] %vm3301_vm4, %v3275_v15  ;;  %v3276_v39 = vmax.f32 %v3244_v25, 0.0  ;;  %v6946_v20 = vadd.f32 %v6686_v58, %v8220_v19  ;;  %v3064_v34 = vpop.f32.mrb[9].mxu0 }
 0x2a6   : > { %v3366_v45 = vmax.f32 %v3334_v10, %v3350_v26  ;;  %v3351_v52 = vld [vmem:[#allocation5 + $0x18] sm:$0xff]  ;;  %3306 = vst.msk [vmem:[#allocation5 + $0x20] sm:$0xff] %vm3301_vm4, %v3273_v3  ;;  %v3274_v56 = vmax.f32 %v3242_v57, 0.0  ;;  %v6947_v55 = vadd.f32 %v3064_v34, %v8223_v28  ;;  %v6687_v0 = vpop.f32.mrb[10].mxu0 }
 0x2a7   : > { %v3335_v1 = vld [vmem:[#allocation5 + $0x8] sm:$0xff]  ;;  %3309 = vst.msk [vmem:[#allocation5 + $0x38] sm:$0xff] %vm3301_vm4, %v3276_v39  ;;  %v3208_v13 = vmul.f32 %v6946_v20, %v8337_v16  ;;  %v6948_v9 = vadd.f32 %v6687_v0, %v8225_v42  ;;  %v3067_v14 = vpop.f32.mrb[11].mxu0 }
 0x2a8   : > { %3382 = vst.msk [vmem:[#allocation5] sm:$0xff] %vm3301_vm4, %v3366_v45  ;;  %v3367_v19 = vmax.f32 %v3335_v1, %v3351_v52  ;;  %3307 = vst.msk [vmem:[#allocation5 + $0x28] sm:$0xff] %vm3301_vm4, %v3274_v56  ;;  %v3206_v22 = vmul.f32 %v6947_v55, %v8337_v16  ;;  %v6949_v21 = vadd.f32 %v3067_v14, %v8227_v43 }
 0x2a9   : > { %v3247_v28 = vadd.f32 %v8343_v33, %v3208_v13  ;;  %v3209_v27 = vmul.f32 %v6948_v9, %v8337_v16 }
 0x2aa   : > { %3383 = vst.msk [vmem:[#allocation5 + $0x8] sm:$0xff] %vm3301_vm4, %v3367_v19  ;;  %v3245_v32 = vadd.f32 %v8343_v33, %v3206_v22  ;;  %v3207_v42 = vmul.f32 %v6949_v21, %v8337_v16 }
 0x2ab   : > { %v3279_v31 = vmax.f32 %v3247_v28, 0.0  ;;  %v3248_v35 = vadd.f32 %v8343_v33, %v3209_v27 }
 0x2ac   : > { %v3352_v44 = vld [vmem:[#allocation5 + $0x30] sm:$0xff]  ;;  %v3277_v50 = vmax.f32 %v3245_v32, 0.0  ;;  %v3246_v37 = vadd.f32 %v8343_v33, %v3207_v42  ;;  %v6690_v41 = vpop.f32.mrb[12].mxu0 }
 0x2ad   : > { %v3336_v60 = vld [vmem:[#allocation5 + $0x20] sm:$0xff]  ;;  %3312 = vst.msk [vmem:[#allocation5 + $0x50] sm:$0xff] %vm3301_vm4, %v3279_v31  ;;  %v3280_v43 = vmax.f32 %v3248_v35, 0.0  ;;  %v6950_v6 = vadd.f32 %v6690_v41, %v8230_v51  ;;  %v3080_v40 = vpop.f32.mrb[13].mxu0 }
 0x2ae   : > { %v3368_v11 = vmax.f32 %v3336_v60, %v3352_v44  ;;  %v3353_v23 = vld [vmem:[#allocation5 + $0x38] sm:$0xff]  ;;  %3310 = vst.msk [vmem:[#allocation5 + $0x40] sm:$0xff] %vm3301_vm4, %v3277_v50  ;;  %v3278_v63 = vmax.f32 %v3246_v37, 0.0  ;;  %v6951_v7 = vadd.f32 %v3080_v40, %v8233_v49  ;;  %v6691_v15 = vpop.f32.mrb[14].mxu0  ;;  %v3491_v40 = vld [vmem:[#allocation3 + $0x8] sm:$0xff] }
 0x2af   : > { %v3337_v25 = vld [vmem:[#allocation5 + $0x28] sm:$0xff]  ;;  %3313 = vst.msk [vmem:[#allocation5 + $0x58] sm:$0xff] %vm3301_vm4, %v3280_v43  ;;  %v3212_v26 = vmul.f32 %v6950_v6, %v8337_v16  ;;  %v6952_v3 = vadd.f32 %v6691_v15, %v8235_v59  ;;  %v3083_v57 = vpop.f32.mrb[15].mxu0 }
 0x2b0   : > { %3384 = vst.msk [vmem:[#allocation5 + $0x20] sm:$0xff] %vm3301_vm4, %v3368_v11  ;;  %v3369_v51 = vmax.f32 %v3337_v25, %v3353_v23  ;;  %3311 = vst.msk [vmem:[#allocation5 + $0x48] sm:$0xff] %vm3301_vm4, %v3278_v63  ;;  %v3210_v58 = vmul.f32 %v6951_v7, %v8337_v16  ;;  %v6953_v10 = vadd.f32 %v3083_v57, %v8237_v4 }
 0x2b1   : > { %v3398_v39 = vld [vmem:[#allocation5] ss:$2 sm:$0xff]  ;;  %v3414_v49 = vld [vmem:[#allocation5 + $0x1] ss:$2 sm:$0xff]  ;;  %v3251_v20 = vadd.f32 %v8343_v33, %v3212_v26  ;;  %v3213_v34 = vmul.f32 %v6952_v3, %v8337_v16 }
 0x2b2   : > { %v3429_v45 = vmax.f32 %v3398_v39, %v3414_v49  ;;  %3385 = vst.msk [vmem:[#allocation5 + $0x28] sm:$0xff] %vm3301_vm4, %v3369_v51  ;;  %v3249_v59 = vadd.f32 %v8343_v33, %v3210_v58  ;;  %v3211_v52 = vmul.f32 %v6953_v10, %v8337_v16 }
 0x2b3   : > { %v3283_v56 = vmax.f32 %v3251_v20, 0.0  ;;  %v3252_v55 = vadd.f32 %v8343_v33, %v3213_v34 }
 0x2b4   : > { %3469 = vst.msk [vmem:[#allocation3 + $0x20] sm:$0xff] %vm3301_vm4, %v3429_v45  ;;  %v3354_v0 = vld [vmem:[#allocation5 + $0x50] sm:$0xff]  ;;  %v3281_v4 = vmax.f32 %v3249_v59, 0.0  ;;  %v3250_v1 = vadd.f32 %v8343_v33, %v3211_v52  ;;  %v6694_v13 = vpop.f32.mrb[16].mxu0 }
 0x2b5   : > { %v3338_v9 = vld [vmem:[#allocation5 + $0x40] sm:$0xff]  ;;  %3316 = vst.msk [vmem:[#allocation5 + $0x70] sm:$0xff] %vm3301_vm4, %v3283_v56  ;;  %v3284_v14 = vmax.f32 %v3252_v55, 0.0  ;;  %v6954_v19 = vadd.f32 %v6694_v13, %v8240_v2  ;;  %v3096_v22 = vpop.f32.mrb[17].mxu0 }
 0x2b6   : > { %v3370_v21 = vmax.f32 %v3338_v9, %v3354_v0  ;;  %v3355_v28 = vld [vmem:[#allocation5 + $0x58] sm:$0xff]  ;;  %3314 = vst.msk [vmem:[#allocation5 + $0x60] sm:$0xff] %vm3301_vm4, %v3281_v4  ;;  %v3282_v27 = vmax.f32 %v3250_v1, 0.0  ;;  %v6955_v32 = vadd.f32 %v3096_v22, %v8244_v12  ;;  %v6695_v42 = vpop.f32.mrb[18].mxu0 }
 0x2b7   : > { %v3339_v31 = vld [vmem:[#allocation5 + $0x48] sm:$0xff]  ;;  %3317 = vst.msk [vmem:[#allocation5 + $0x78] sm:$0xff] %vm3301_vm4, %v3284_v14  ;;  %v3216_v35 = vmul.f32 %v6954_v19, %v8337_v16  ;;  %v6956_v44 = vadd.f32 %v6695_v42, %v8246_v17  ;;  %v3099_v50 = vpop.f32.mrb[19].mxu0 }
 0x2b8   : > { %3386 = vst.msk [vmem:[#allocation5 + $0x40] sm:$0xff] %vm3301_vm4, %v3370_v21  ;;  %v3371_v2 = vmax.f32 %v3339_v31, %v3355_v28  ;;  %3315 = vst.msk [vmem:[#allocation5 + $0x68] sm:$0xff] %vm3301_vm4, %v3282_v27  ;;  %v3214_v37 = vmul.f32 %v6955_v32, %v8337_v16  ;;  %v6957_v41 = vadd.f32 %v3099_v50, %v8248_v18 }
 0x2b9   : > { %v3400_v60 = vld [vmem:[#allocation5 + $0x20] ss:$2 sm:$0xff]  ;;  %v3416_v12 = vld [vmem:[#allocation5 + $0x21] ss:$2 sm:$0xff]  ;;  %v3255_v43 = vadd.f32 %v8343_v33, %v3216_v35  ;;  %v3217_v6 = vmul.f32 %v6956_v44, %v8337_v16 }
 0x2ba   : > { %v3430_v11 = vmax.f32 %v3400_v60, %v3416_v12  ;;  %3387 = vst.msk [vmem:[#allocation5 + $0x48] sm:$0xff] %vm3301_vm4, %v3371_v2  ;;  %v3253_v17 = vadd.f32 %v8343_v33, %v3214_v37  ;;  %v3215_v23 = vmul.f32 %v6957_v41, %v8337_v16 }
 0x2bb   : > { %v3287_v63 = vmax.f32 %v3255_v43, 0.0  ;;  %v3256_v7 = vadd.f32 %v8343_v33, %v3217_v6  ;;  %v8426_v15 = vld [vmem:[#allocation3 + $0x20] sm:$0xff] }
 0x2bc   : > { %3470 = vst.msk [vmem:[#allocation3 + $0x38] sm:$0xff] %vm3301_vm4, %v3430_v11  ;;  %v3356_v18 = vld [vmem:[#allocation5 + $0x70] sm:$0xff]  ;;  %v3285_v25 = vmax.f32 %v3253_v17, 0.0  ;;  %v3254_v26 = vadd.f32 %v8343_v33, %v3215_v23  ;;  %v6698_v3 = vpop.f32.mrb[20].mxu0  ;;  %v3499_v57 = vpack.c.bf16 %v8426_v15, %v3491_v40 }
 0x2bd   : > { %v3340_v51 = vld [vmem:[#allocation5 + $0x60] sm:$0xff]  ;;  %3320 = vst.msk [vmem:[#allocation5 + $0x90] sm:$0xff] %vm3301_vm4, %v3287_v63  ;;  %v3288_v58 = vmax.f32 %v3256_v7, 0.0  ;;  %v6958_v10 = vadd.f32 %v6698_v3, %v8251_v24  ;;  %v3112_v39 = vpop.f32.mrb[21].mxu0 }
 0x2be   : > { %v3372_v49 = vmax.f32 %v3340_v51, %v3356_v18  ;;  %v3357_v20 = vld [vmem:[#allocation5 + $0x78] sm:$0xff]  ;;  %3318 = vst.msk [vmem:[#allocation5 + $0x80] sm:$0xff] %vm3301_vm4, %v3285_v25  ;;  %v3286_v34 = vmax.f32 %v3254_v26, 0.0  ;;  %v6959_v45 = vadd.f32 %v3112_v39, %v8253_v29  ;;  %v6699_v59 = vpop.f32.mrb[22].mxu0  ;;  %6710 = vmatprep.mubr.msk.bf16.mxu1 %vm3301_vm4, %v3499_v57 }
 0x2bf   : > { %v3341_v52 = vld [vmem:[#allocation5 + $0x68] sm:$0xff]  ;;  %3321 = vst.msk [vmem:[#allocation5 + $0x98] sm:$0xff] %vm3301_vm4, %v3288_v58  ;;  %v3220_v56 = vmul.f32 %v6958_v10, %v8337_v16  ;;  %v6960_v55 = vadd.f32 %v6699_v59, %v8255_v30  ;;  %v3115_v0 = vpop.f32.mrb[23].mxu0 }
 0x2c0   : > { %3388 = vst.msk [vmem:[#allocation5 + $0x60] sm:$0xff] %vm3301_vm4, %v3372_v49  ;;  %v3373_v24 = vmax.f32 %v3341_v52, %v3357_v20  ;;  %3319 = vst.msk [vmem:[#allocation5 + $0x88] sm:$0xff] %vm3301_vm4, %v3286_v34  ;;  %v3218_v4 = vmul.f32 %v6959_v45, %v8337_v16  ;;  %v6961_v29 = vadd.f32 %v3115_v0, %v8257_v36  ;;  %v8483_v45 = vld [vmem:[%s8919_s4 + $0x10] sm:$0xff]  }
 0x2c1   : > { %v3402_v1 = vld [vmem:[#allocation5 + $0x40] ss:$2 sm:$0xff]  ;;  %v3418_v13 = vld [vmem:[#allocation5 + $0x41] ss:$2 sm:$0xff]  ;;  %v3259_v9 = vadd.f32 %v8343_v33, %v3220_v56  ;;  %v3221_v14 = vmul.f32 %v6960_v55, %v8337_v16 }
 0x2c2   : > { %v3431_v19 = vmax.f32 %v3402_v1, %v3418_v13  ;;  %3389 = vst.msk [vmem:[#allocation5 + $0x68] sm:$0xff] %vm3301_vm4, %v3373_v24  ;;  %v3257_v30 = vadd.f32 %v8343_v33, %v3218_v4  ;;  %v3219_v22 = vmul.f32 %v6961_v29, %v8337_v16 }
 0x2c3   : > { %v3291_v21 = vmax.f32 %v3259_v9, 0.0  ;;  %v3260_v28 = vadd.f32 %v8343_v33, %v3221_v14  ;;  %v8449_v27 = vld [vmem:[#allocation3 + $0x38] sm:$0xff] }
 0x2c4   : > { %3471 = vst.msk [vmem:[#allocation3 + $0x50] sm:$0xff] %vm3301_vm4, %v3431_v19  ;;  %v3358_v36 = vld [vmem:[#allocation5 + $0x90] sm:$0xff]  ;;  %v3289_v32 = vmax.f32 %v3257_v30, 0.0  ;;  %v3258_v42 = vadd.f32 %v8343_v33, %v3219_v22  ;;  %v6702_v31 = vpop.f32.mrb[24].mxu0  ;;  %v3892_v35 = vpack.c.bf16 %v8449_v27, %v8426_v15 }
 0x2c5   : > { %v3342_v44 = vld [vmem:[#allocation5 + $0x80] sm:$0xff]  ;;  %3324 = vst.msk [vmem:[#allocation5 + $0xb0] sm:$0xff] %vm3301_vm4, %v3291_v21  ;;  %v3292_v50 = vmax.f32 %v3260_v28, 0.0  ;;  %v6962_v2 = vadd.f32 %v6702_v31, %v8259_v48  ;;  %v3128_v37 = vpop.f32.mrb[25].mxu0 }
 0x2c6   : > { %v3374_v41 = vmax.f32 %v3342_v44, %v3358_v36  ;;  %v3359_v60 = vld [vmem:[#allocation5 + $0x98] sm:$0xff]  ;;  %3322 = vst.msk [vmem:[#allocation5 + $0xa0] sm:$0xff] %vm3301_vm4, %v3289_v32  ;;  %v3290_v12 = vmax.f32 %v3258_v42, 0.0  ;;  %v6963_v43 = vadd.f32 %v3128_v37, %v8261_v38  ;;  %v6703_v6 = vpop.f32.mrb[26].mxu0 }
 0x2c7   : > { %v3343_v40 = vld [vmem:[#allocation5 + $0x88] sm:$0xff]  ;;  %3325 = vst.msk [vmem:[#allocation5 + $0xb8] sm:$0xff] %vm3301_vm4, %v3292_v50  ;;  %v3224_v11 = vmul.f32 %v6962_v2, %v8337_v16  ;;  %v6964_v17 = vadd.f32 %v6703_v6, %v8263_v46  ;;  %v3131_v23 = vpop.f32.mrb[27].mxu0 }
 0x2c8   : > { %3390 = vst.msk [vmem:[#allocation5 + $0x80] sm:$0xff] %vm3301_vm4, %v3374_v41  ;;  %v3375_v48 = vmax.f32 %v3343_v40, %v3359_v60  ;;  %3323 = vst.msk [vmem:[#allocation5 + $0xa8] sm:$0xff] %vm3301_vm4, %v3290_v12  ;;  %v3222_v63 = vmul.f32 %v6963_v43, %v8337_v16  ;;  %v6965_v7 = vadd.f32 %v3131_v23, %v8265_v47 }
 0x2c9   : > { %v3404_v18 = vld [vmem:[#allocation5 + $0x60] ss:$2 sm:$0xff]  ;;  %v3420_v38 = vld [vmem:[#allocation5 + $0x61] ss:$2 sm:$0xff]  ;;  %v3263_v25 = vadd.f32 %v8343_v33, %v3224_v11  ;;  %v3225_v26 = vmul.f32 %v6964_v17, %v8337_v16 }
 0x2ca   : > { %v3432_v3 = vmax.f32 %v3404_v18, %v3420_v38  ;;  %3391 = vst.msk [vmem:[#allocation5 + $0x88] sm:$0xff] %vm3301_vm4, %v3375_v48  ;;  %v3261_v46 = vadd.f32 %v8343_v33, %v3222_v63  ;;  %v3223_v57 = vmul.f32 %v6965_v7, %v8337_v16 }
 0x2cb   : > { %v3295_v51 = vmax.f32 %v3263_v25, 0.0  ;;  %v3264_v58 = vadd.f32 %v8343_v33, %v3225_v26  ;;  %v8472_v10 = vld [vmem:[#allocation3 + $0x50] sm:$0xff] }
 0x2cc   : > { %3472 = vst.msk [vmem:[#allocation3 + $0x68] sm:$0xff] %vm3301_vm4, %v3432_v3  ;;  %v3360_v47 = vld [vmem:[#allocation5 + $0xb0] sm:$0xff]  ;;  %v3293_v39 = vmax.f32 %v3261_v46, 0.0  ;;  %v3262_v49 = vadd.f32 %v8343_v33, %v3223_v57  ;;  %v6706_v20 = vpop.f32.mrb[28].mxu0  ;;  %v8478_v34 = vpack.c.bf16 %v8472_v10, %v8449_v27 }
 0x2cd   : > { %v3344_v59 = vld [vmem:[#allocation5 + $0xa0] sm:$0xff]  ;;  %3328 = vst.msk [vmem:[#allocation5 + $0xd0] sm:$0xff] %vm3301_vm4, %v3295_v51  ;;  %v3296_v52 = vmax.f32 %v3264_v58, 0.0  ;;  %v6966_v56 = vadd.f32 %v6706_v20, %v8267_v53  ;;  %v3144_v55 = vpop.f32.mrb[29].mxu0 }
 0x2ce   : > { %v3376_v0 = vmax.f32 %v3344_v59, %v3360_v47  ;;  %v3361_v24 = vld [vmem:[#allocation5 + $0xb8] sm:$0xff]  ;;  %3326 = vst.msk [vmem:[#allocation5 + $0xc0] sm:$0xff] %vm3301_vm4, %v3293_v39  ;;  %v3294_v4 = vmax.f32 %v3262_v49, 0.0  ;;  %v6967_v29 = vadd.f32 %v3144_v55, %v8269_v54  ;;  %v6707_v1 = vpop.f32.mrb[30].mxu0  ;;  %6711 = vmatmul.mubr.msk.bf16.vlgmr.msra.gmra.mrb[32].mxu1 %vm3301_vm4, %v8478_v34  ;;  %v3477_v39 = vld [vmem:[#allocation3 + $0x7] sm:$0xff]  ;;  %v3480_v55 = vld [vmem:[#allocation3 + $0x4f] sm:$0xff] }
 0x2cf   : > { %v3345_v13 = vld [vmem:[#allocation5 + $0xa8] sm:$0xff]  ;;  %3329 = vst.msk [vmem:[#allocation5 + $0xd8] sm:$0xff] %vm3301_vm4, %v3296_v52  ;;  %v3228_v9 = vmul.f32 %v6966_v56, %v8337_v16  ;;  %v6968_v14 = vadd.f32 %v6707_v1, %v8271_v61  ;;  %v3147_v53 = vpop.f32.mrb[31].mxu0  ;;  %6719 = vmatpush3.bf16.msra.mxu1 %v8331_v8  ;;  %v3478_v49 = vld [vmem:[#allocation3 + $0x1f] sm:$0xff] }
 0x2d0   : > { %3392 = vst.msk [vmem:[#allocation5 + $0xa0] sm:$0xff] %vm3301_vm4, %v3376_v0  ;;  %v3377_v19 = vmax.f32 %v3345_v13, %v3361_v24  ;;  %3327 = vst.msk [vmem:[#allocation5 + $0xc8] sm:$0xff] %vm3301_vm4, %v3294_v4  ;;  %v3226_v54 = vmul.f32 %v6967_v29, %v8337_v16  ;;  %v6969_v30 = vadd.f32 %v3147_v53, %v8273_v62  ;;  %6728 = vmatprep.subr.bf16.mxu1 %v8483_v45  ;;  %v3479_v24 = vld [vmem:[#allocation3 + $0x37] sm:$0xff]  ;;  %v3673_v53 = vld [vmem:[#allocation3 + $0x21] sm:$0xff] }
 0x2d1   : > { %v3406_v22 = vld [vmem:[#allocation5 + $0x80] ss:$2 sm:$0xff]  ;;  %v3422_v21 = vld [vmem:[#allocation5 + $0x81] ss:$2 sm:$0xff]  ;;  %v3267_v28 = vadd.f32 %v8343_v33, %v3228_v9  ;;  %v3229_v61 = vmul.f32 %v6968_v14, %v8337_v16  ;;  %v3485_v56 = vpack.c.bf16 %v3478_v49, %v3477_v39  ;;  %v8539_v4 = vpack.c.bf16 %v3480_v55, %v3479_v24  ;;  %v7335_v1 = vld [vmem:[%s8919_s4 + $0x18] sm:$0xff]  }
 0x2d2   : > { %v3433_v36 = vmax.f32 %v3406_v22, %v3422_v21  ;;  %3393 = vst.msk [vmem:[#allocation5 + $0xa8] sm:$0xff] %vm3301_vm4, %v3377_v19  ;;  %v3265_v8 = vadd.f32 %v8343_v33, %v3226_v54  ;;  %v3227_v32 = vmul.f32 %v6969_v30, %v8337_v16  ;;  %v3672_v14 = vld [vmem:[#allocation3 + $0x9] sm:$0xff]  ;;  %v3675_v22 = vld [vmem:[#allocation3 + $0x51] sm:$0xff] }
 0x2d3   : > { %v3299_v42 = vmax.f32 %v3267_v28, 0.0  ;;  %v3268_v31 = vadd.f32 %v8343_v33, %v3229_v61  ;;  %v8506_v44 = vld [vmem:[#allocation3 + $0x68] sm:$0xff]  ;;  %v3680_v30 = vpack.c.bf16 %v3673_v53, %v3672_v14  ;;  %v3674_v28 = vld [vmem:[#allocation3 + $0x39] sm:$0xff] }
 0x2d4   : > { %3473 = vst.msk [vmem:[#allocation3 + $0x80] sm:$0xff] %vm3301_vm4, %v3433_v36  ;;  %v3362_v62 = vld [vmem:[#allocation5 + $0xd0] sm:$0xff]  ;;  %v3297_v50 = vmax.f32 %v3265_v8, 0.0  ;;  %v3266_v2 = vadd.f32 %v8343_v33, %v3227_v32  ;;  %v3893_v37 = vpack.c.bf16 %v8506_v44, %v8472_v10  ;;  %v3481_v29 = vld [vmem:[#allocation3 + $0x67] sm:$0xff]  ;;  %v3681_v61 = vpack.c.bf16 %v3675_v22, %v3674_v28 }
 0x2d5   : > { %v3346_v41 = vld [vmem:[#allocation5 + $0xc0] sm:$0xff]  ;;  %3332 = vst.msk [vmem:[#allocation5 + $0xf0] sm:$0xff] %vm3301_vm4, %v3299_v42  ;;  %v3300_v60 = vmax.f32 %v3268_v31, 0.0  ;;  %v3676_v36 = vld [vmem:[#allocation3 + $0x69] sm:$0xff]  ;;  %v3998_v27 = vpack.c.bf16 %v3674_v28, %v3673_v53 }
 0x2d6   : > { %v3378_v12 = vmax.f32 %v3346_v41, %v3362_v62  ;;  %v3363_v16 = vld [vmem:[#allocation5 + $0xd8] sm:$0xff]  ;;  %3330 = vst.msk [vmem:[#allocation5 + $0xe0] sm:$0xff] %vm3301_vm4, %v3297_v50  ;;  %v3298_v43 = vmax.f32 %v3266_v2, 0.0  ;;  %v3786_v62 = vpack.c.bf16 %v3479_v24, %v3478_v49  ;;  %v3787_v50 = vpack.c.bf16 %v3481_v29, %v3480_v55  ;;  %v7337_v2 = vld [vmem:[%s8919_s4 + $0x28] sm:$0xff]  }
 0x2d7   : > { %v3347_v6 = vld [vmem:[#allocation5 + $0xc8] sm:$0xff]  ;;  %3333 = vst.msk [vmem:[#allocation5 + $0xf8] sm:$0xff] %vm3301_vm4, %v3300_v60 }
 0x2d8   : > { %3394 = vst.msk [vmem:[#allocation5 + $0xc0] sm:$0xff] %vm3301_vm4, %v3378_v12  ;;  %v3379_v40 = vmax.f32 %v3347_v6, %v3363_v16  ;;  %3331 = vst.msk [vmem:[#allocation5 + $0xe8] sm:$0xff] %vm3301_vm4, %v3298_v43  ;;  %v7338_v16 = vld [vmem:[%s8919_s4 + $0x30] sm:$0xff]  }
 0x2d9   : > { %v3408_v33 = vld [vmem:[#allocation5 + $0xa0] ss:$2 sm:$0xff]  ;;  %v3424_v11 = vld [vmem:[#allocation5 + $0xa1] ss:$2 sm:$0xff] }
 0x2da   : > { %v3434_v17 = vmax.f32 %v3408_v33, %v3424_v11  ;;  %3395 = vst.msk [vmem:[#allocation5 + $0xc8] sm:$0xff] %vm3301_vm4, %v3379_v40  ;;  %v7339_v40 = vld [vmem:[%s8919_s4 + $0x38] sm:$0xff]   ;;  %v7340_v33 = vld [vmem:[%s8919_s4 + $0x40] sm:$0xff]  }
 0x2db   : > { %v8518_v23 = vld [vmem:[#allocation3 + $0x80] sm:$0xff] }
 0x2dc   : > { %3474 = vst.msk [vmem:[#allocation3 + $0x98] sm:$0xff] %vm3301_vm4, %v3434_v17  ;;  %v3364_v48 = vld [vmem:[#allocation5 + $0xf0] sm:$0xff]  ;;  %v8523_v63 = vpack.c.bf16 %v8518_v23, %v8506_v44  ;;  %v3482_v0 = vld [vmem:[#allocation3 + $0x7f] sm:$0xff] }
 0x2dd   : > { %v3348_v7 = vld [vmem:[#allocation5 + $0xe0] sm:$0xff]  ;;  %v8544_v13 = vpack.c.bf16 %v3482_v0, %v3481_v29 }
 0x2de   : > { %v3380_v18 = vmax.f32 %v3348_v7, %v3364_v48  ;;  %v3365_v38 = vld [vmem:[#allocation5 + $0xf8] sm:$0xff]  ;;  %6714 = vmatprep.mubr.msk.bf16.mxu1 %vm3301_vm4, %v8523_v63  ;;  %v3677_v21 = vld [vmem:[#allocation3 + $0x81] sm:$0xff] }
 0x2df   : > { %v3349_v25 = vld [vmem:[#allocation5 + $0xe8] sm:$0xff]  ;;  %v3682_v8 = vpack.c.bf16 %v3677_v21, %v3676_v36  ;;  %v4104_v11 = vld [vmem:[#allocation3 + $0xdf] sm:$0xff] }
 0x2e0   : > { %3396 = vst.msk [vmem:[#allocation5 + $0xe0] sm:$0xff] %vm3301_vm4, %v3380_v18  ;;  %v3381_v26 = vmax.f32 %v3349_v25, %v3365_v38  ;;  %v4316_v7 = vld [vmem:[#allocation3 + $0xe1] sm:$0xff]  ;;  %v6011_v25 = vld [vmem:[%s8920_s5] ss:$0 sm:$0xff] }
 0x2e1   : > { %v3410_v3 = vld [vmem:[#allocation5 + $0xc0] ss:$2 sm:$0xff]  ;;  %v3426_v46 = vld [vmem:[#allocation5 + $0xc1] ss:$2 sm:$0xff] }
 0x2e2   : > { %v3435_v57 = vmax.f32 %v3410_v3, %v3426_v46  ;;  %3397 = vst.msk [vmem:[#allocation5 + $0xe8] sm:$0xff] %vm3301_vm4, %v3381_v26  ;;  %v8647_v38 = vld [vmem:[%s8922_s7] sm:$0xff]  }
 0x2e3   : > { %v3497_v20 = vld [vmem:[#allocation3 + $0x98] sm:$0xff]  ;;  %v6012_v3 = vld [vmem:[%s8921_s6] ss:$0 sm:$0xff] }
 0x2e4   : > { %3475 = vst.msk [vmem:[#allocation3 + $0xb0] sm:$0xff] %vm3301_vm4, %v3435_v57  ;;  %v3483_v19 = vld [vmem:[#allocation3 + $0x97] sm:$0xff]  ;;  %v3894_v43 = vpack.c.bf16 %v3497_v20, %v8518_v23  ;;  %v4210_v23 = vld [vmem:[#allocation3 + $0xe0] sm:$0xff] }
 0x2e5   : > { %v3678_v42 = vld [vmem:[#allocation3 + $0x99] sm:$0xff]  ;;  %v3788_v41 = vpack.c.bf16 %v3483_v19, %v3482_v0 }
 0x2e6   : > { %v4000_v10 = vpack.c.bf16 %v3678_v42, %v3677_v21 }
 0x2e9   : > { %v3412_v51 = vld [vmem:[#allocation5 + $0xe0] ss:$2 sm:$0xff]  ;;  %v3428_v58 = vld [vmem:[#allocation5 + $0xe1] ss:$2 sm:$0xff] }
 0x2ea   : > { %v3436_v47 = vmax.f32 %v3412_v51, %v3428_v58 }
 0x2eb   : > { %v8530_v59 = vld [vmem:[#allocation3 + $0xb0] sm:$0xff] }
 0x2ec   : > { %3476 = vst.msk [vmem:[#allocation3 + $0xc8] sm:$0xff] %vm3301_vm4, %v3436_v47  ;;  %v8534_v52 = vpack.c.bf16 %v8530_v59, %v3497_v20  ;;  %v3484_v9 = vld [vmem:[#allocation3 + $0xaf] sm:$0xff] }
 0x2ed   : > { %v3488_v54 = vpack.c.bf16 %v3484_v9, %v3483_v19  ;;  %v3679_v32 = vld [vmem:[#allocation3 + $0xb1] sm:$0xff] }
 0x2ee   : > { %6715 = vmatmul.mubr.msk.bf16.gmra.mrb[36].mxu1 %vm3301_vm4, %v8534_v52  ;;  %v3683_v31 = vpack.c.bf16 %v3679_v32, %v3678_v42 }
 0x2ef   : > { %6720 = vmatprep.mubr.msk.bf16.mxu1 %vm3301_vm4, %v3485_v56 }
 0x2f3   : > { %v3785_v60 = vld [vmem:[#allocation3 + $0xc7] sm:$0xff] }
 0x2f4   : > { %v3789_v12 = vpack.c.bf16 %v3785_v60, %v3484_v9  ;;  %v3891_v6 = vld [vmem:[#allocation3 + $0xc8] sm:$0xff]  ;;  %v4108_v17 = vpack.c.bf16 %v4104_v11, %v3785_v60 }
 0x2f5   : > { %v3895_v15 = vpack.c.bf16 %v3891_v6, %v8530_v59  ;;  %v3997_v44 = vld [vmem:[#allocation3 + $0xc9] sm:$0xff]  ;;  %v4214_v48 = vpack.c.bf16 %v4210_v23, %v3891_v6 }
 0x2f6   : > { %6721 = vmatmul.mubr.msk.bf16.vlgmr.msra.gmra.mrb[32].mxu1 %vm3301_vm4, %v8539_v4  ;;  %v4320_v18 = vpack.c.bf16 %v4316_v7, %v3997_v44 }
 0x2f7   : > { %6729 = vmatpush3.bf16.msra.mxu1 %v8483_v45  ;;  %6724 = vmatprep.mubr.msk.bf16.mxu1 %vm3301_vm4, %v8544_v13  ;;  %v7336_v45 = vld [vmem:[%s8919_s4 + $0x20] sm:$0xff]  }
 0x2f8   : > { %6738 = vmatprep.subr.bf16.mxu1 %v7335_v1 }
 0x2fe   : > { %6725 = vmatmul.mubr.msk.bf16.gmra.mrb[36].mxu1 %vm3301_vm4, %v3488_v54 }
 0x2ff   : > { %6730 = vmatprep.mubr.msk.bf16.mxu1 %vm3301_vm4, %v3680_v30 }
 0x306   : > { %6731 = vmatmul.mubr.msk.bf16.vlgmr.msra.gmra.mrb[32].mxu1 %vm3301_vm4, %v3681_v61 }
 0x307   : > { %6739 = vmatpush3.bf16.msra.mxu1 %v7335_v1  ;;  %6734 = vmatprep.mubr.msk.bf16.mxu1 %vm3301_vm4, %v3682_v8 }
 0x308   : > { %6748 = vmatprep.subr.bf16.mxu1 %v7336_v45 }
 0x30e   : > { %6735 = vmatmul.mubr.msk.bf16.gmra.mrb[36].mxu1 %vm3301_vm4, %v3683_v31 }
 0x30f   : > { %6740 = vmatprep.mubr.msk.bf16.mxu1 %vm3301_vm4, %v3786_v62 }
 0x316   : > { %6741 = vmatmul.mubr.msk.bf16.vlgmr.msra.gmra.mrb[32].mxu1 %vm3301_vm4, %v3787_v50 }
 0x317   : > { %6749 = vmatpush3.bf16.msra.mxu1 %v7336_v45  ;;  %6744 = vmatprep.mubr.msk.bf16.mxu1 %vm3301_vm4, %v3788_v41 }
 0x318   : > { %6758 = vmatprep.subr.bf16.mxu1 %v7337_v2 }
 0x31e   : > { %6745 = vmatmul.mubr.msk.bf16.gmra.mrb[36].mxu1 %vm3301_vm4, %v3789_v12 }
 0x31f   : > { %6750 = vmatprep.mubr.msk.bf16.mxu1 %vm3301_vm4, %v3892_v35  ;;  %v3999_v35 = vpack.c.bf16 %v3676_v36, %v3675_v22 }
 0x326   : > { %6751 = vmatmul.mubr.msk.bf16.vlgmr.msra.gmra.mrb[32].mxu1 %vm3301_vm4, %v3893_v37  ;;  %v4001_v37 = vpack.c.bf16 %v3997_v44, %v3679_v32 }
 0x327   : > { %6759 = vmatpush3.bf16.msra.mxu1 %v7337_v2  ;;  %6754 = vmatprep.mubr.msk.bf16.mxu1 %vm3301_vm4, %v3894_v43 }
 0x328   : > { %6768 = vmatprep.subr.bf16.mxu1 %v7338_v16 }
 0x32e   : > { %6755 = vmatmul.mubr.msk.bf16.gmra.mrb[36].mxu1 %vm3301_vm4, %v3895_v15 }
 0x32f   : > { %6760 = vmatprep.mubr.msk.bf16.mxu1 %vm3301_vm4, %v3998_v27 }
 0x336   : > { %6761 = vmatmul.mubr.msk.bf16.vlgmr.msra.gmra.mrb[32].mxu1 %vm3301_vm4, %v3999_v35 }
 0x337   : > { %6769 = vmatpush3.bf16.msra.mxu1 %v7338_v16  ;;  %6764 = vmatprep.mubr.msk.bf16.mxu1 %vm3301_vm4, %v4000_v10 }
 0x338   : > { %6778 = vmatprep.subr.bf16.mxu1 %v7339_v40 }
 0x33e   : > { %6765 = vmatmul.mubr.msk.bf16.gmra.mrb[36].mxu1 %vm3301_vm4, %v4001_v37  ;;  %v4532_v37 = vld [vmem:[#allocation4 + $0x8] sm:$0xff] }
 0x33f   : > { %6770 = vmatprep.mubr.msk.bf16.mxu1 %vm3301_vm4, %v8539_v4 }
 0x346   : > { %6771 = vmatmul.mubr.msk.bf16.vlgmr.msra.gmra.mrb[32].mxu1 %vm3301_vm4, %v8544_v13 }
 0x347   : > { %6779 = vmatpush3.bf16.msra.mxu1 %v7339_v40  ;;  %6774 = vmatprep.mubr.msk.bf16.mxu1 %vm3301_vm4, %v3488_v54 }
 0x348   : > { %6788 = vmatprep.subr.bf16.mxu1 %v7340_v33 }
 0x34e   : > { %6775 = vmatmul.mubr.msk.bf16.gmra.mrb[36].mxu1 %vm3301_vm4, %v4108_v17 }
 0x34f   : > { %6780 = vmatprep.mubr.msk.bf16.mxu1 %vm3301_vm4, %v8478_v34  ;;  %v7341_v34 = vld [vmem:[%s8922_s7 + $0x10] sm:$0xff]  }
 0x356   : > { %6781 = vmatmul.mubr.msk.bf16.vlgmr.msra.gmra.mrb[32].mxu1 %vm3301_vm4, %v8523_v63  ;;  %v7342_v63 = vld [vmem:[%s8922_s7 + $0x18] sm:$0xff]  }
 0x357   : > { %6789 = vmatpush3.bf16.msra.mxu1 %v7340_v33  ;;  %6784 = vmatprep.mubr.msk.bf16.mxu1 %vm3301_vm4, %v8534_v52 }
 0x358   : > { %6798 = vmatprep.subr.bf16.mxu1 %v7341_v34 }
 0x35e   : > { %6785 = vmatmul.mubr.msk.bf16.gmra.mrb[36].mxu1 %vm3301_vm4, %v4214_v48 }
 0x35f   : > { %6790 = vmatprep.mubr.msk.bf16.mxu1 %vm3301_vm4, %v3681_v61 }
 0x366   : > { %6791 = vmatmul.mubr.msk.bf16.vlgmr.msra.gmra.mrb[32].mxu1 %vm3301_vm4, %v3682_v8 }
 0x367   : > { %6794 = vmatprep.mubr.msk.bf16.mxu1 %vm3301_vm4, %v3683_v31  ;;  %6799 = vmatpush3.bf16.msra.mxu1 %v7341_v34 }
 0x368   : > { %6800 = vmatprep.subr.bf16.mxu1 %v7342_v63 }
 0x36b   : > { %6801 = vmatpush3.bf16.msra.mxu1 %v7342_v63  ;;  %v4522_v63 = vld [vmem:[#allocation4 + $0x7] sm:$0xff] }
 0x36c   : > { %6806 = vmatprep.subr.bf16.mxu1 %v8647_v38 }
 0x36e   : > { %6795 = vmatmul.mubr.msk.bf16.gmra.mrb[36].mxu1 %vm3301_vm4, %v4320_v18 }
 0x439   : > { %v6792_v26 = vpop.f32.mrb[32].mxu1 }
 0x43a   : > { %v4424_v46 = vmul.f32 %v6792_v26, %v6011_v25  ;;  %v4376_v57 = vpop.f32.mrb[33].mxu1 }
 0x43b   : > { %v4422_v51 = vmul.f32 %v6011_v25, %v4376_v57  ;;  %v6793_v58 = vpop.f32.mrb[34].mxu1  ;;  %v7344_v57 = vld [vmem:[%s8922_s7 + $0x8] sm:$0xff]  }
 0x43c   : > { %v4439_v47 = vadd.f32 %v6012_v3, %v4424_v46  ;;  %v4425_v39 = vmul.f32 %v6793_v58, %v6011_v25  ;;  %v4379_v49 = vpop.f32.mrb[35].mxu1  ;;  %v7345_v58 = vld [vmem:[%s8922_s7 + $0x20] sm:$0xff]  }
 0x43d   : > { %v4437_v20 = vadd.f32 %v6012_v3, %v4422_v51  ;;  %v4423_v59 = vmul.f32 %v6011_v25, %v4379_v49 }
 0x43e   : > { %v4447_v52 = vmax.f32 %v4439_v47, 0.0  ;;  %v4440_v56 = vadd.f32 %v6012_v3, %v4425_v39  ;;  %v4677_v39 = vld [vmem:[#allocation4 + $0x9] sm:$0xff] }
 0x43f   : > { %v4445_v55 = vmax.f32 %v4437_v20, 0.0  ;;  %v4438_v0 = vadd.f32 %v6012_v3, %v4423_v59 }
 0x440   : > { %4456 = vst.msk [vmem:[#allocation6 + $0x10] sm:$0xff] %vm4453_vm6, %v4447_v52  ;;  %v4448_v24 = vmax.f32 %v4440_v56, 0.0  ;;  %v7346_v52 = vld [vmem:[%s8922_s7 + $0x28] sm:$0xff]  }
 0x441   : > { %4454 = vst.msk [vmem:[#allocation6] sm:$0xff] %vm4453_vm6, %v4445_v55  ;;  %v4446_v4 = vmax.f32 %v4438_v0, 0.0  ;;  %v6796_v29 = vpop.f32.mrb[36].mxu1 }
 0x442   : > { %4457 = vst.msk [vmem:[#allocation6 + $0x18] sm:$0xff] %vm4453_vm6, %v4448_v24  ;;  %v4428_v1 = vmul.f32 %v6796_v29, %v6011_v25  ;;  %v4392_v13 = vpop.f32.mrb[37].mxu1 }
 0x443   : > { %4455 = vst.msk [vmem:[#allocation6 + $0x8] sm:$0xff] %vm4453_vm6, %v4446_v4  ;;  %v4426_v9 = vmul.f32 %v6011_v25, %v4392_v13  ;;  %v6797_v14 = vpop.f32.mrb[38].mxu1  ;;  %v7348_v4 = vld [vmem:[%s8922_s7 + $0x38] sm:$0xff]  }
 0x444   : > { %v4443_v53 = vadd.f32 %v6012_v3, %v4428_v1  ;;  %v4429_v19 = vmul.f32 %v6797_v14, %v6011_v25  ;;  %v4395_v54 = vpop.f32.mrb[39].mxu1  ;;  %v7349_v1 = vld [vmem:[%s8922_s7 + $0x40] sm:$0xff]   ;;  %v7350_v14 = vld [vmem:[%s8922_s7 + $0x48] sm:$0xff]  }
 0x445   : > { %v4441_v30 = vadd.f32 %v6012_v3, %v4426_v9  ;;  %v4427_v22 = vmul.f32 %v6011_v25, %v4395_v54 }
 0x446   : > { %v4451_v21 = vmax.f32 %v4443_v53, 0.0  ;;  %v4444_v28 = vadd.f32 %v6012_v3, %v4429_v19  ;;  %v7351_v19 = vld [vmem:[%s8922_s7 + $0x50] sm:$0xff]  }
 0x447   : > { %v4449_v61 = vmax.f32 %v4441_v30, 0.0  ;;  %v4442_v36 = vadd.f32 %v6012_v3, %v4427_v22  ;;  %v4463_v8 = vld [vmem:[#allocation6 + $0x10] sm:$0xff]  ;;  %v7352_v22 = vld [vmem:[%s8922_s7 + $0x58] sm:$0xff]  }
 0x448   : > { %4460 = vst.msk [vmem:[#allocation6 + $0x30] sm:$0xff] %vm4453_vm6, %v4451_v21  ;;  %v4452_v45 = vmax.f32 %v4444_v28, 0.0  ;;  %v4462_v31 = vld [vmem:[#allocation6] sm:$0xff] }
 0x449   : > { %v4467_v32 = vld [vmem:[#allocation6 + $0x18] sm:$0xff]  ;;  %4458 = vst.msk [vmem:[#allocation6 + $0x20] sm:$0xff] %vm4453_vm6, %v4449_v61  ;;  %v4450_v42 = vmax.f32 %v4442_v36, 0.0  ;;  %v7353_v28 = vld [vmem:[%s8922_s7 + $0x60] sm:$0xff]  }
 0x44a   : > { %v4471_v62 = vmax.f32 %v4463_v8, %v4467_v32  ;;  %v4466_v50 = vld [vmem:[#allocation6 + $0x8] sm:$0xff]  ;;  %4461 = vst.msk [vmem:[#allocation6 + $0x38] sm:$0xff] %vm4453_vm6, %v4452_v45  ;;  %v7355_v8 = vld [vmem:[%s8922_s7 + $0x70] sm:$0xff]  }
 0x44b   : > { %v4470_v2 = vmax.f32 %v4462_v31, %v4466_v50  ;;  %4459 = vst.msk [vmem:[#allocation6 + $0x28] sm:$0xff] %vm4453_vm6, %v4450_v42  ;;  %v7354_v45 = vld [vmem:[%s8922_s7 + $0x68] sm:$0xff]   ;;  %v7356_v31 = vld [vmem:[%s8922_s7 + $0x78] sm:$0xff]   ;;  %v5091_v50 = vld [vmem:[#allocation4 + $0x80] sm:$0xff] }
 0x44c   : > { %4475 = vst.msk [vmem:[#allocation6 + $0x10] sm:$0xff] %vm4453_vm6, %v4471_v62  ;;  %v5009_v32 = vld [vmem:[#allocation4 + $0x7f] sm:$0xff]  ;;  %v7357_v62 = vld [vmem:[%s8922_s7 + $0x80] sm:$0xff]  }
 0x44d   : > { %4474 = vst.msk [vmem:[#allocation6] sm:$0xff] %vm4453_vm6, %v4470_v2 }
 0x44f   : > { %v4465_v41 = vld [vmem:[#allocation6 + $0x30] sm:$0xff] }
 0x450   : > { %v4464_v12 = vld [vmem:[#allocation6 + $0x20] sm:$0xff] }
 0x451   : > { %v4469_v60 = vld [vmem:[#allocation6 + $0x38] sm:$0xff] }
 0x452   : > { %v4473_v16 = vmax.f32 %v4465_v41, %v4469_v60  ;;  %v4468_v43 = vld [vmem:[#allocation6 + $0x28] sm:$0xff]  ;;  %v5173_v60 = vld [vmem:[#allocation4 + $0x81] sm:$0xff] }
 0x453   : > { %v4472_v6 = vmax.f32 %v4464_v12, %v4468_v43  ;;  %v4480_v15 = vld [vmem:[#allocation6 + $0x10] ss:$2 sm:$0xf]  ;;  %v4488_v27 = vld [vmem:[#allocation6 + $0x11] ss:$2 sm:$0xf] }
 0x454   : > { %4477 = vst.msk [vmem:[#allocation6 + $0x30] sm:$0xff] %vm4453_vm6, %v4473_v16  ;;  %v4478_v35 = vld [vmem:[#allocation6] ss:$2 sm:$0xf]  ;;  %v4494_v10 = vmax.f32 %v4480_v15, %v4488_v27  ;;  %v7358_v41 = vld [vmem:[%s8922_s7 + $0x88] sm:$0xff]   ;;  %v7362_v15 = vld [vmem:[%s8925_s10 + $0x38] sm:$0xff]  }
 0x455   : > { %v4486_v40 = vld [vmem:[#allocation6 + $0x1] ss:$2 sm:$0xf]  ;;  %4476 = vst.msk [vmem:[#allocation6 + $0x20] sm:$0xff] %vm4453_vm6, %v4472_v6  ;;  %v7360_v43 = vld [vmem:[%s8925_s10 + $0x28] sm:$0xff]   ;;  %v7361_v6 = vld [vmem:[%s8925_s10 + $0x30] sm:$0xff]  }
 0x456   : > { %v4493_v44 = vmax.f32 %v4478_v35, %v4486_v40  ;;  %4519 = vst.msk [vmem:[#allocation4 + $0x38] sm:$0xf] %vm4517_vm8, %v4494_v10  ;;  %v7359_v16 = vld [vmem:[%s8925_s10 + $0x20] sm:$0xff]  }
 0x457   : > { %v6081_v27 = vld [vmem:[%s8923_s8] ss:$0 sm:$0xff] }
 0x458   : > { %4518 = vst.msk [vmem:[#allocation4 + $0x20] sm:$0xf] %vm4517_vm8, %v4493_v44  ;;  %v6082_v40 = vld [vmem:[%s8924_s9] ss:$0 sm:$0xff] }
 0x45b   : > { %v4484_v33 = vld [vmem:[#allocation6 + $0x30] ss:$2 sm:$0xf]  ;;  %v4492_v11 = vld [vmem:[#allocation6 + $0x31] ss:$2 sm:$0xf] }
 0x45c   : > { %v4482_v17 = vld [vmem:[#allocation6 + $0x20] ss:$2 sm:$0xf]  ;;  %v4490_v23 = vld [vmem:[#allocation6 + $0x21] ss:$2 sm:$0xf]  ;;  %v4496_v48 = vmax.f32 %v4484_v33, %v4492_v11 }
 0x45d   : > { %v4495_v7 = vmax.f32 %v4482_v17, %v4490_v23  ;;  %v4534_v26 = vld [vmem:[#allocation4 + $0x38] sm:$0xff] }
 0x45e   : > { %4521 = vst.msk [vmem:[#allocation4 + $0x68] sm:$0xf] %vm4517_vm8, %v4496_v48  ;;  %v4524_v20 = vld [vmem:[#allocation4 + $0x37] sm:$0xff] }
 0x45f   : > { %v4533_v18 = vld [vmem:[#allocation4 + $0x20] sm:$0xff]  ;;  %4520 = vst.msk [vmem:[#allocation4 + $0x50] sm:$0xf] %vm4517_vm8, %v4495_v7 }
 0x460   : > { %v4536_v34 = vpack.c.bf16 %v4533_v18, %v4532_v37  ;;  %v4523_v25 = vld [vmem:[#allocation4 + $0x1f] sm:$0xff]  ;;  %v4845_v53 = vpack.c.bf16 %v4534_v26, %v4533_v18 }
 0x461   : > { %v4526_v51 = vpack.c.bf16 %v4523_v25, %v4522_v63  ;;  %v4678_v49 = vld [vmem:[#allocation4 + $0x21] sm:$0xff]  ;;  %v4679_v0 = vld [vmem:[#allocation4 + $0x39] sm:$0xff]  ;;  %v4763_v29 = vpack.c.bf16 %v4524_v20, %v4523_v25 }
 0x462   : > { %6802 = vmatprep.mubr.msk.bf16.mxu1 %vm4453_vm6, %v4536_v34  ;;  %v4681_v56 = vpack.c.bf16 %v4678_v49, %v4677_v39  ;;  %v4927_v21 = vpack.c.bf16 %v4679_v0, %v4678_v49 }
 0x465   : > { %v4762_v13 = vld [vmem:[#allocation4 + $0x67] sm:$0xff] }
 0x466   : > { %v4535_v3 = vld [vmem:[#allocation4 + $0x50] sm:$0xff]  ;;  %v4844_v54 = vld [vmem:[#allocation4 + $0x68] sm:$0xff]  ;;  %v5011_v42 = vpack.c.bf16 %v5009_v32, %v4762_v13 }
 0x467   : > { %v8673_v46 = vpack.c.bf16 %v4535_v3, %v4534_v26  ;;  %v4525_v47 = vld [vmem:[#allocation4 + $0x4f] sm:$0xff]  ;;  %v4846_v30 = vpack.c.bf16 %v4844_v54, %v4535_v3  ;;  %v5093_v2 = vpack.c.bf16 %v5091_v50, %v4844_v54 }
 0x468   : > { %v4527_v59 = vpack.c.bf16 %v4525_v47, %v4524_v20  ;;  %v4680_v55 = vld [vmem:[#allocation4 + $0x51] sm:$0xff]  ;;  %v4764_v9 = vpack.c.bf16 %v4762_v13, %v4525_v47  ;;  %v4926_v61 = vld [vmem:[#allocation4 + $0x69] sm:$0xff] }
 0x469   : > { %6803 = vmatmul.mubr.msk.bf16.vlgmr.msra.gmra.mrb[40].mxu1 %vm4453_vm6, %v8673_v46  ;;  %v4682_v24 = vpack.c.bf16 %v4680_v55, %v4679_v0  ;;  %v4928_v36 = vpack.c.bf16 %v4926_v61, %v4680_v55  ;;  %v5175_v12 = vpack.c.bf16 %v5173_v60, %v4926_v61  ;;  %v7364_v55 = vld [vmem:[%s8925_s10 + $0x8] sm:$0xff]   ;;  %v7365_v0 = vld [vmem:[%s8925_s10 + $0x10] sm:$0xff]   ;;  %v7375_v61 = vld [vmem:[%s8927_s12] sm:$0xff]  }
 0x46a   : > { %6807 = vmatpush3.bf16.msra.mxu1 %v8647_v38  ;;  %6810 = vmatprep.mubr.msk.bf16.mxu1 %vm4453_vm6, %v4526_v51  ;;  %v7347_v38 = vld [vmem:[%s8922_s7 + $0x30] sm:$0xff]   ;;  %v7379_v32 = vld [vmem:[%s8927_s12 + $0x20] sm:$0xff]  }
 0x46b   : > { %6808 = vmatprep.subr.bf16.mxu1 %v7344_v57 }
 0x46e   : > { %6809 = vmatpush3.bf16.msra.mxu1 %v7344_v57 }
 0x46f   : > { %6814 = vmatprep.subr.bf16.mxu1 %v7345_v58 }
 0x475   : > { %6811 = vmatmul.mubr.msk.bf16.vlgmr.msra.gmra.mrb[40].mxu1 %vm4453_vm6, %v4527_v59 }
 0x476   : > { %6815 = vmatpush3.bf16.msra.mxu1 %v7345_v58  ;;  %6818 = vmatprep.mubr.msk.bf16.mxu1 %vm4453_vm6, %v4681_v56  ;;  %v7363_v56 = vld [vmem:[%s8925_s10] sm:$0xff]  }
 0x477   : > { %6816 = vmatprep.subr.bf16.mxu1 %v7346_v52 }
 0x47a   : > { %6817 = vmatpush3.bf16.msra.mxu1 %v7346_v52 }
 0x47b   : > { %6822 = vmatprep.subr.bf16.mxu1 %v7347_v38 }
 0x481   : > { %6819 = vmatmul.mubr.msk.bf16.vlgmr.msra.gmra.mrb[40].mxu1 %vm4453_vm6, %v4682_v24 }
 0x482   : > { %6823 = vmatpush3.bf16.msra.mxu1 %v7347_v38  ;;  %6826 = vmatprep.mubr.msk.bf16.mxu1 %vm4453_vm6, %v4763_v29  ;;  %v7368_v29 = vld [vmem:[%s8925_s10 + $0x48] sm:$0xff]  }
 0x483   : > { %6824 = vmatprep.subr.bf16.mxu1 %v7348_v4 }
 0x486   : > { %6825 = vmatpush3.bf16.msra.mxu1 %v7348_v4  ;;  %v7367_v4 = vld [vmem:[%s8925_s10 + $0x40] sm:$0xff]  }
 0x487   : > { %6830 = vmatprep.subr.bf16.mxu1 %v7349_v1 }
 0x48d   : > { %6827 = vmatmul.mubr.msk.bf16.vlgmr.msra.gmra.mrb[40].mxu1 %vm4453_vm6, %v4764_v9 }
 0x48e   : > { %6831 = vmatpush3.bf16.msra.mxu1 %v7349_v1  ;;  %6834 = vmatprep.mubr.msk.bf16.mxu1 %vm4453_vm6, %v4845_v53  ;;  %v7369_v1 = vld [vmem:[%s8925_s10 + $0x50] sm:$0xff]  }
 0x48f   : > { %6832 = vmatprep.subr.bf16.mxu1 %v7350_v14 }
 0x492   : > { %6833 = vmatpush3.bf16.msra.mxu1 %v7350_v14  ;;  %v7370_v14 = vld [vmem:[%s8925_s10 + $0x58] sm:$0xff]  }
 0x493   : > { %6838 = vmatprep.subr.bf16.mxu1 %v7351_v19 }
 0x499   : > { %6835 = vmatmul.mubr.msk.bf16.vlgmr.msra.gmra.mrb[40].mxu1 %vm4453_vm6, %v4846_v30  ;;  %v7372_v30 = vld [vmem:[%s8925_s10 + $0x68] sm:$0xff]  }
 0x49a   : > { %6839 = vmatpush3.bf16.msra.mxu1 %v7351_v19  ;;  %6842 = vmatprep.mubr.msk.bf16.mxu1 %vm4453_vm6, %v4927_v21  ;;  %v7371_v19 = vld [vmem:[%s8925_s10 + $0x60] sm:$0xff]   ;;  %v7374_v21 = vld [vmem:[%s8925_s10 + $0x78] sm:$0xff]  }
 0x49b   : > { %6840 = vmatprep.subr.bf16.mxu1 %v7352_v22 }
 0x49e   : > { %6841 = vmatpush3.bf16.msra.mxu1 %v7352_v22  ;;  %v7373_v22 = vld [vmem:[%s8925_s10 + $0x70] sm:$0xff]  }
 0x49f   : > { %6846 = vmatprep.subr.bf16.mxu1 %v7353_v28 }
 0x4a5   : > { %6843 = vmatmul.mubr.msk.bf16.vlgmr.msra.gmra.mrb[40].mxu1 %vm4453_vm6, %v4928_v36  ;;  %v7376_v36 = vld [vmem:[%s8927_s12 + $0x8] sm:$0xff]  }
 0x4a6   : > { %6847 = vmatpush3.bf16.msra.mxu1 %v7353_v28  ;;  %6850 = vmatprep.mubr.msk.bf16.mxu1 %vm4453_vm6, %v4527_v59 }
 0x4a7   : > { %6848 = vmatprep.subr.bf16.mxu1 %v7354_v45 }
 0x4aa   : > { %6849 = vmatpush3.bf16.msra.mxu1 %v7354_v45  ;;  %v7377_v45 = vld [vmem:[%s8927_s12 + $0x10] sm:$0xff]  }
 0x4ab   : > { %6854 = vmatprep.subr.bf16.mxu1 %v7355_v8 }
 0x4b1   : > { %6851 = vmatmul.mubr.msk.bf16.vlgmr.msra.gmra.mrb[40].mxu1 %vm4453_vm6, %v5011_v42  ;;  %v7380_v42 = vld [vmem:[%s8927_s12 + $0x28] sm:$0xff]  }
 0x4b2   : > { %6855 = vmatpush3.bf16.msra.mxu1 %v7355_v8  ;;  %6858 = vmatprep.mubr.msk.bf16.mxu1 %vm4453_vm6, %v8673_v46  ;;  %v7378_v8 = vld [vmem:[%s8927_s12 + $0x18] sm:$0xff]  }
 0x4b3   : > { %6856 = vmatprep.subr.bf16.mxu1 %v7356_v31 }
 0x4b6   : > { %6857 = vmatpush3.bf16.msra.mxu1 %v7356_v31  ;;  %v7381_v31 = vld [vmem:[%s8927_s12 + $0x30] sm:$0xff]  }
 0x4b7   : > { %6862 = vmatprep.subr.bf16.mxu1 %v7357_v62 }
 0x4bd   : > { %6859 = vmatmul.mubr.msk.bf16.vlgmr.msra.gmra.mrb[40].mxu1 %vm4453_vm6, %v5093_v2 }
 0x4be   : > { %6863 = vmatpush3.bf16.msra.mxu1 %v7357_v62  ;;  %6866 = vmatprep.mubr.msk.bf16.mxu1 %vm4453_vm6, %v4682_v24  ;;  %v7366_v24 = vld [vmem:[%s8925_s10 + $0x18] sm:$0xff]  }
 0x4bf   : > { %6864 = vmatprep.subr.bf16.mxu1 %v7358_v41  ;;  %v7382_v62 = vld [vmem:[%s8927_s12 + $0x38] sm:$0xff]  }
 0x4c2   : > { %6865 = vmatpush3.bf16.msra.mxu1 %v7358_v41 }
 0x4c3   : > { %6870 = vmatprep.subr.bf16.mxu1 %v7448_v5 }
 0x4c9   : > { %6867 = vmatmul.mubr.msk.bf16.vlgmr.msra.gmra.mrb[40].mxu1 %vm4453_vm6, %v5175_v12 }
 0x4ca   : > { %6871 = vmatpush3.bf16.msra.mxu1 %v7359_v16  ;;  %6878 = vmatprep.mubr.msk.bf16.mxu1 %vm7449_vm9, %v7448_v5 }
 0x4cb   : > { %6872 = vmatprep.subr.bf16.mxu1 %v7448_v5 }
 0x4ce   : > { %6873 = vmatpush3.bf16.msra.mxu1 %v7360_v43 }
 0x4cf   : > { %6874 = vmatprep.subr.bf16.mxu1 %v7448_v5 }
 0x4d2   : > { %6875 = vmatpush3.bf16.msra.mxu1 %v7361_v6 }
 0x4d3   : > { %6876 = vmatprep.subr.bf16.mxu1 %v7448_v5 }
 0x4d6   : > { %6877 = vmatpush3.bf16.msra.mxu1 %v7362_v15 }
 0x4d7   : > { %6882 = vmatprep.subr.bf16.mxu1 %v7448_v5 }
 0x59c   : > { %v6868_v35 = vpop.f32.mrb[40].mxu1 }
 0x59d   : > { %v5261_v10 = vmul.f32 %v6868_v35, %v6081_v27  ;;  %v5233_v44 = vpop.f32.mrb[41].mxu1 }
 0x59e   : > { %v5259_v37 = vmul.f32 %v6081_v27, %v5233_v44  ;;  %v6869_v33 = vpop.f32.mrb[42].mxu1 }
 0x59f   : > { %v5272_v11 = vadd.f32 %v6082_v40, %v5261_v10  ;;  %v5262_v17 = vmul.f32 %v6869_v33, %v6081_v27  ;;  %v5236_v23 = vpop.f32.mrb[43].mxu1 }
 0x5a0   : > { %v5270_v48 = vadd.f32 %v6082_v40, %v5259_v37  ;;  %v5260_v7 = vmul.f32 %v6081_v27, %v5236_v23  ;;  %v5611_v37 = vld [vmem:[%s8926_s11] sm:$0x1] }
 0x5a1   : > { %v5276_v18 = vmax.f32 %v5272_v11, 0.0  ;;  %v5273_v34 = vadd.f32 %v6082_v40, %v5262_v17 }
 0x5a2   : > { %v5274_v63 = vmax.f32 %v5270_v48, 0.0  ;;  %v5271_v25 = vadd.f32 %v6082_v40, %v5260_v7 }
 0x5a3   : > { %5281 = vst.msk [vmem:[#allocation7 + $0x10] sm:$0xff] %vm5278_vm10, %v5276_v18  ;;  %v5277_v26 = vmax.f32 %v5273_v34, 0.0  ;;  %v5631_v34 = vld [vmem:[%s8928_s13] sm:$0x1] }
 0x5a4   : > { %5279 = vst.msk [vmem:[#allocation7] sm:$0xff] %vm5278_vm10, %v5274_v63  ;;  %v5275_v3 = vmax.f32 %v5271_v25, 0.0 }
 0x5a5   : > { %5282 = vst.msk [vmem:[#allocation7 + $0x18] sm:$0xff] %vm5278_vm10, %v5277_v26 }
 0x5a6   : > { %5280 = vst.msk [vmem:[#allocation7 + $0x8] sm:$0xff] %vm5278_vm10, %v5275_v3 }
 0x5aa   : > { %v5284_v46 = vld [vmem:[#allocation7 + $0x10] sm:$0xff] }
 0x5ab   : > { %v5283_v51 = vld [vmem:[#allocation7] sm:$0xff] }
 0x5ac   : > { %v5286_v57 = vld [vmem:[#allocation7 + $0x18] sm:$0xff] }
 0x5ad   : > { %v5288_v58 = vmax.f32 %v5284_v46, %v5286_v57  ;;  %v5285_v47 = vld [vmem:[#allocation7 + $0x8] sm:$0xff] }
 0x5ae   : > { %v5287_v39 = vmax.f32 %v5283_v51, %v5285_v47 }
 0x5af   : > { %5290 = vst.msk [vmem:[#allocation7 + $0x10] sm:$0xff] %vm5278_vm10, %v5288_v58 }
 0x5b0   : > { %5289 = vst.msk [vmem:[#allocation7] sm:$0xff] %vm5278_vm10, %v5287_v39 }
 0x5b6   : > { %v5293_v13 = vld [vmem:[#allocation7 + $0x10] ss:$2 sm:$0x3]  ;;  %v5297_v9 = vld [vmem:[#allocation7 + $0x11] ss:$2 sm:$0x3] }
 0x5b7   : > { %v5291_v49 = vld [vmem:[#allocation7] ss:$2 sm:$0x3]  ;;  %v5295_v20 = vld [vmem:[#allocation7 + $0x1] ss:$2 sm:$0x3]  ;;  %v5299_v53 = vmax.f32 %v5293_v13, %v5297_v9 }
 0x5b8   : > { %v5298_v59 = vmax.f32 %v5291_v49, %v5295_v20 }
 0x5b9   : > { %v5454_v54 = vpack.c.bf16 %v5299_v53, %v5299_v53 }
 0x5ba   : > { %v5300_v52 = vpack.c.bf16 %v5298_v59, %v5298_v59 }
 0x5bb   : > { %v5541_v28 = vshrl.u32 %v5454_v54, 16 }
 0x5bc   : > { %v5319_v38 = vshrl.u32 %v5300_v52, 16 }
 0x5be   : > { %6879 = vmatmul.mubr.msk.bf16.vlgmr.msra.gmra.mrb[44].mxu1 %vm5278_vm10, %v5319_v38 }
 0x5bf   : > { %6883 = vmatpush3.bf16.msra.mxu1 %v7363_v56  ;;  %6890 = vmatprep.mubr.msk.bf16.mxu1 %vm7449_vm9, %v7448_v5 }
 0x5c0   : > { %6884 = vmatprep.subr.bf16.mxu1 %v7448_v5 }
 0x5c3   : > { %6885 = vmatpush3.bf16.msra.mxu1 %v7364_v55 }
 0x5c4   : > { %6886 = vmatprep.subr.bf16.mxu1 %v7448_v5 }
 0x5c7   : > { %6887 = vmatpush3.bf16.msra.mxu1 %v7365_v0 }
 0x5c8   : > { %6888 = vmatprep.subr.bf16.mxu1 %v7448_v5 }
 0x5cb   : > { %6889 = vmatpush3.bf16.msra.mxu1 %v7366_v24 }
 0x5cc   : > { %6894 = vmatprep.subr.bf16.mxu1 %v7448_v5 }
 0x5ce   : > { %6891 = vmatmul.mubr.msk.bf16.vlgmr.msra.gmra.mrb[48].mxu1 %vm5278_vm10, %v5300_v52 }
 0x5cf   : > { %6895 = vmatpush3.bf16.msra.mxu1 %v7367_v4  ;;  %6902 = vmatprep.mubr.msk.bf16.mxu1 %vm7449_vm9, %v7448_v5 }
 0x5d0   : > { %6896 = vmatprep.subr.bf16.mxu1 %v7448_v5 }
 0x5d3   : > { %6897 = vmatpush3.bf16.msra.mxu1 %v7368_v29 }
 0x5d4   : > { %6898 = vmatprep.subr.bf16.mxu1 %v7448_v5 }
 0x5d7   : > { %6899 = vmatpush3.bf16.msra.mxu1 %v7369_v1 }
 0x5d8   : > { %6900 = vmatprep.subr.bf16.mxu1 %v7448_v5 }
 0x5db   : > { %6901 = vmatpush3.bf16.msra.mxu1 %v7370_v14 }
 0x5dc   : > { %6906 = vmatprep.subr.bf16.mxu1 %v7448_v5 }
 0x5de   : > { %6903 = vmatmul.mubr.msk.bf16.vlgmr.msra.gmra.mrb[52].mxu1 %vm5278_vm10, %v5454_v54 }
 0x5df   : > { %6907 = vmatpush3.bf16.msra.mxu1 %v7371_v19  ;;  %6914 = vmatprep.mubr.msk.bf16.mxu1 %vm7449_vm9, %v7448_v5 }
 0x5e0   : > { %6908 = vmatprep.subr.bf16.mxu1 %v7448_v5 }
 0x5e3   : > { %6909 = vmatpush3.bf16.msra.mxu1 %v7372_v30 }
 0x5e4   : > { %6910 = vmatprep.subr.bf16.mxu1 %v7448_v5 }
 0x5e7   : > { %6911 = vmatpush3.bf16.msra.mxu1 %v7373_v22 }
 0x5e8   : > { %6912 = vmatprep.subr.bf16.mxu1 %v7448_v5 }
 0x5eb   : > { %6913 = vmatpush3.bf16.msra.mxu1 %v7374_v21 }
 0x5ec   : > { %6918 = vmatprep.subr.bf16.mxu1 %v7448_v5 }
 0x5ee   : > { %6915 = vmatmul.mubr.msk.bf16.vlgmr.msra.gmra.mrb[56].mxu1 %vm5278_vm10, %v5541_v28 }
 0x5ef   : > { %6934 = vmatprep.mubr.msk.bf16.mxu1 %vm7449_vm9, %v7448_v5  ;;  %6919 = vmatpush3.bf16.msra.mxu1 %v7375_v61 }
 0x5f0   : > { %6920 = vmatprep.subr.bf16.mxu1 %v7448_v5 }
 0x5f3   : > { %6921 = vmatpush3.bf16.msra.mxu1 %v7376_v36 }
 0x5f4   : > { %6922 = vmatprep.subr.bf16.mxu1 %v7448_v5 }
 0x5f7   : > { %6923 = vmatpush3.bf16.msra.mxu1 %v7377_v45 }
 0x5f8   : > { %6924 = vmatprep.subr.bf16.mxu1 %v7448_v5 }
 0x5fb   : > { %6925 = vmatpush3.bf16.msra.mxu1 %v7378_v8 }
 0x5fc   : > { %6926 = vmatprep.subr.bf16.mxu1 %v7448_v5 }
 0x5ff   : > { %6927 = vmatpush3.bf16.msra.mxu1 %v7379_v32 }
 0x600   : > { %6928 = vmatprep.subr.bf16.mxu1 %v7448_v5 }
 0x603   : > { %6929 = vmatpush3.bf16.msra.mxu1 %v7380_v42 }
 0x604   : > { %6930 = vmatprep.subr.bf16.mxu1 %v7448_v5 }
 0x607   : > { %6931 = vmatpush3.bf16.msra.mxu1 %v7381_v31 }
 0x608   : > { %6932 = vmatprep.subr.bf16.mxu1 %v7448_v5 }
 0x60b   : > { %6933 = vmatpush3.bf16.msra.mxu1 %v7382_v62 }
 0x691   : > { %v5382_v50 = vpop.f32.mrb[44].mxu1 }
 0x692   : > { %v6880_v2 = vpop.f32.mrb[45].mxu1 }
 0x693   : > { %v5385_v41 = vpop.f32.mrb[46].mxu1 }
 0x694   : > { %v6881_v60 = vpop.f32.mrb[47].mxu1 }
 0x6a1   : > { %v5448_v12 = vpop.f32.mrb[48].mxu1 }
 0x6a2   : > { %v5449_v16 = vadd.f32 %v5448_v12, %v5382_v50  ;;  %v6892_v43 = vpop.f32.mrb[49].mxu1 }
 0x6a3   : > { %v5451_v6 = vpop.f32.mrb[50].mxu1 }
 0x6a4   : > { %v6893_v15 = vpop.f32.mrb[51].mxu1 }
 0x6b1   : > { %v5525_v27 = vpop.f32.mrb[52].mxu1 }
 0x6b2   : > { %v5531_v35 = vadd.f32 %v5525_v27, %v5449_v16  ;;  %v6904_v40 = vpop.f32.mrb[53].mxu1 }
 0x6b3   : > { %v5528_v5 = vpop.f32.mrb[54].mxu1 }
 0x6b4   : > { %v6905_v10 = vpop.f32.mrb[55].mxu1 }
 0x6c1   : > { %v5604_v44 = vpop.f32.mrb[56].mxu1 }
 0x6c2   : > { %v5610_v33 = vadd.f32 %v5604_v44, %v5531_v35  ;;  %v6916_v11 = vpop.f32.mrb[57].mxu1 }
 0x6c3   : > { %v5607_v17 = vpop.f32.mrb[58].mxu1 }
 0x6c4   : > { %v5612_v23 = vadd.f32 %v5611_v37, %v5610_v33  ;;  %v6917_v48 = vpop.f32.mrb[59].mxu1 }
 0x6c6   : > { %v5613_v7 = vmax.f32 %v5612_v23, 0.0 }
 0x6c8   : > { %v5614_v18 = vpack.c.bf16 %v5613_v7, %v5613_v7 }
 0x6ca   : > { %6935 = vmatmul.mubr.bf16.vlgmr.msra.gmra.mrb[60].mxu1 %v5614_v18 }
 0x79d   : > { %v5714_v63 = vpop.f32.mrb[60].mxu1 }
 0x79e   : > { %v5715_v25 = vadd.f32 %v5714_v63, %v5631_v34  ;;  %v6936_v26 = vpop.f32.mrb[61].mxu1 }
 0x79f   : > { %v5717_v3 = vpop.f32.mrb[62].mxu1 }
 0x7a0   : > { %v6937_v46 = vpop.f32.mrb[63].mxu1  ;;  %5721 = vst.msk [vmem:[%s459_s26] sm:$0x1] %vm5720_vm11, %v5715_v25 }
 0x7a1   : > { %7396 = shalt.err (!%p7393_p3)
}
 0x7a2   : > { %s7397_s18 = scalar_lea.hbm %s8873_s1, 16  ;;  %s7401_s28 = scalar_lea.hbm %s8929_s14, 32 }
 0x7a3   : > { %p7398_p4 = scmp.ne.s32.totalorder %s8873_s1, %s7397_s18  ;;  %p7402_p9 = scmp.lt.u32.totalorder %s8873_s1, %s8929_s14 }
 0x7a4   : > { %p7403_p10 = scmp.lt.u32.totalorder %s7401_s28, %s7397_s18  ;;  %p7405_p12 = scmp.lt.u32.totalorder %s7397_s18, %s8873_s1 }
 0x7a5   : > { %p7399_p7 = pnand %p7398_p4, %p7564_p5 }
 0x7a6   : > { %p7404_p11 = por %p7403_p10, %p7402_p9 }
 0x7a7   : > { %p7400_p8 = pneg %p7399_p7 }
 0x7a8   : > { %p7406_p13 = por %p7405_p12, %p7404_p11 }
 0x7aa   : > { %p7407_p0 = pnand %p7406_p13, %p7400_p8 }
 0x7ac   : > { %7410 = shalt.err (!%p7407_p0)
}
 0x7ad   : > { %7290 = dma.vmem_to_hbm [thread:$0]  (%p7564_p5), %s8875_s27, 16, %s8873_s1, %s5723_s17  }
 0x7ae PF: > { %p7296_p1 = scmp.ge.s32.totalorder %s7445_s16, 2  ;;  %s5747_s20 = sand.u32 1, %s7433_s29  }
 0x7af   : > { %s5748_s0 = scalar_lea.sflag [#allocation9], %s5747_s20 }
 0x7b0   : > { %p7293_p2 = pnand %p7296_p1, %p7568_p6 }
 0x7b2   : > { %7428 = dma.done.wait (!%p7293_p2), %s5748_s0, 16  }
 0x7b3   : > { %7430 = vsyncadd (!%p7293_p2), %s5748_s0, 4294967280  ;;  %p24_p3 = scmp.ge.s32.totalorder %s7551_s19, 4   ;;  %s8938_s29 = smov %s7437_s30 }
 0x7b4   : > { %s8939_s30 = smov %s7441_s15  ;;  %s8940_s15 = smov %s7562_s22 }
 0x7b5   : > { %s8941_s16 = smov %s7551_s19  ;;  %26 = sbr.rel (!%p24_p3) target bundleno = 7 (0x7), region = 169 }
 0x7bc   :  { %5752 = vsyncpa [#allocation9], 1 }
 0x7bd   :  { %5754 = vsyncpa [#allocation9 + $0x1], 1 }

</bundles_post_ra>
